<compile_context>
chip_gen: v6e
topology: v6e:2x2x1
jax: 0.10.0
libtpu: 0.0.40
codegen_flags: <defaults>
</compile_context>

<pallas_src>
import functools
import math

import jax
import jax.numpy as jnp
from jax.experimental import pallas as pl
from jax.experimental.pallas import tpu as pltpu


def autopad(k, p=None, d=1):
    """Pad to 'same' shape outputs (mirrors the PyTorch helper)."""
    if d > 1:
        k = d * (k - 1) + 1 if isinstance(k, int) else [d * (x - 1) + 1 for x in k]
    if p is None:
        p = k // 2 if isinstance(k, int) else [x // 2 for x in k]
    return p


def _round_up(x, m):
    return ((x + m - 1) // m) * m


def _cdiv(a, b):
    return -(-a // b)


# Chip-aware VMEM budgets (v5e/v6e: 128 MiB, v7x: 64 MiB per TensorCore).
try:
    _VMEM_CAP = int(pltpu.get_tpu_info().vmem_capacity_bytes)
except Exception:  # conservative (v7x-sized) default if the query is unavailable
    _VMEM_CAP = 64 * 1024 * 1024
_VMEM_LIMIT = min((_VMEM_CAP * 3) // 4, 112 * 1024 * 1024)
_RESIDENT_BUDGET = _VMEM_CAP // 3  # covers the double-buffered resident image block


# --------------------------------------------------------------------------
# Kernel: in-kernel im2col into VMEM scratch + one deep-K GEMM + BN + SiLU.
# --------------------------------------------------------------------------
def _conv_bn_silu_kernel(x_ref, w_ref, shift_ref, o_ref, patch_ref, *,
                         k, s, d, th, ow, c1, cstride, resident, act):
    """One (batch, c2-tile, row-tile) grid step.

    x_ref:     (s*s, HR, WPP, C1) bf16 phase-decomposed zero-padded input
               (HR = all phase rows when resident, else just this row strip).
    w_ref:     (k*k*cstride, TN) bf16 conv weight with BN scale folded in.
    shift_ref: (1, TN) f32 folded BN shift.
    o_ref:     (TH*OW, TN) bf16 output tile (flattened spatial positions).
    patch_ref: (TH*OW, k*k*cstride) bf16 VMEM scratch (in-kernel im2col).
    """
    base = pl.program_id(2) * th if resident else 0

    if cstride != c1:
        # Lane-aligned per-tap channel padding: zero it so the padded K columns
        # (whose weight rows are zero) contribute exactly nothing.
        patch_ref[...] = jnp.zeros_like(patch_ref)

    # In-kernel im2col: k*k unit-stride shifted slabs -> one deep-K GEMM.
    for kh in range(k):
        qh, rh = divmod(kh * d, s)
        for kw in range(k):
            qw, rw = divmod(kw * d, s)
            p = rh * s + rw                       # stride phase of this tap
            t = kh * k + kw
            slab = x_ref[p, pl.ds(base + qh, th), pl.ds(qw, ow), :]
            patch_ref[:, t * cstride:t * cstride + c1] = slab.reshape(th * ow, c1)

    # Single MXU matmul with K = k*k*cstride instead of k*k shallow matmuls.
    y = jnp.dot(patch_ref[...], w_ref[...], preferred_element_type=jnp.float32)
    y = y + shift_ref[...]                        # BN shift (scale is in weights)
    if act:
        y = y * jax.nn.sigmoid(y)                 # SiLU
    o_ref[...] = y.astype(o_ref.dtype)


# --------------------------------------------------------------------------
# Public wrapper (NCHW in / NCHW out, matches the PyTorch module).
# --------------------------------------------------------------------------
def conv_bn_silu(x, weight, gamma, beta, running_mean, running_var,
                 *, k=1, s=1, p=None, g=1, d=1, eps=1e-5, act=True):
    """Conv2d(bias=False, groups=1) + BatchNorm2d(eval) + SiLU. x is NCHW f32."""
    if g != 1:
        raise NotImplementedError("groups > 1 not supported")  # TODO(synk)
    n, c1, h, w = x.shape
    c2 = weight.shape[0]
    pad = autopad(k, p, d)
    oh = (h + 2 * pad - d * (k - 1) - 1) // s + 1
    ow = (w + 2 * pad - d * (k - 1) - 1) // s + 1
    kk = k * k

    # ---- Fold BN (inference) into the conv weight + per-channel shift. -----
    scale = gamma / jnp.sqrt(running_var + eps)                       # (C2,)
    shift = (beta - running_mean * scale).astype(jnp.float32)         # (C2,)
    w_fold = weight.astype(jnp.float32) * scale[:, None, None, None]  # (C2,C1,k,k)

    # Lane-dense output channels; lane-aligned per-tap channel stride.
    c2p = _round_up(c2, 128)
    tn = 256 if c2p % 256 == 0 else 128
    nct = c2p // tn
    cstride = c1 if c1 % 128 == 0 else _round_up(c1, 128)
    kdim = kk * cstride

    w_r = jnp.transpose(w_fold, (2, 3, 1, 0))                         # (kh,kw,ci,co)
    w_r = jnp.pad(w_r, ((0, 0), (0, 0), (0, cstride - c1), (0, c2p - c2)))
    w_r = w_r.reshape(kdim, c2p).astype(jnp.bfloat16)
    shift_p = jnp.pad(shift, (0, c2p - c2)).reshape(1, c2p)

    # ---- Output-row tiling: M = th*ow GEMM rows, ~256, multiple of 16. -----
    gmul = 16 // math.gcd(ow, 16)
    th = max(1, 256 // ow)
    th = _round_up(th, gmul)
    th = min(th, _round_up(oh, gmul))
    n_tiles = _cdiv(oh, th)
    oh_pad = n_tiles * th
    m = th * ow

    # ---- Pad + phase-decompose the input (stride folded away in wrapper). --
    qmax = ((k - 1) * d) // s
    hp = _round_up(max(s * (oh_pad + qmax), pad + h), s)
    wp = _round_up(max(s * (ow + qmax), pad + w), s)
    hpp, wpp = hp // s, wp // s

    x_nhwc = jnp.transpose(x, (0, 2, 3, 1)).astype(jnp.bfloat16)      # cast before pad
    xp = jnp.pad(x_nhwc, ((0, 0), (pad, hp - h - pad), (pad, wp - w - pad), (0, 0)))
    ss = s * s
    xph = (xp.reshape(n, hpp, s, wpp, s, c1)
             .transpose(0, 2, 4, 1, 3, 5)
             .reshape(n, ss, hpp, wpp, c1))

    # ---- Resident whole image (fetched once per batch) vs. row strips. -----
    res_block_bytes = ss * hpp * _round_up(wpp, 16) * _round_up(c1, 128) * 2
    resident = 2 * res_block_bytes <= _RESIDENT_BUDGET                 # x2: dbl-buffered
    if resident:
        x_in = xph
        x_spec = pl.BlockSpec((None, ss, hpp, wpp, c1),
                              lambda b, j, i: (b, 0, 0, 0, 0))
    else:
        # Stream overlapping row strips (halo re-read cost ~ (k-1)*d/(s*th)).
        sh = th + qmax
        x_in = jnp.stack([xph[:, :, i * th:i * th + sh] for i in range(n_tiles)],
                         axis=1)                                       # (n,T,ss,sh,wpp,c1)
        x_spec = pl.BlockSpec((None, None, ss, sh, wpp, c1),
                              lambda b, j, i: (b, i, 0, 0, 0, 0))

    kernel = functools.partial(
        _conv_bn_silu_kernel, k=k, s=s, d=d, th=th, ow=ow, c1=c1,
        cstride=cstride, resident=resident, act=bool(act))

    cost = pl.CostEstimate(
        flops=int(2 * n * oh_pad * ow * kdim * c2p),
        transcendentals=int(n * oh_pad * ow * c2p),
        bytes_accessed=int(x_in.size * 2 + w_r.size * 2 * n * nct
                           + n * oh_pad * ow * c2p * 2))

    out2d = pl.pallas_call(
        kernel,
        out_shape=jax.ShapeDtypeStruct((n, oh_pad * ow, c2p), jnp.bfloat16),
        grid_spec=pltpu.PrefetchScalarGridSpec(
            num_scalar_prefetch=0,
            grid=(n, nct, n_tiles),
            in_specs=[
                x_spec,
                pl.BlockSpec((kdim, tn), lambda b, j, i: (0, j)),
                pl.BlockSpec((1, tn), lambda b, j, i: (0, j)),
            ],
            out_specs=pl.BlockSpec((None, m, tn), lambda b, j, i: (b, i, j)),
            scratch_shapes=[pltpu.VMEM((m, kdim), jnp.bfloat16)],
        ),
        compiler_params=pltpu.CompilerParams(
            dimension_semantics=("parallel", "parallel", "parallel"),
            vmem_limit_bytes=_VMEM_LIMIT),
        cost_estimate=cost,
    )(x_in, w_r, shift_p)

    out = out2d.reshape(n, oh_pad, ow, c2p)[:, :oh, :, :c2]
    return jnp.transpose(out, (0, 3, 1, 2)).astype(jnp.float32)       # back to NCHW


def _reference(x, weight, gamma, beta, running_mean, running_var,
               *, k=3, s=1, p=None, d=1, eps=1e-5):
    pad = autopad(k, p, d)
    y = jax.lax.conv_general_dilated(
        x, weight, window_strides=(s, s), padding=[(pad, pad), (pad, pad)],
        rhs_dilation=(d, d), dimension_numbers=("NCHW", "OIHW", "NCHW"))
    sc = gamma / jnp.sqrt(running_var + eps)
    sh = beta - running_mean * sc
    y = y * sc.reshape(1, -1, 1, 1) + sh.reshape(1, -1, 1, 1)
    return y * jax.nn.sigmoid(y)


if __name__ == "__main__":
    key = jax.random.PRNGKey(0)
    kx, kw_, kg, kb, km, kv = jax.random.split(key, 6)

    N, C1, H, W = 2, 4, 16, 16
    C2 = 8

    x = jax.random.normal(kx, (N, C1, H, W), dtype=jnp.float32)
    gamma = 1.0 + 0.1 * jax.random.normal(kg, (C2,), dtype=jnp.float32)
    beta = 0.1 * jax.random.normal(kb, (C2,), dtype=jnp.float32)
    running_mean = 0.1 * jax.random.normal(km, (C2,), dtype=jnp.float32)
    running_var = 1.0 + 0.1 * jax.random.uniform(kv, (C2,), dtype=jnp.float32)

    # (k, s): 3x3/s1 (resident fused path), 3x3/s2 (phase-decomposed strided
    # path), 1x1/s1 (pointwise).
    for K, stride in ((3, 1), (3, 2), (1, 1)):
        weight = jax.random.normal(kw_, (C2, C1, K, K), dtype=jnp.float32) * 0.1
        out = jax.block_until_ready(
            conv_bn_silu(x, weight, gamma, beta, running_mean, running_var,
                         k=K, s=stride, d=1))
        ref = _reference(x, weight, gamma, beta, running_mean, running_var,
                         k=K, s=stride, d=1)
        assert out.shape == ref.shape, (out.shape, ref.shape)
        err = float(jnp.max(jnp.abs(out - ref)))
        # bf16 GEMM operands + bf16 output -> relaxed tolerance vs f32 ref.
        assert err < 6e-2, f"mismatch vs conv reference (k={K}, s={stride}): {err}"

    print("KERNEL_OK")
</pallas_src>

<mosaic_0001>
module attributes {stable_mosaic.version = 11 : i64} {
  func.func @_conv_bn_silu_kernel(%arg0: i32, %arg1: i32, %arg2: i32, %arg3: memref<1x1x18x18x4xbf16, #tpu.memory_space<vmem>>, %arg4: memref<1152x128xbf16, #tpu.memory_space<vmem>>, %arg5: memref<1x128xf32, #tpu.memory_space<vmem>>, %arg6: memref<1x256x128xbf16, #tpu.memory_space<vmem>>, %arg7: memref<256x1152xbf16, #tpu.memory_space<vmem>>) attributes {dimension_semantics = [#tpu.dimension_semantics<parallel>, #tpu.dimension_semantics<parallel>, #tpu.dimension_semantics<parallel>], iteration_bounds = array<i64: 2, 1, 1>, scalar_prefetch = 0 : i64, scratch_operands = 1 : i64, tpu.core_type = #tpu.core_type<tc>, window_params = [{transform_indices = @transform_0, window_bounds = array<i64: 1, 1, 18, 18, 4>}, {transform_indices = @transform_1, window_bounds = array<i64: 1152, 128>}, {transform_indices = @transform_2, window_bounds = array<i64: 1, 128>}, {transform_indices = @transform_3, window_bounds = array<i64: 1, 256, 128>}]} {
    %c16_i32 = arith.constant 16 : i32
    %0 = arith.muli %arg2, %c16_i32 : i32
    %cst = arith.constant 0.000000e+00 : bf16
    %1 = vector.broadcast %cst : bf16 to vector<256x1152xbf16>
    %c0 = arith.constant 0 : index
    %c0_0 = arith.constant 0 : index
    %2 = vector.load %arg7[%c0, %c0_0] : memref<256x1152xbf16, #tpu.memory_space<vmem>>, vector<256x1152xbf16>
    tpu.vector_store %arg7[%c0, %c0_0], %1 {strides = array<i32>} : memref<256x1152xbf16, #tpu.memory_space<vmem>>, vector<256x1152xbf16>,
    %c0_i32 = arith.constant 0 : i32
    %3 = arith.addi %0, %c0_i32 : i32
    %c0_1 = arith.constant 0 : index
    %c0_2 = arith.constant 0 : index
    %4 = arith.index_cast %3 : i32 to index
    %c0_3 = arith.constant 0 : index
    %c0_4 = arith.constant 0 : index
    %5 = vector.load %arg3[%c0_1, %c0_2, %4, %c0_3, %c0_4] : memref<1x1x18x18x4xbf16, #tpu.memory_space<vmem>>, vector<1x1x16x16x4xbf16>
    %6 = vector.shape_cast %5 : vector<1x1x16x16x4xbf16> to vector<16x16x4xbf16>
    %7 = vector.shape_cast %6 : vector<16x16x4xbf16> to vector<256x4xbf16>
    %c0_5 = arith.constant 0 : index
    %c0_6 = arith.constant 0 : index
    %8 = vector.load %arg7[%c0_5, %c0_6] : memref<256x1152xbf16, #tpu.memory_space<vmem>>, vector<256x4xbf16>
    tpu.vector_store %arg7[%c0_5, %c0_6], %7 {strides = array<i32>} : memref<256x1152xbf16, #tpu.memory_space<vmem>>, vector<256x4xbf16>,
    %c0_i32_7 = arith.constant 0 : i32
    %9 = arith.addi %0, %c0_i32_7 : i32
    %c0_8 = arith.constant 0 : index
    %c0_9 = arith.constant 0 : index
    %10 = arith.index_cast %9 : i32 to index
    %c1 = arith.constant 1 : index
    %c0_10 = arith.constant 0 : index
    %11 = vector.load %arg3[%c0_8, %c0_9, %10, %c1, %c0_10] : memref<1x1x18x18x4xbf16, #tpu.memory_space<vmem>>, vector<1x1x16x16x4xbf16>
    %12 = vector.shape_cast %11 : vector<1x1x16x16x4xbf16> to vector<16x16x4xbf16>
    %13 = vector.shape_cast %12 : vector<16x16x4xbf16> to vector<256x4xbf16>
    %c0_11 = arith.constant 0 : index
    %c128 = arith.constant 128 : index
    %14 = vector.load %arg7[%c0_11, %c128] : memref<256x1152xbf16, #tpu.memory_space<vmem>>, vector<256x4xbf16>
    tpu.vector_store %arg7[%c0_11, %c128], %13 {strides = array<i32>} : memref<256x1152xbf16, #tpu.memory_space<vmem>>, vector<256x4xbf16>,
    %c0_i32_12 = arith.constant 0 : i32
    %15 = arith.addi %0, %c0_i32_12 : i32
    %c0_13 = arith.constant 0 : index
    %c0_14 = arith.constant 0 : index
    %16 = arith.index_cast %15 : i32 to index
    %c2 = arith.constant 2 : index
    %c0_15 = arith.constant 0 : index
    %17 = vector.load %arg3[%c0_13, %c0_14, %16, %c2, %c0_15] : memref<1x1x18x18x4xbf16, #tpu.memory_space<vmem>>, vector<1x1x16x16x4xbf16>
    %18 = vector.shape_cast %17 : vector<1x1x16x16x4xbf16> to vector<16x16x4xbf16>
    %19 = vector.shape_cast %18 : vector<16x16x4xbf16> to vector<256x4xbf16>
    %c0_16 = arith.constant 0 : index
    %c256 = arith.constant 256 : index
    %20 = vector.load %arg7[%c0_16, %c256] : memref<256x1152xbf16, #tpu.memory_space<vmem>>, vector<256x4xbf16>
    tpu.vector_store %arg7[%c0_16, %c256], %19 {strides = array<i32>} : memref<256x1152xbf16, #tpu.memory_space<vmem>>, vector<256x4xbf16>,
    %c1_i32 = arith.constant 1 : i32
    %21 = arith.addi %0, %c1_i32 : i32
    %c0_17 = arith.constant 0 : index
    %c0_18 = arith.constant 0 : index
    %22 = arith.index_cast %21 : i32 to index
    %c0_19 = arith.constant 0 : index
    %c0_20 = arith.constant 0 : index
    %23 = vector.load %arg3[%c0_17, %c0_18, %22, %c0_19, %c0_20] : memref<1x1x18x18x4xbf16, #tpu.memory_space<vmem>>, vector<1x1x16x16x4xbf16>
    %24 = vector.shape_cast %23 : vector<1x1x16x16x4xbf16> to vector<16x16x4xbf16>
    %25 = vector.shape_cast %24 : vector<16x16x4xbf16> to vector<256x4xbf16>
    %c0_21 = arith.constant 0 : index
    %c384 = arith.constant 384 : index
    %26 = vector.load %arg7[%c0_21, %c384] : memref<256x1152xbf16, #tpu.memory_space<vmem>>, vector<256x4xbf16>
    tpu.vector_store %arg7[%c0_21, %c384], %25 {strides = array<i32>} : memref<256x1152xbf16, #tpu.memory_space<vmem>>, vector<256x4xbf16>,
    %c1_i32_22 = arith.constant 1 : i32
    %27 = arith.addi %0, %c1_i32_22 : i32
    %c0_23 = arith.constant 0 : index
    %c0_24 = arith.constant 0 : index
    %28 = arith.index_cast %27 : i32 to index
    %c1_25 = arith.constant 1 : index
    %c0_26 = arith.constant 0 : index
    %29 = vector.load %arg3[%c0_23, %c0_24, %28, %c1_25, %c0_26] : memref<1x1x18x18x4xbf16, #tpu.memory_space<vmem>>, vector<1x1x16x16x4xbf16>
    %30 = vector.shape_cast %29 : vector<1x1x16x16x4xbf16> to vector<16x16x4xbf16>
    %31 = vector.shape_cast %30 : vector<16x16x4xbf16> to vector<256x4xbf16>
    %c0_27 = arith.constant 0 : index
    %c512 = arith.constant 512 : index
    %32 = vector.load %arg7[%c0_27, %c512] : memref<256x1152xbf16, #tpu.memory_space<vmem>>, vector<256x4xbf16>
    tpu.vector_store %arg7[%c0_27, %c512], %31 {strides = array<i32>} : memref<256x1152xbf16, #tpu.memory_space<vmem>>, vector<256x4xbf16>,
    %c1_i32_28 = arith.constant 1 : i32
    %33 = arith.addi %0, %c1_i32_28 : i32
    %c0_29 = arith.constant 0 : index
    %c0_30 = arith.constant 0 : index
    %34 = arith.index_cast %33 : i32 to index
    %c2_31 = arith.constant 2 : index
    %c0_32 = arith.constant 0 : index
    %35 = vector.load %arg3[%c0_29, %c0_30, %34, %c2_31, %c0_32] : memref<1x1x18x18x4xbf16, #tpu.memory_space<vmem>>, vector<1x1x16x16x4xbf16>
    %36 = vector.shape_cast %35 : vector<1x1x16x16x4xbf16> to vector<16x16x4xbf16>
    %37 = vector.shape_cast %36 : vector<16x16x4xbf16> to vector<256x4xbf16>
    %c0_33 = arith.constant 0 : index
    %c640 = arith.constant 640 : index
    %38 = vector.load %arg7[%c0_33, %c640] : memref<256x1152xbf16, #tpu.memory_space<vmem>>, vector<256x4xbf16>
    tpu.vector_store %arg7[%c0_33, %c640], %37 {strides = array<i32>} : memref<256x1152xbf16, #tpu.memory_space<vmem>>, vector<256x4xbf16>,
    %c2_i32 = arith.constant 2 : i32
    %39 = arith.addi %0, %c2_i32 : i32
    %c0_34 = arith.constant 0 : index
    %c0_35 = arith.constant 0 : index
    %40 = arith.index_cast %39 : i32 to index
    %c0_36 = arith.constant 0 : index
    %c0_37 = arith.constant 0 : index
    %41 = vector.load %arg3[%c0_34, %c0_35, %40, %c0_36, %c0_37] : memref<1x1x18x18x4xbf16, #tpu.memory_space<vmem>>, vector<1x1x16x16x4xbf16>
    %42 = vector.shape_cast %41 : vector<1x1x16x16x4xbf16> to vector<16x16x4xbf16>
    %43 = vector.shape_cast %42 : vector<16x16x4xbf16> to vector<256x4xbf16>
    %c0_38 = arith.constant 0 : index
    %c768 = arith.constant 768 : index
    %44 = vector.load %arg7[%c0_38, %c768] : memref<256x1152xbf16, #tpu.memory_space<vmem>>, vector<256x4xbf16>
    tpu.vector_store %arg7[%c0_38, %c768], %43 {strides = array<i32>} : memref<256x1152xbf16, #tpu.memory_space<vmem>>, vector<256x4xbf16>,
    %c2_i32_39 = arith.constant 2 : i32
    %45 = arith.addi %0, %c2_i32_39 : i32
    %c0_40 = arith.constant 0 : index
    %c0_41 = arith.constant 0 : index
    %46 = arith.index_cast %45 : i32 to index
    %c1_42 = arith.constant 1 : index
    %c0_43 = arith.constant 0 : index
    %47 = vector.load %arg3[%c0_40, %c0_41, %46, %c1_42, %c0_43] : memref<1x1x18x18x4xbf16, #tpu.memory_space<vmem>>, vector<1x1x16x16x4xbf16>
    %48 = vector.shape_cast %47 : vector<1x1x16x16x4xbf16> to vector<16x16x4xbf16>
    %49 = vector.shape_cast %48 : vector<16x16x4xbf16> to vector<256x4xbf16>
    %c0_44 = arith.constant 0 : index
    %c896 = arith.constant 896 : index
    %50 = vector.load %arg7[%c0_44, %c896] : memref<256x1152xbf16, #tpu.memory_space<vmem>>, vector<256x4xbf16>
    tpu.vector_store %arg7[%c0_44, %c896], %49 {strides = array<i32>} : memref<256x1152xbf16, #tpu.memory_space<vmem>>, vector<256x4xbf16>,
    %c2_i32_45 = arith.constant 2 : i32
    %51 = arith.addi %0, %c2_i32_45 : i32
    %c0_46 = arith.constant 0 : index
    %c0_47 = arith.constant 0 : index
    %52 = arith.index_cast %51 : i32 to index
    %c2_48 = arith.constant 2 : index
    %c0_49 = arith.constant 0 : index
    %53 = vector.load %arg3[%c0_46, %c0_47, %52, %c2_48, %c0_49] : memref<1x1x18x18x4xbf16, #tpu.memory_space<vmem>>, vector<1x1x16x16x4xbf16>
    %54 = vector.shape_cast %53 : vector<1x1x16x16x4xbf16> to vector<16x16x4xbf16>
    %55 = vector.shape_cast %54 : vector<16x16x4xbf16> to vector<256x4xbf16>
    %c0_50 = arith.constant 0 : index
    %c1024 = arith.constant 1024 : index
    %56 = vector.load %arg7[%c0_50, %c1024] : memref<256x1152xbf16, #tpu.memory_space<vmem>>, vector<256x4xbf16>
    tpu.vector_store %arg7[%c0_50, %c1024], %55 {strides = array<i32>} : memref<256x1152xbf16, #tpu.memory_space<vmem>>, vector<256x4xbf16>,
    %c0_51 = arith.constant 0 : index
    %c0_52 = arith.constant 0 : index
    %57 = vector.load %arg7[%c0_51, %c0_52] : memref<256x1152xbf16, #tpu.memory_space<vmem>>, vector<256x1152xbf16>
    %c0_53 = arith.constant 0 : index
    %c0_54 = arith.constant 0 : index
    %58 = vector.load %arg4[%c0_53, %c0_54] : memref<1152x128xbf16, #tpu.memory_space<vmem>>, vector<1152x128xbf16>
    %cst_55 = arith.constant dense<0.000000e+00> : vector<256x128xf32>
    %59 = tpu.matmul %57, %58, %cst_55 {dimension_numbers = #tpu.dot_dimension_numbers<[1], [0], [0], [1], [0, 0, 1, 1], [], []>} : vector<256x1152xbf16>, vector<1152x128xbf16>, vector<256x128xf32> -> vector<256x128xf32>
    %c0_56 = arith.constant 0 : index
    %c0_57 = arith.constant 0 : index
    %60 = vector.load %arg5[%c0_56, %c0_57] : memref<1x128xf32, #tpu.memory_space<vmem>>, vector<1x128xf32>
    %61 = vector.broadcast %60 : vector<1x128xf32> to vector<256x128xf32>
    %62 = arith.addf %59, %61 : vector<256x128xf32>
    %63 = arith.negf %62 : vector<256x128xf32>
    %64 = math.exp %63 : vector<256x128xf32>
    %cst_58 = arith.constant 1.000000e+00 : f32
    %65 = vector.broadcast %cst_58 : f32 to vector<256x128xf32>
    %66 = arith.addf %65, %64 : vector<256x128xf32>
    %67 = arith.divf %65, %66 : vector<256x128xf32>
    %68 = arith.mulf %62, %67 : vector<256x128xf32>
    %69 = arith.truncf %68 : vector<256x128xf32> to vector<256x128xbf16>
    %c0_59 = arith.constant 0 : index
    %c0_60 = arith.constant 0 : index
    %c0_61 = arith.constant 0 : index
    %70 = vector.load %arg6[%c0_59, %c0_60, %c0_61] : memref<1x256x128xbf16, #tpu.memory_space<vmem>>, vector<1x256x128xbf16>
    %71 = vector.shape_cast %70 : vector<1x256x128xbf16> to vector<256x128xbf16>
    %72 = vector.shape_cast %69 : vector<256x128xbf16> to vector<1x256x128xbf16>
    tpu.vector_store %arg6[%c0_59, %c0_60, %c0_61], %72 {strides = array<i32>} : memref<1x256x128xbf16, #tpu.memory_space<vmem>>, vector<1x256x128xbf16>,
    return
  }
  func.func @transform_0(%arg0: i32, %arg1: i32, %arg2: i32) -> (i32, i32, i32, i32, i32) {
    %c0_i32 = arith.constant 0 : i32
    %c0_i32_0 = arith.constant 0 : i32
    %c0_i32_1 = arith.constant 0 : i32
    %c0_i32_2 = arith.constant 0 : i32
    %c0_i32_3 = arith.constant 0 : i32
    return %arg0, %c0_i32, %c0_i32_0, %c0_i32_1, %c0_i32_2 : i32, i32, i32, i32, i32
  }
  func.func @transform_1(%arg0: i32, %arg1: i32, %arg2: i32) -> (i32, i32) {
    %c0_i32 = arith.constant 0 : i32
    %c0_i32_0 = arith.constant 0 : i32
    return %c0_i32, %arg1 : i32, i32
  }
  func.func @transform_2(%arg0: i32, %arg1: i32, %arg2: i32) -> (i32, i32) {
    %c0_i32 = arith.constant 0 : i32
    %c0_i32_0 = arith.constant 0 : i32
    return %c0_i32, %arg1 : i32, i32
  }
  func.func @transform_3(%arg0: i32, %arg1: i32, %arg2: i32) -> (i32, i32, i32) {
    %c0_i32 = arith.constant 0 : i32
    return %arg0, %arg2, %arg1 : i32, i32, i32
  }
}

</mosaic_0001>

<bundles_post_ra>
// kernel: tpu_custom_call.1
= control target key start
LH: loop header
LB: loop body
LE: loop exit
PB: predicated region body
PF: predicated region fallthrough
CT: control target
= control target key end

     0   :  { %8 = vsyncpa [#allocation4], 0  ;;  %s9831_s0 = inlined_call_operand.vmem [shape: bf16[2,1,18,18,4], index: 0, kind: input, shape index: {}]   ;;  %s9832_s1 = inlined_call_operand.hbm [shape: bf16[1152,128], index: 1, kind: input, shape index: {}]   ;;  %s9833_s2 = inlined_call_operand.vmem [shape: f32[1,128], index: 2, kind: input, shape index: {}]   ;;  %s9834_s3 = inlined_call_operand.hbm [shape: bf16[2,256,128], index: 3, kind: output, shape index: {}]  }
   0x1   :  { %9 = vsyncpa [#allocation5], 0 }
   0x2   :  { %11 = vsyncpa [#allocation5 + $0x1], 0  ;;  %s7556_s12 = smov 0   ;;  %s7558_s13 = smov 0  }
   0x3   :  { %s7560_s14 = smov 0   ;;  %s7562_s15 = smov 0  }
   0x4   :  { %s7564_s16 = smov 0   ;;  %s7566_s17 = smov 0  }
   0x5 LB: > { %s5703_s18 = sadd.s32 4294967295, %s7527_s17   ;;  %s5704_s19 = sadd.s32 4294967294, %s7527_s17   ;;  %s7527_s17 = sphi %s7566_s17, %s17_s17   ;;  %s7523_s16 = sphi %s7564_s16, %s9903_s16   ;;  %s7519_s15 = sphi %s7562_s15, %s9902_s15   ;;  %s7515_s14 = sphi %s7560_s14, %s9901_s14   ;;  %s7511_s13 = sphi %s7558_s13, %s9900_s13   ;;  %s7507_s12 = sphi %s7556_s12, %s9899_s12  }
   0x6   : > { %s36_s20 = sadd.s32 1, %s7523_s16  ;;  %s125_s21 = sadd.s32 1, %s7515_s14 }
   0x7   : > { %p38_p0 = scmp.ge.s32.totalorder %s36_s20, 2  ;;  %p135_p1 = scmp.ne.s32.totalorder %s7515_s14, %s7511_s13 }
   0x8   : > { %p136_p2 = scmp.eq.s32.totalorder %s5703_s18, 1  ;;  %p141_p3 = scmp.ne.s32.totalorder %s7511_s13, %s7507_s12 }
   0x9   : > { %s9905_s20 = smov (%p38_p0, %s36_s20), 0  ;;  %p142_p5 = scmp.eq.s32.totalorder %s5704_s19, 1 }
   0xa   : > { %p7596_p4 = por %p136_p2, %p135_p1  ;;  %s118_s23 = ssub.s32 %s7523_s16, %s9905_s20 }
   0xb   : > { %p5705_p6 = scmp.ge.s32.totalorder %s7527_s17, 1  ;;  %p123_p7 = scmp.eq.s32.totalorder %s118_s23, 0 }
   0xc   : > { %p7603_p8 = por %p142_p5, %p141_p3  ;;  %p149_p9 = scmp.lt.s32.totalorder %s7527_s17, 3 }
   0xd   : > { %s7609_s25 = scalar_select %p123_p7, %s7515_s14, %s125_s21  }
   0xe   : > { %p7611_p10 = pnand %p5705_p6, %p149_p9  ;;  %p7615_p11 = scmp.eq.s32.totalorder %s5703_s18, 0 }
   0xf   : > { %s7529_s28 = smov [#allocation3]  }
  0x10   : > { %p6974_p12 = pneg %p7611_p10  ;;  %s163_s29 = sshll.u32 %s7529_s28, 4  ;;  %s164_s29 = int_to_ptr.vmem [resolvable:$true] %s163_s29 }
  0x11   : > { %s7432_s30 = scalar_lea.vmem %s164_s29, 9216  ;;  %p7440_p5 = scmp.lt.s32.totalorder %s164_s29, %s164_s29 }
  0x12   : > { %p6975_p13 = pnand %p7615_p11, %p6974_p12  ;;  %p7433_p1 = scmp.ne.s32.totalorder %s164_s29, %s7432_s30 }
  0x13   : > { %p7441_p6 = scmp.lt.s32.totalorder %s7432_s30, %s7432_s30 }
  0x14   : > { %p7423_p0 = pneg %p6975_p13 }
  0x15   : > { %p7442_p7 = por %p7441_p6, %p7440_p5 }
  0x16   : > { %p7435_p2 = pnand %p7433_p1, %p7423_p0 }
  0x18   : > { %p7436_p3 = pneg %p7435_p2 }
  0x1a   : > { %p7443_p9 = pnand %p7442_p7, %p7436_p3 }
  0x1c   : > { %7446 = shalt.err (!%p7443_p9)
}
  0x1d   : > { %s7530_s4 = smov 64   ;;  %s7531_s5 = smov 4  }
  0x1e   : > { %6977 = dma.hbm_to_vmem [thread:$0]  (!%p6975_p13), %s9832_s1, 9216, %s164_s29, [#allocation4], %s7530_s4, %s7530_s4, %s7531_s5  }
  0x1f   : > { %193 = sbr.rel (%p7611_p10) target bundleno = 793 (0x319), region = 32 }
  0x24   : > { %7498 = dma.done.wait (%p7615_p11), [#allocation4], 9216  }
  0x25   : > { %7500 = vsyncadd (%p7615_p11), [#allocation4], 4294958080  ;;  %v7532_v0 = vmov 0   ;;  %v7039_v1 = vld [vmem:[#allocation3 + $0x78] sm:$0xff]   ;;  %p220_p10 = scmp.lt.s32.totalorder %s7519_s15, 1  ;;  %v7041_v3 = vld [vmem:[#allocation3 + $0x70] sm:$0xff]  }
  0x26   : > { %231 = vst [vmem:[#allocation2] sm:$0xff] %v7532_v0  ;;  %236 = vst [vmem:[#allocation2 + $0x24] sm:$0xff] %v7532_v0  ;;  %v7040_v2 = vld [vmem:[#allocation3 + $0x38] sm:$0xff]   ;;  %6431 = vmatprep.subr.bf16.mxu0 %v7039_v1  ;;  %6951 = vmatprep.subr.bf16.mxu1 %v7039_v1  ;;  %v7042_v4 = vld [vmem:[#allocation3 + $0x30] sm:$0xff]   ;;  %vm507_vm0 = vsmask.f32 3328 }
  0x27   : > { %232 = vst [vmem:[#allocation2 + $0x8] sm:$0xff] %v7532_v0  ;;  %233 = vst [vmem:[#allocation2 + $0x10] sm:$0xff] %v7532_v0  ;;  %6432 = vmatpush3.bf16.msra.mxu0 %v7040_v2  ;;  %6959 = vmatpush3.bf16.msra.mxu1 %v7040_v2  ;;  %v7043_v5 = vld [vmem:[#allocation3 + $0x68] sm:$0xff]   ;;  %s221_s8 = scalar_select %p220_p10, %s7519_s15, 1  ;;  %v7045_v7 = vld [vmem:[#allocation3 + $0x60] sm:$0xff]   ;;  %vm426_vm2 = vcmask 27648  }
  0x28   : > { %234 = vst [vmem:[#allocation2 + $0x18] sm:$0xff] %v7532_v0  ;;  %235 = vst [vmem:[#allocation2 + $0x20] sm:$0xf] %v7532_v0  ;;  %6433 = vmatprep.subr.bf16.mxu0 %v7041_v3  ;;  %6952 = vmatprep.subr.bf16.mxu1 %v7041_v3  ;;  %v7044_v6 = vld [vmem:[#allocation3 + $0x28] sm:$0xff]   ;;  %v7046_v8 = vld [vmem:[#allocation3 + $0x20] sm:$0xff]   ;;  %vm1054_vm4 = vcmask 1042432  }
  0x29   : > { %237 = vst [vmem:[#allocation2 + $0x2c] sm:$0xff] %v7532_v0  ;;  %238 = vst [vmem:[#allocation2 + $0x34] sm:$0xff] %v7532_v0  ;;  %s6967_s9 = smul.u32 216, %s221_s8  ;;  %v7047_v9 = vld [vmem:[#allocation3 + $0x58] sm:$0xff]   ;;  %vm508_vm1 = vsmask.f32 7440 }
  0x2a   : > { %239 = vst [vmem:[#allocation2 + $0x3c] sm:$0xff] %v7532_v0  ;;  %240 = vst [vmem:[#allocation2 + $0x44] sm:$0xf] %v7532_v0  ;;  %v7048_v10 = vld [vmem:[#allocation3 + $0x18] sm:$0xff]   ;;  %v7049_v11 = vld [vmem:[#allocation3 + $0x50] sm:$0xff]   ;;  %vm1055_vm5 = vcmask 1046532  }
  0x2b   : > { %241 = vst [vmem:[#allocation2 + $0x48] sm:$0xff] %v7532_v0  ;;  %242 = vst [vmem:[#allocation2 + $0x50] sm:$0xff] %v7532_v0  ;;  %6434 = vmatpush3.bf16.msra.mxu0 %v7042_v4  ;;  %6960 = vmatpush3.bf16.msra.mxu1 %v7042_v4  ;;  %s7797_s18 = scalar_lea.vmem %s9831_s0, %s6967_s9  ;;  %v7050_v15 = vld [vmem:[#allocation3 + $0x10] sm:$0xff]   ;;  %v7051_v20 = vld [vmem:[#allocation3 + $0x48] sm:$0xff]   ;;  %s217_s27 = sand.u32 1, %s7511_s13  }
  0x2c   : > { %243 = vst [vmem:[#allocation2 + $0x58] sm:$0xff] %v7532_v0  ;;  %244 = vst [vmem:[#allocation2 + $0x60] sm:$0xff] %v7532_v0  ;;  %6435 = vmatprep.subr.bf16.mxu0 %v7043_v5  ;;  %6953 = vmatprep.subr.bf16.mxu1 %v7043_v5  ;;  %v394_v12 = vld [vmem:[%s7797_s18] sm:$0xf]  ;;  %v395_v13 = vld [vmem:[%s7797_s18 + $0x4] sm:$0xf] }
  0x2d   : > { %245 = vst [vmem:[#allocation2 + $0x68] sm:$0xf] %v7532_v0  ;;  %246 = vst [vmem:[#allocation2 + $0x6c] sm:$0xff] %v7532_v0  ;;  %v459_v14 = vld [vmem:[%s7797_s18] sm:$0xf]  ;;  %v7052_v34 = vld [vmem:[#allocation3 + $0x8] sm:$0xff]  }
  0x2e   : > { %247 = vst [vmem:[#allocation2 + $0x74] sm:$0xff] %v7532_v0  ;;  %248 = vst [vmem:[#allocation2 + $0x7c] sm:$0xff] %v7532_v0  ;;  %v460_v16 = vld [vmem:[%s7797_s18 + $0x4] sm:$0xf]  ;;  %v461_v17 = vld [vmem:[%s7797_s18 + $0x8] sm:$0x1] }
  0x2f   : > { %249 = vst [vmem:[#allocation2 + $0x84] sm:$0xff] %v7532_v0  ;;  %250 = vst [vmem:[#allocation2 + $0x8c] sm:$0xf] %v7532_v0  ;;  %6436 = vmatpush3.bf16.msra.mxu0 %v7044_v6  ;;  %6961 = vmatpush3.bf16.msra.mxu1 %v7044_v6  ;;  %v511_v18 = vshrl.u32 %v459_v14, 16  ;;  %v514_v19 = vshll.u32 %v459_v14, 16  ;;  %v520_v21 = vshll.u32 %v460_v16, 16 }
  0x30   : > { %251 = vst [vmem:[#allocation2 + $0x90] sm:$0xff] %v7532_v0  ;;  %252 = vst [vmem:[#allocation2 + $0x98] sm:$0xff] %v7532_v0  ;;  %6437 = vmatprep.subr.bf16.mxu0 %v7045_v7  ;;  %6954 = vmatprep.subr.bf16.mxu1 %v7045_v7  ;;  %v524_v22 = vshrl.u32 %v460_v16, 16  ;;  %v530_v23 = vshll.u32 %v461_v17, 16  ;;  %v418_v24 = vld [vmem:[%s7797_s18 + $0x90] sm:$0xf] }
  0x31   : > { %253 = vst [vmem:[#allocation2 + $0xa0] sm:$0xff] %v7532_v0  ;;  %254 = vst [vmem:[#allocation2 + $0xa8] sm:$0xff] %v7532_v0  ;;  %v513_v25 = vrot.slane %v511_v18, 4  ;;  %v516_v26 = vrot.slane %v514_v19, 5  ;;  %v419_v27 = vld [vmem:[%s7797_s18 + $0x94] sm:$0xf] }
  0x32   : > { %255 = vst [vmem:[#allocation2 + $0xb0] sm:$0xf] %v7532_v0  ;;  %256 = vst [vmem:[#allocation2 + $0xb4] sm:$0xff] %v7532_v0  ;;  %v495_v28 = vld [vmem:[%s7797_s18 + $0x90] sm:$0xf]  ;;  %v522_v29 = vrot.slane %v520_v21, 5 }
  0x33   : > { %257 = vst [vmem:[#allocation2 + $0xbc] sm:$0xff] %v7532_v0  ;;  %258 = vst [vmem:[#allocation2 + $0xc4] sm:$0xff] %v7532_v0  ;;  %6438 = vmatpush3.bf16.msra.mxu0 %v7046_v8  ;;  %6962 = vmatpush3.bf16.msra.mxu1 %v7046_v8  ;;  %v526_v30 = vrot.slane %v524_v22, 4  ;;  %v532_v31 = vrot.slane %v530_v23, 5  ;;  %v496_v32 = vld [vmem:[%s7797_s18 + $0x94] sm:$0xf]  ;;  %v517_v35 = vor.u32 %v516_v26, %v513_v25 }
  0x34   : > { %259 = vst [vmem:[#allocation2 + $0xcc] sm:$0xff] %v7532_v0  ;;  %260 = vst [vmem:[#allocation2 + $0xd4] sm:$0xf] %v7532_v0  ;;  %6439 = vmatprep.subr.bf16.mxu0 %v7047_v9  ;;  %6955 = vmatprep.subr.bf16.mxu1 %v7047_v9  ;;  %v799_v33 = vshrl.u32 %v495_v28, 16  ;;  %v497_v36 = vld [vmem:[%s7797_s18 + $0x98] sm:$0x1] }
  0x35   : > { %261 = vst [vmem:[#allocation2 + $0xd8] sm:$0xff] %v7532_v0  ;;  %262 = vst [vmem:[#allocation2 + $0xe0] sm:$0xff] %v7532_v0  ;;  %v802_v37 = vshll.u32 %v495_v28, 16  ;;  %v808_v38 = vshll.u32 %v496_v32, 16  ;;  %v812_v39 = vshrl.u32 %v496_v32, 16  ;;  %v527_v41 = vor.u32 %v526_v30, %v522_v29  ;;  %v7053_v48 = vld [vmem:[#allocation3 + $0x40] sm:$0xff]  }
  0x36   : > { %263 = vst [vmem:[#allocation2 + $0xe8] sm:$0xff] %v7532_v0  ;;  %264 = vst [vmem:[#allocation2 + $0xf0] sm:$0xff] %v7532_v0  ;;  %v801_v42 = vrot.slane %v799_v33, 4  ;;  %v818_v43 = vshll.u32 %v497_v36, 16  ;;  %v518_v44 = vrot.slane %v517_v35, 4  ;;  %v7054_v54 = vld [vmem:[#allocation3] sm:$0xff]  }
  0x37   : > { %265 = vst [vmem:[#allocation2 + $0xf8] sm:$0xf] %v7532_v0  ;;  %266 = vst [vmem:[#allocation2 + $0xfc] sm:$0xff] %v7532_v0  ;;  %6440 = vmatpush3.bf16.msra.mxu0 %v7048_v10  ;;  %6963 = vmatpush3.bf16.msra.mxu1 %v7048_v10  ;;  %v804_v45 = vrot.slane %v802_v37, 5  ;;  %v810_v46 = vrot.slane %v808_v38, 5  ;;  %v814_v47 = vrot.slane %v812_v39, 4 }
  0x38   : > { %267 = vst [vmem:[#allocation2 + $0x104] sm:$0xff] %v7532_v0  ;;  %268 = vst [vmem:[#allocation2 + $0x10c] sm:$0xff] %v7532_v0  ;;  %6441 = vmatprep.subr.bf16.mxu0 %v7049_v11  ;;  %6956 = vmatprep.subr.bf16.mxu1 %v7049_v11  ;;  %v528_v49 = vrot.slane %v527_v41, 4  ;;  %v820_v53 = vrot.slane %v818_v43, 5  ;;  %v7061_v58 = vld [vmem:[#allocation3 + $0xf8] sm:$0xff]   ;;  %v7063_v36 = vld [vmem:[#allocation3 + $0xf0] sm:$0xff]  }
  0x39   : > { %269 = vst [vmem:[#allocation2 + $0x114] sm:$0xff] %v7532_v0  ;;  %270 = vst [vmem:[#allocation2 + $0x11c] sm:$0xf] %v7532_v0  ;;  %v805_v51 = vor.u32 %v804_v45, %v801_v42  ;;  %v815_v52 = vor.u32 %v814_v47, %v810_v46  ;;  %v7064_v59 = vld [vmem:[#allocation3 + $0x178] sm:$0xff]   ;;  %v396_v60 = vld [vmem:[%s7797_s18 + $0xc] sm:$0xf] }
  0x3a   : > { %271 = vst [vmem:[#allocation2 + $0x120] sm:$0xff] %v7532_v0  ;;  %272 = vst [vmem:[#allocation2 + $0x128] sm:$0xff] %v7532_v0  ;;  %v397_v63 = vld [vmem:[%s7797_s18 + $0x10] sm:$0xf]  ;;  %v464_v2 = vld [vmem:[%s7797_s18 + $0x14] sm:$0x1] }
  0x3b   : > { %273 = vst [vmem:[#allocation2 + $0x130] sm:$0xff] %v7532_v0  ;;  %274 = vst [vmem:[#allocation2 + $0x138] sm:$0xff] %v7532_v0  ;;  %6442 = vmatpush3.bf16.msra.mxu0 %v7050_v15  ;;  %6964 = vmatpush3.bf16.msra.mxu1 %v7050_v15  ;;  %v806_v56 = vrot.slane %v805_v51, 4  ;;  %v816_v57 = vrot.slane %v815_v52, 4  ;;  %v463_v1 = vld [vmem:[%s7797_s18 + $0x10] sm:$0xf] }
  0x3c   : > { %275 = vst [vmem:[#allocation2 + $0x140] sm:$0xf] %v7532_v0  ;;  %276 = vst [vmem:[#allocation2 + $0x144] sm:$0xff] %v7532_v0  ;;  %6443 = vmatprep.subr.bf16.mxu0 %v7051_v20  ;;  %6957 = vmatprep.subr.bf16.mxu1 %v7051_v20  ;;  %v544_v5 = vshll.u32 %v463_v1, 16  ;;  %v548_v6 = vshrl.u32 %v463_v1, 16  ;;  %v554_v7 = vshll.u32 %v464_v2, 16 }
  0x3d   : > { %277 = vst [vmem:[#allocation2 + $0x14c] sm:$0xff] %v7532_v0  ;;  %278 = vst [vmem:[#allocation2 + $0x154] sm:$0xff] %v7532_v0  ;;  %v420_v8 = vld [vmem:[%s7797_s18 + $0x9c] sm:$0xf]  ;;  %v421_v9 = vld [vmem:[%s7797_s18 + $0xa0] sm:$0xf] }
  0x3e   : > { %279 = vst [vmem:[#allocation2 + $0x15c] sm:$0xff] %v7532_v0  ;;  %280 = vst [vmem:[#allocation2 + $0x164] sm:$0xf] %v7532_v0  ;;  %v7066_v10 = vld [vmem:[#allocation3 + $0x138] sm:$0xff]   ;;  %v550_v14 = vrot.slane %v548_v6, 4  ;;  %v556_v16 = vrot.slane %v554_v7, 5 }
  0x3f   : > { %281 = vst [vmem:[#allocation2 + $0x168] sm:$0xff] %v7532_v0  ;;  %282 = vst [vmem:[#allocation2 + $0x170] sm:$0xff] %v7532_v0  ;;  %6444 = vmatpush3.bf16.msra.mxu0 %v7052_v34  ;;  %6965 = vmatpush3.bf16.msra.mxu1 %v7052_v34  ;;  %v498_v15 = vld [vmem:[%s7797_s18 + $0x9c] sm:$0xf]  ;;  %v499_v17 = vld [vmem:[%s7797_s18 + $0xa0] sm:$0xf] }
  0x40   : > { %283 = vst [vmem:[#allocation2 + $0x178] sm:$0xff] %v7532_v0  ;;  %284 = vst [vmem:[#allocation2 + $0x180] sm:$0xff] %v7532_v0  ;;  %6445 = vmatprep.subr.bf16.mxu0 %v7053_v48  ;;  %6958 = vmatprep.subr.bf16.mxu1 %v7053_v48  ;;  %v500_v18 = vld [vmem:[%s7797_s18 + $0xa4] sm:$0x1]  ;;  %v823_v23 = vshrl.u32 %v498_v15, 16  ;;  %v832_v25 = vshll.u32 %v499_v17, 16 }
  0x41   : > { %285 = vst [vmem:[#allocation2 + $0x188] sm:$0xf] %v7532_v0  ;;  %286 = vst [vmem:[#allocation2 + $0x18c] sm:$0xff] %v7532_v0  ;;  %v836_v26 = vshrl.u32 %v499_v17, 16  ;;  %v399_v47 = vld [vmem:[%s7797_s18 + $0x1c] sm:$0xf] }
  0x42   : > { %287 = vst [vmem:[#allocation2 + $0x194] sm:$0xff] %v7532_v0  ;;  %288 = vst [vmem:[#allocation2 + $0x19c] sm:$0xff] %v7532_v0  ;;  %v825_v30 = vrot.slane %v823_v23, 4  ;;  %v834_v34 = vrot.slane %v832_v25, 5  ;;  %v466_v51 = vld [vmem:[%s7797_s18 + $0x1c] sm:$0xf] }
  0x43   : > { %289 = vst [vmem:[#allocation2 + $0x1a4] sm:$0xff] %v7532_v0  ;;  %290 = vst [vmem:[#allocation2 + $0x1ac] sm:$0xf] %v7532_v0  ;;  %6446 = vmatpush3.bf16.msra.mxu0 %v7054_v54  ;;  %6966 = vmatpush3.bf16.msra.mxu1 %v7054_v54  ;;  %v838_v39 = vrot.slane %v836_v26, 4  ;;  %s9633_s28 = sshll.u32 %s217_s27, 7  ;;  %s6335_s30 = sshll.u32 %s7519_s15, 11 }
  0x44   : > { %291 = vst [vmem:[#allocation2 + $0x1b0] sm:$0xff] %v7532_v0  ;;  %292 = vst [vmem:[#allocation2 + $0x1b8] sm:$0xff] %v7532_v0  ;;  %6543 = vmatprep.subr.bf16.mxu1 %v7061_v58  ;;  %6655 = vmatprep.subr.bf16.mxu0 %v7064_v59  ;;  %v7073_v59 = vld [vmem:[#allocation3 + $0xa8] sm:$0xff]   ;;  %s9654_s29 = scalar_lea.vmem [#allocation6], %s9633_s28  ;;  %s9778_s7 = scalar_lea.hbm %s9834_s3, %s6335_s30 }
  0x45   : > { %293 = vst [vmem:[#allocation2 + $0x1c0] sm:$0xff] %v7532_v0  ;;  %294 = vst [vmem:[#allocation2 + $0x1c8] sm:$0xff] %v7532_v0  ;;  %v839_v42 = vor.u32 %v838_v39, %v834_v34  ;;  %v7085_v39 = vld [vmem:[#allocation3 + $0xd0] sm:$0xff]   ;;  %s5590_s4 = sshll.u32 %s9654_s29, 4  ;;  %s9786_s15 = scalar_lea.sflag [#allocation5], %s217_s27  ;;  %s9780_s4 = int_to_ptr.vmem [resolvable:$true] %s5590_s4 }
  0x46   : > { %295 = vst [vmem:[#allocation2 + $0x1d0] sm:$0xf] %v7532_v0  ;;  %296 = vst [vmem:[#allocation2 + $0x1d4] sm:$0xff] %v7532_v0  ;;  %s7447_s8 = scalar_lea.vmem %s9780_s4, 2048  ;;  %s7533_s9 = smov [#allocation6]  }
  0x47   : > { %297 = vst [vmem:[#allocation2 + $0x1dc] sm:$0xff] %v7532_v0  ;;  %298 = vst [vmem:[#allocation2 + $0x1e4] sm:$0xff] %v7532_v0  ;;  %v840_v48 = vrot.slane %v839_v42, 4  ;;  %p7448_p11 = scmp.ne.s32.totalorder %s9780_s4, %s7447_s8  ;;  %s7451_s10 = sshll.u32 %s7533_s9, 4  ;;  %s7452_s10 = int_to_ptr.vmem [resolvable:$false] %s7451_s10 }
  0x48   : > { %299 = vst [vmem:[#allocation2 + $0x1ec] sm:$0xff] %v7532_v0  ;;  %300 = vst [vmem:[#allocation2 + $0x1f4] sm:$0xf] %v7532_v0  ;;  %s7453_s11 = scalar_lea.vmem %s7452_s10, 4096  ;;  %p7454_p0 = scmp.lt.s32.totalorder %s9780_s4, %s7452_s10 }
  0x49   : > { %301 = vst [vmem:[#allocation2 + $0x1f8] sm:$0xff] %v7532_v0  ;;  %302 = vst [vmem:[#allocation2 + $0x200] sm:$0xff] %v7532_v0  ;;  %p7449_p12 = pnand %p7448_p11, %p7596_p4  ;;  %p7455_p1 = scmp.lt.s32.totalorder %s7453_s11, %s7447_s8 }
  0x4a   : > { %303 = vst [vmem:[#allocation2 + $0x208] sm:$0xff] %v7532_v0  ;;  %304 = vst [vmem:[#allocation2 + $0x210] sm:$0xff] %v7532_v0 }
  0x4b   : > { %305 = vst [vmem:[#allocation2 + $0x218] sm:$0xf] %v7532_v0  ;;  %306 = vst [vmem:[#allocation2 + $0x21c] sm:$0xff] %v7532_v0  ;;  %p7450_p13 = pneg %p7449_p12  ;;  %p7456_p2 = por %p7455_p1, %p7454_p0 }
  0x4c   : > { %307 = vst [vmem:[#allocation2 + $0x224] sm:$0xff] %v7532_v0  ;;  %308 = vst [vmem:[#allocation2 + $0x22c] sm:$0xff] %v7532_v0 }
  0x4d   : > { %309 = vst [vmem:[#allocation2 + $0x234] sm:$0xff] %v7532_v0  ;;  %310 = vst [vmem:[#allocation2 + $0x23c] sm:$0xf] %v7532_v0  ;;  %p7457_p3 = pnand %p7456_p2, %p7450_p13 }
  0x4e   : > { %311 = vst [vmem:[#allocation2 + $0x240] sm:$0xff] %v7532_v0  ;;  %312 = vst [vmem:[#allocation2 + $0x248] sm:$0xff] %v7532_v0 }
  0x4f   : > { %313 = vst [vmem:[#allocation2 + $0x250] sm:$0xff] %v7532_v0  ;;  %314 = vst [vmem:[#allocation2 + $0x258] sm:$0xff] %v7532_v0 }
  0x50   : > { %315 = vst [vmem:[#allocation2 + $0x260] sm:$0xf] %v7532_v0  ;;  %316 = vst [vmem:[#allocation2 + $0x264] sm:$0xff] %v7532_v0 }
  0x51   : > { %317 = vst [vmem:[#allocation2 + $0x26c] sm:$0xff] %v7532_v0  ;;  %318 = vst [vmem:[#allocation2 + $0x274] sm:$0xff] %v7532_v0 }
  0x52   : > { %319 = vst [vmem:[#allocation2 + $0x27c] sm:$0xff] %v7532_v0  ;;  %320 = vst [vmem:[#allocation2 + $0x284] sm:$0xf] %v7532_v0 }
  0x53   : > { %321 = vst [vmem:[#allocation2 + $0x288] sm:$0xff] %v7532_v0  ;;  %322 = vst [vmem:[#allocation2 + $0x290] sm:$0xff] %v7532_v0 }
  0x54   : > { %323 = vst [vmem:[#allocation2 + $0x298] sm:$0xff] %v7532_v0  ;;  %324 = vst [vmem:[#allocation2 + $0x2a0] sm:$0xff] %v7532_v0 }
  0x55   : > { %325 = vst [vmem:[#allocation2 + $0x2a8] sm:$0xf] %v7532_v0  ;;  %326 = vst [vmem:[#allocation2 + $0x2ac] sm:$0xff] %v7532_v0 }
  0x56   : > { %327 = vst [vmem:[#allocation2 + $0x2b4] sm:$0xff] %v7532_v0  ;;  %328 = vst [vmem:[#allocation2 + $0x2bc] sm:$0xff] %v7532_v0 }
  0x57   : > { %329 = vst [vmem:[#allocation2 + $0x2c4] sm:$0xff] %v7532_v0  ;;  %330 = vst [vmem:[#allocation2 + $0x2cc] sm:$0xf] %v7532_v0 }
  0x58   : > { %331 = vst [vmem:[#allocation2 + $0x2d0] sm:$0xff] %v7532_v0  ;;  %332 = vst [vmem:[#allocation2 + $0x2d8] sm:$0xff] %v7532_v0 }
  0x59   : > { %333 = vst [vmem:[#allocation2 + $0x2e0] sm:$0xff] %v7532_v0  ;;  %334 = vst [vmem:[#allocation2 + $0x2e8] sm:$0xff] %v7532_v0 }
  0x5a   : > { %335 = vst [vmem:[#allocation2 + $0x2f0] sm:$0xf] %v7532_v0  ;;  %336 = vst [vmem:[#allocation2 + $0x2f4] sm:$0xff] %v7532_v0 }
  0x5b   : > { %337 = vst [vmem:[#allocation2 + $0x2fc] sm:$0xff] %v7532_v0  ;;  %338 = vst [vmem:[#allocation2 + $0x304] sm:$0xff] %v7532_v0 }
  0x5c   : > { %339 = vst [vmem:[#allocation2 + $0x30c] sm:$0xff] %v7532_v0  ;;  %340 = vst [vmem:[#allocation2 + $0x314] sm:$0xf] %v7532_v0 }
  0x5d   : > { %341 = vst [vmem:[#allocation2 + $0x318] sm:$0xff] %v7532_v0  ;;  %342 = vst [vmem:[#allocation2 + $0x320] sm:$0xff] %v7532_v0 }
  0x5e   : > { %343 = vst [vmem:[#allocation2 + $0x328] sm:$0xff] %v7532_v0  ;;  %344 = vst [vmem:[#allocation2 + $0x330] sm:$0xff] %v7532_v0 }
  0x5f   : > { %345 = vst [vmem:[#allocation2 + $0x338] sm:$0xf] %v7532_v0  ;;  %346 = vst [vmem:[#allocation2 + $0x33c] sm:$0xff] %v7532_v0 }
  0x60   : > { %347 = vst [vmem:[#allocation2 + $0x344] sm:$0xff] %v7532_v0  ;;  %348 = vst [vmem:[#allocation2 + $0x34c] sm:$0xff] %v7532_v0 }
  0x61   : > { %349 = vst [vmem:[#allocation2 + $0x354] sm:$0xff] %v7532_v0  ;;  %350 = vst [vmem:[#allocation2 + $0x35c] sm:$0xf] %v7532_v0 }
  0x62   : > { %351 = vst [vmem:[#allocation2 + $0x360] sm:$0xff] %v7532_v0  ;;  %352 = vst [vmem:[#allocation2 + $0x368] sm:$0xff] %v7532_v0 }
  0x63   : > { %353 = vst [vmem:[#allocation2 + $0x370] sm:$0xff] %v7532_v0  ;;  %354 = vst [vmem:[#allocation2 + $0x378] sm:$0xff] %v7532_v0 }
  0x64   : > { %355 = vst [vmem:[#allocation2 + $0x380] sm:$0xf] %v7532_v0  ;;  %356 = vst [vmem:[#allocation2 + $0x384] sm:$0xff] %v7532_v0 }
  0x65   : > { %357 = vst [vmem:[#allocation2 + $0x38c] sm:$0xff] %v7532_v0  ;;  %358 = vst [vmem:[#allocation2 + $0x394] sm:$0xff] %v7532_v0 }
  0x66   : > { %359 = vst [vmem:[#allocation2 + $0x39c] sm:$0xff] %v7532_v0  ;;  %360 = vst [vmem:[#allocation2 + $0x3a4] sm:$0xf] %v7532_v0 }
  0x67   : > { %361 = vst [vmem:[#allocation2 + $0x3a8] sm:$0xff] %v7532_v0  ;;  %362 = vst [vmem:[#allocation2 + $0x3b0] sm:$0xff] %v7532_v0 }
  0x68   : > { %363 = vst [vmem:[#allocation2 + $0x3b8] sm:$0xff] %v7532_v0  ;;  %364 = vst [vmem:[#allocation2 + $0x3c0] sm:$0xff] %v7532_v0 }
  0x69   : > { %365 = vst [vmem:[#allocation2 + $0x3c8] sm:$0xf] %v7532_v0  ;;  %366 = vst [vmem:[#allocation2 + $0x3cc] sm:$0xff] %v7532_v0 }
  0x6a   : > { %367 = vst [vmem:[#allocation2 + $0x3d4] sm:$0xff] %v7532_v0  ;;  %368 = vst [vmem:[#allocation2 + $0x3dc] sm:$0xff] %v7532_v0 }
  0x6b   : > { %369 = vst [vmem:[#allocation2 + $0x3e4] sm:$0xff] %v7532_v0  ;;  %370 = vst [vmem:[#allocation2 + $0x3ec] sm:$0xf] %v7532_v0 }
  0x6c   : > { %371 = vst [vmem:[#allocation2 + $0x3f0] sm:$0xff] %v7532_v0  ;;  %372 = vst [vmem:[#allocation2 + $0x3f8] sm:$0xff] %v7532_v0 }
  0x6d   : > { %373 = vst [vmem:[#allocation2 + $0x400] sm:$0xff] %v7532_v0  ;;  %374 = vst [vmem:[#allocation2 + $0x408] sm:$0xff] %v7532_v0 }
  0x6e   : > { %375 = vst [vmem:[#allocation2 + $0x410] sm:$0xf] %v7532_v0  ;;  %376 = vst [vmem:[#allocation2 + $0x414] sm:$0xff] %v7532_v0 }
  0x6f   : > { %377 = vst [vmem:[#allocation2 + $0x41c] sm:$0xff] %v7532_v0  ;;  %378 = vst [vmem:[#allocation2 + $0x424] sm:$0xff] %v7532_v0 }
  0x70   : > { %379 = vst [vmem:[#allocation2 + $0x42c] sm:$0xff] %v7532_v0  ;;  %380 = vst [vmem:[#allocation2 + $0x434] sm:$0xf] %v7532_v0 }
  0x71   : > { %381 = vst [vmem:[#allocation2 + $0x438] sm:$0xff] %v7532_v0  ;;  %382 = vst [vmem:[#allocation2 + $0x440] sm:$0xff] %v7532_v0 }
  0x72   : > { %383 = vst [vmem:[#allocation2 + $0x448] sm:$0xff] %v7532_v0  ;;  %384 = vst [vmem:[#allocation2 + $0x450] sm:$0xff] %v7532_v0 }
  0x73   : > { %385 = vst [vmem:[#allocation2 + $0x458] sm:$0xf] %v7532_v0  ;;  %386 = vst [vmem:[#allocation2 + $0x45c] sm:$0xff] %v7532_v0 }
  0x74   : > { %387 = vst [vmem:[#allocation2 + $0x464] sm:$0xff] %v7532_v0  ;;  %388 = vst [vmem:[#allocation2 + $0x46c] sm:$0xff] %v7532_v0 }
  0x75   : > { %389 = vst [vmem:[#allocation2 + $0x474] sm:$0xff] %v7532_v0  ;;  %390 = vst [vmem:[#allocation2 + $0x47c] sm:$0xf] %v7532_v0  ;;  %v462_v0 = vld [vmem:[%s7797_s18 + $0xc] sm:$0xf] }
  0x76   : > { %427 = vst.msk [vmem:[#allocation2] sm:$0xf] %vm426_vm2, %v394_v12  ;;  %428 = vst.msk [vmem:[#allocation2 + $0x24] sm:$0xf] %vm426_vm2, %v395_v13  ;;  %v535_v3 = vshrl.u32 %v462_v0, 16  ;;  %v538_v4 = vshll.u32 %v462_v0, 16 }
  0x77   : > { %451 = vst.msk [vmem:[#allocation2 + $0x360] sm:$0xf] %vm426_vm2, %v418_v24  ;;  %452 = vst.msk [vmem:[#allocation2 + $0x384] sm:$0xf] %vm426_vm2, %v419_v27  ;;  %v546_v13 = vrot.slane %v544_v5, 5  ;;  %v826_v24 = vshll.u32 %v498_v15, 16 }
  0x78   : > { %vm7815_vm3 = vmor %vm507_vm0, %vm508_vm1  ;;  %429 = vst.msk [vmem:[#allocation2 + $0x48] sm:$0xf] %vm426_vm2, %v396_v60  ;;  %v537_v11 = vrot.slane %v535_v3, 4  ;;  %v540_v12 = vrot.slane %v538_v4, 5  ;;  %v7062_v27 = vld [vmem:[#allocation3 + $0xb8] sm:$0xff]   ;;  %v572_v60 = vshrl.u32 %v466_v51, 16 }
  0x79   : > { %v523_v50 = vsel %vm7815_vm3, %v518_v44, %v522_v29  ;;  %v533_v55 = vsel %vm7815_vm3, %v528_v49, %v532_v31  ;;  %v811_v61 = vsel %vm7815_vm3, %v806_v56, %v810_v46  ;;  %v821_v62 = vsel %vm7815_vm3, %v816_v57, %v820_v53  ;;  %430 = vst.msk [vmem:[#allocation2 + $0x6c] sm:$0xf] %vm426_vm2, %v397_v63  ;;  %v7065_v44 = vld [vmem:[#allocation3 + $0xb0] sm:$0xff]   ;;  %v398_v46 = vld [vmem:[%s7797_s18 + $0x18] sm:$0xf]  ;;  %v7072_v49 = vld [vmem:[#allocation3 + $0xe8] sm:$0xff]  }
  0x7a   : > { %926 = vst.msk [vmem:[#allocation2 + $0x4] sm:$0xf] %vm426_vm2, %v523_v50  ;;  %927 = vst.msk [vmem:[#allocation2 + $0x28] sm:$0xf] %vm426_vm2, %v533_v55  ;;  %v541_v21 = vor.u32 %v540_v12, %v537_v11  ;;  %v551_v22 = vor.u32 %v550_v14, %v546_v13  ;;  %v842_v31 = vshll.u32 %v500_v18, 16  ;;  %v828_v33 = vrot.slane %v826_v24, 5 }
  0x7b   : > { %950 = vst.msk [vmem:[#allocation2 + $0x364] sm:$0xf] %vm426_vm2, %v811_v61  ;;  %951 = vst.msk [vmem:[#allocation2 + $0x388] sm:$0xf] %vm426_vm2, %v821_v62  ;;  %v465_v50 = vld [vmem:[%s7797_s18 + $0x18] sm:$0xf] }
  0x7c   : > { %453 = vst.msk [vmem:[#allocation2 + $0x3a8] sm:$0xf] %vm426_vm2, %v420_v8  ;;  %454 = vst.msk [vmem:[#allocation2 + $0x3cc] sm:$0xf] %vm426_vm2, %v421_v9  ;;  %v542_v28 = vrot.slane %v541_v21, 4  ;;  %v552_v29 = vrot.slane %v551_v22, 4  ;;  %v829_v41 = vor.u32 %v828_v33, %v825_v30 }
  0x7d   : > { %v7055_v19 = vld [vmem:[#allocation2] ss:$36 sps:$4 sm:$0xff]   ;;  %v844_v43 = vrot.slane %v842_v31, 5  ;;  %431 = vst.msk [vmem:[#allocation2 + $0x90] sm:$0xf] %vm426_vm2, %v398_v46  ;;  %v559_v54 = vshrl.u32 %v465_v50, 16  ;;  %vm7920_vm6 = vmor %vm1054_vm4, %vm1055_vm5 }
  0x7e   : > { %v7058_v32 = vld [vmem:[#allocation2 + $0x360] ss:$36 sps:$4 sm:$0xff]   ;;  %v547_v37 = vsel %vm7815_vm3, %v542_v28, %v546_v13  ;;  %v557_v38 = vsel %vm7815_vm3, %v552_v29, %v556_v16  ;;  %v830_v45 = vrot.slane %v829_v41, 4  ;;  %432 = vst.msk [vmem:[#allocation2 + $0xb4] sm:$0xf] %vm426_vm2, %v399_v47  ;;  %v562_v55 = vshll.u32 %v465_v50, 16 }
  0x7f   : > { %928 = vst.msk [vmem:[#allocation2 + $0x4c] sm:$0xf] %vm426_vm2, %v547_v37  ;;  %929 = vst.msk [vmem:[#allocation2 + $0x70] sm:$0xf] %vm426_vm2, %v557_v38  ;;  %v467_v53 = vld [vmem:[%s7797_s18 + $0x20] sm:$0x1]  ;;  %v845_v58 = vsel %vm7815_vm3, %v840_v48, %v844_v43 }
  0x80   : > { %v835_v52 = vsel %vm7815_vm3, %v830_v45, %v834_v34  ;;  %v568_v56 = vshll.u32 %v466_v51, 16  ;;  %v7082_v57 = vld [vmem:[#allocation3 + $0x170] sm:$0xff]   ;;  %v578_v61 = vshll.u32 %v467_v53, 16  ;;  %v422_v62 = vld [vmem:[%s7797_s18 + $0xa8] sm:$0xf]  ;;  %v7074_v0 = vld [vmem:[#allocation3 + $0xe0] sm:$0xff]  }
  0x81   : > { %v7057_v20 = vld [vmem:[#allocation2 + $0x4] ss:$36 sps:$4 sm:$0xff]   ;;  %952 = vst.msk [vmem:[#allocation2 + $0x3ac] sm:$0xf] %vm426_vm2, %v835_v52  ;;  %v423_v63 = vld [vmem:[%s7797_s18 + $0xac] sm:$0xf] }
  0x82   : > { %4416 = vmatprep.mubr.bf16.mxu0 %v7057_v20  ;;  %v7060_v35 = vld [vmem:[#allocation2 + $0x364] ss:$36 sps:$4 sm:$0xff]   ;;  %953 = vst.msk [vmem:[#allocation2 + $0x3d0] sm:$0xf] %vm426_vm2, %v845_v58  ;;  %v561_v1 = vrot.slane %v559_v54, 4  ;;  %v564_v2 = vrot.slane %v562_v55, 5 }
  0x83   : > { %4417 = vmatmul.mubr.bf16.vlgmr.msra.gmra.mxu0 %v7055_v19  ;;  %4512 = vmatprep.mubr.bf16.mxu1 %v7060_v35  ;;  %v570_v3 = vrot.slane %v568_v56, 5  ;;  %455 = vst.msk [vmem:[#allocation2 + $0x3f0] sm:$0xf] %vm426_vm2, %v422_v62  ;;  %456 = vst.msk [vmem:[#allocation2 + $0x414] sm:$0xf] %vm426_vm2, %v423_v63  ;;  %v574_v8 = vrot.slane %v572_v60, 4 }
  0x84   : > { %6656 = vmatpush3.bf16.msra.mxu0 %v7066_v10  ;;  %4513 = vmatmul.mubr.bf16.vlgmr.msra.gmra.mxu1 %v7058_v32  ;;  %v501_v4 = vld [vmem:[%s7797_s18 + $0xa8] sm:$0xf]  ;;  %v580_v9 = vrot.slane %v578_v61, 5  ;;  %v565_v11 = vor.u32 %v564_v2, %v561_v1  ;;  %v502_v12 = vld [vmem:[%s7797_s18 + $0xac] sm:$0xf]  ;;  %v7084_v20 = vld [vmem:[#allocation3 + $0x130] sm:$0xff]  }
  0x85   : > { %6544 = vmatpush3.bf16.msra.mxu1 %v7062_v27  ;;  %6657 = vmatprep.subr.bf16.mxu0 %v7082_v57  ;;  %v503_v13 = vld [vmem:[%s7797_s18 + $0xb0] sm:$0x1]  ;;  %v847_v14 = vshrl.u32 %v501_v4, 16  ;;  %v850_v15 = vshll.u32 %v501_v4, 16  ;;  %v575_v16 = vor.u32 %v574_v8, %v570_v3  ;;  %v856_v17 = vshll.u32 %v502_v12, 16  ;;  %v7075_v21 = vld [vmem:[#allocation3 + $0xa0] sm:$0xff]  }
  0x86   : > { %6545 = vmatprep.subr.bf16.mxu1 %v7063_v36  ;;  %v2915_v5 = vld [vmem:[#allocation2 + $0x48] sm:$0xff]  ;;  %v860_v18 = vshrl.u32 %v502_v12, 16  ;;  %v866_v19 = vshll.u32 %v503_v13, 16  ;;  %v566_v22 = vrot.slane %v565_v11, 4  ;;  %v7081_v28 = vld [vmem:[#allocation3 + $0xd8] sm:$0xff]   ;;  %v7086_v50 = vld [vmem:[#allocation3 + $0x90] sm:$0xff]  }
  0x87   : > { %v2920_v6 = vld [vmem:[#allocation2 + $0x6c] sm:$0xff]  ;;  %v849_v23 = vrot.slane %v847_v14, 4  ;;  %v852_v24 = vrot.slane %v850_v15, 5  ;;  %v576_v25 = vrot.slane %v575_v16, 4  ;;  %v858_v26 = vrot.slane %v856_v17, 5  ;;  %v7083_v37 = vld [vmem:[#allocation3 + $0x98] sm:$0xff]  }
  0x88   : > { %v7067_v7 = vld [vmem:[#allocation2 + $0x4c] ss:$36 sps:$4 sm:$0xff]   ;;  %v6027_v10 = vcombine.low %v2915_v5, %v2920_v6  ;;  %v862_v27 = vrot.slane %v860_v18, 4  ;;  %6658 = vmatpush3.bf16.msra.mxu0 %v7084_v20  ;;  %v571_v29 = vsel %vm7815_vm3, %v566_v22, %v570_v3  ;;  %v868_v35 = vrot.slane %v866_v19, 5  ;;  %v400_v43 = vld [vmem:[%s7797_s18 + $0x24] sm:$0xf] }
  0x89   : > { %6546 = vmatpush3.bf16.msra.mxu1 %v7065_v44  ;;  %4424 = vmatprep.mubr.bf16.mxu0 %v7067_v7  ;;  %v853_v30 = vor.u32 %v852_v24, %v849_v23  ;;  %v7069_v31 = vld [vmem:[#allocation2 + $0x3ac] ss:$36 sps:$4 sm:$0xff]   ;;  %v581_v33 = vsel %vm7815_vm3, %v576_v25, %v580_v9  ;;  %930 = vst.msk [vmem:[#allocation2 + $0x94] sm:$0xf] %vm426_vm2, %v571_v29  ;;  %v401_v44 = vld [vmem:[%s7797_s18 + $0x28] sm:$0xf] }
  0x8a   : > { %6547 = vmatprep.subr.bf16.mxu1 %v7072_v49  ;;  %v7071_v32 = vld [vmem:[#allocation2 + $0x3a8] ss:$36 sps:$4 sm:$0xff]   ;;  %v863_v34 = vor.u32 %v862_v27, %v858_v26  ;;  %931 = vst.msk [vmem:[#allocation2 + $0xb8] sm:$0xf] %vm426_vm2, %v581_v33  ;;  %4520 = vmatprep.mubr.bf16.mxu1 %v7069_v31  ;;  %v468_v45 = vld [vmem:[%s7797_s18 + $0x24] sm:$0xf] }
  0x8b   : > { %4425 = vmatmul.mubr.bf16.gmra.mxu0 %v6027_v10  ;;  %v854_v36 = vrot.slane %v853_v30, 4  ;;  %433 = vst.msk [vmem:[#allocation2 + $0xd8] sm:$0xf] %vm426_vm2, %v400_v43  ;;  %434 = vst.msk [vmem:[#allocation2 + $0xfc] sm:$0xf] %vm426_vm2, %v401_v44  ;;  %v583_v48 = vshrl.u32 %v468_v45, 16 }
  0x8c   : > { %v864_v38 = vrot.slane %v863_v34, 4  ;;  %4521 = vmatmul.mubr.bf16.gmra.mxu1 %v7071_v32  ;;  %v469_v46 = vld [vmem:[%s7797_s18 + $0x28] sm:$0xf]  ;;  %v470_v47 = vld [vmem:[%s7797_s18 + $0x2c] sm:$0x1]  ;;  %v586_v49 = vshll.u32 %v468_v45, 16 }
  0x8d   : > { %6548 = vmatpush3.bf16.msra.mxu1 %v7073_v59  ;;  %v859_v41 = vsel %vm7815_vm3, %v854_v36, %v858_v26  ;;  %v592_v51 = vshll.u32 %v469_v46, 16  ;;  %v596_v52 = vshrl.u32 %v469_v46, 16  ;;  %v602_v53 = vshll.u32 %v470_v47, 16  ;;  %v424_v54 = vld [vmem:[%s7797_s18 + $0xb4] sm:$0xf]  ;;  %v7092_v59 = vld [vmem:[#allocation3 + $0xc8] sm:$0xff]  }
  0x8e   : > { %6549 = vmatprep.subr.bf16.mxu1 %v7074_v0  ;;  %v869_v42 = vsel %vm7815_vm3, %v864_v38, %v868_v35  ;;  %954 = vst.msk [vmem:[#allocation2 + $0x3f4] sm:$0xf] %vm426_vm2, %v859_v41  ;;  %v585_v56 = vrot.slane %v583_v48, 4  ;;  %v588_v57 = vrot.slane %v586_v49, 5  ;;  %v425_v58 = vld [vmem:[%s7797_s18 + $0xb8] sm:$0xf] }
  0x8f   : > { %955 = vst.msk [vmem:[#allocation2 + $0x418] sm:$0xf] %vm426_vm2, %v869_v42  ;;  %457 = vst.msk [vmem:[#allocation2 + $0x438] sm:$0xf] %vm426_vm2, %v424_v54  ;;  %v594_v62 = vrot.slane %v592_v51, 5  ;;  %v598_v63 = vrot.slane %v596_v52, 4 }
  0x90   : > { %v2925_v55 = vld [vmem:[#allocation2 + $0x90] sm:$0xff]  ;;  %v604_v0 = vrot.slane %v602_v53, 5  ;;  %458 = vst.msk [vmem:[#allocation2 + $0x45c] sm:$0xf] %vm426_vm2, %v425_v58  ;;  %v7093_v1 = vld [vmem:[#allocation3 + $0x88] sm:$0xff]   ;;  %v589_v3 = vor.u32 %v588_v57, %v585_v56  ;;  %v7094_v7 = vld [vmem:[#allocation3 + $0xc0] sm:$0xff]  }
  0x91   : > { %6550 = vmatpush3.bf16.msra.mxu1 %v7075_v21  ;;  %v2930_v60 = vld [vmem:[#allocation2 + $0xb4] sm:$0xff]  ;;  %v506_v6 = vld [vmem:[%s7797_s18 + $0xbc] sm:$0x1]  ;;  %v599_v8 = vor.u32 %v598_v63, %v594_v62  ;;  %v7095_v12 = vld [vmem:[#allocation3 + $0x168] sm:$0xff]  }
  0x92   : > { %6551 = vmatprep.subr.bf16.mxu1 %v7081_v28  ;;  %v7076_v61 = vld [vmem:[#allocation2 + $0x94] ss:$36 sps:$4 sm:$0xff]   ;;  %v6036_v2 = vcombine.low %v2925_v55, %v2930_v60  ;;  %v590_v13 = vrot.slane %v589_v3, 4  ;;  %v890_v15 = vshll.u32 %v506_v6, 16  ;;  %6659 = vmatprep.subr.bf16.mxu0 %v7095_v12  ;;  %v7096_v23 = vld [vmem:[#allocation3 + $0x80] sm:$0xff]   ;;  %v7097_v30 = vld [vmem:[#allocation3 + $0x128] sm:$0xff]  }
  0x93   : > { %v504_v4 = vld [vmem:[%s7797_s18 + $0xb4] sm:$0xf]  ;;  %v505_v5 = vld [vmem:[%s7797_s18 + $0xb8] sm:$0xf]  ;;  %4432 = vmatprep.mubr.bf16.mxu0 %v7076_v61  ;;  %v600_v18 = vrot.slane %v599_v8, 4  ;;  %6660 = vmatpush3.bf16.msra.mxu0 %v7097_v30  ;;  %v7110_v63 = vld [vmem:[#allocation3 + $0x160] sm:$0xff]  }
  0x94   : > { %v871_v9 = vshrl.u32 %v504_v4, 16  ;;  %v874_v10 = vshll.u32 %v504_v4, 16  ;;  %v880_v11 = vshll.u32 %v505_v5, 16  ;;  %4433 = vmatmul.mubr.bf16.gmra.mxu0 %v6036_v2  ;;  %v884_v14 = vshrl.u32 %v505_v5, 16  ;;  %v7080_v17 = vld [vmem:[#allocation2 + $0x3f0] ss:$36 sps:$4 sm:$0xff]   ;;  %6661 = vmatprep.subr.bf16.mxu0 %v7110_v63 }
  0x95   : > { %6552 = vmatpush3.bf16.msra.mxu1 %v7083_v37  ;;  %v595_v19 = vsel %vm7815_vm3, %v590_v13, %v594_v62  ;;  %v605_v24 = vsel %vm7815_vm3, %v600_v18, %v604_v0  ;;  %v892_v26 = vrot.slane %v890_v15, 5  ;;  %v402_v31 = vld [vmem:[%s7797_s18 + $0x30] sm:$0xf]  ;;  %v403_v33 = vld [vmem:[%s7797_s18 + $0x34] sm:$0xf]  ;;  %v7103_v35 = vld [vmem:[#allocation3 + $0x1f8] sm:$0xff]  }
  0x96   : > { %6553 = vmatprep.subr.bf16.mxu1 %v7085_v39  ;;  %v7078_v16 = vld [vmem:[#allocation2 + $0x3f4] ss:$36 sps:$4 sm:$0xff]   ;;  %v873_v20 = vrot.slane %v871_v9, 4  ;;  %v876_v21 = vrot.slane %v874_v10, 5  ;;  %v882_v22 = vrot.slane %v880_v11, 5  ;;  %v886_v25 = vrot.slane %v884_v14, 4 }
  0x97   : > { %4528 = vmatprep.mubr.bf16.mxu1 %v7078_v16  ;;  %932 = vst.msk [vmem:[#allocation2 + $0xdc] sm:$0xf] %vm426_vm2, %v595_v19  ;;  %933 = vst.msk [vmem:[#allocation2 + $0x100] sm:$0xf] %vm426_vm2, %v605_v24  ;;  %v471_v34 = vld [vmem:[%s7797_s18 + $0x30] sm:$0xf] }
  0x98   : > { %4529 = vmatmul.mubr.bf16.gmra.mxu1 %v7080_v17  ;;  %v877_v27 = vor.u32 %v876_v21, %v873_v20  ;;  %v887_v28 = vor.u32 %v886_v25, %v882_v22  ;;  %435 = vst.msk [vmem:[#allocation2 + $0x120] sm:$0xf] %vm426_vm2, %v402_v31  ;;  %436 = vst.msk [vmem:[#allocation2 + $0x144] sm:$0xf] %vm426_vm2, %v403_v33  ;;  %v472_v37 = vld [vmem:[%s7797_s18 + $0x34] sm:$0xf] }
  0x99   : > { %6554 = vmatpush3.bf16.msra.mxu1 %v7086_v50  ;;  %v473_v38 = vld [vmem:[%s7797_s18 + $0x38] sm:$0x1]  ;;  %v607_v39 = vshrl.u32 %v471_v34, 16  ;;  %v610_v41 = vshll.u32 %v471_v34, 16  ;;  %v616_v43 = vshll.u32 %v472_v37, 16  ;;  %v620_v44 = vshrl.u32 %v472_v37, 16 }
  0x9a   : > { %6555 = vmatprep.subr.bf16.mxu1 %v7092_v59  ;;  %v878_v29 = vrot.slane %v877_v27, 4  ;;  %v888_v32 = vrot.slane %v887_v28, 4  ;;  %v626_v45 = vshll.u32 %v473_v38, 16  ;;  %v958_v46 = vld [vmem:[%s7797_s18] sm:$0xe]  ;;  %v7104_v37 = vld [vmem:[#allocation3 + $0x1b8] sm:$0xff]  }
  0x9b   : > { %v609_v48 = vrot.slane %v607_v39, 4  ;;  %v612_v49 = vrot.slane %v610_v41, 5  ;;  %v959_v50 = vld [vmem:[%s7797_s18 + $0x4] sm:$0xf]  ;;  %v5713_v51 = vrot.slane %v958_v46, 9  ;;  %v618_v54 = vrot.slane %v616_v43, 5 }
  0x9c   : > { %v883_v36 = vsel %vm7815_vm3, %v878_v29, %v882_v22  ;;  %v893_v42 = vsel %vm7815_vm3, %v888_v32, %v892_v26  ;;  %v622_v55 = vrot.slane %v620_v44, 4  ;;  %v628_v56 = vrot.slane %v626_v45, 5  ;;  %v960_v60 = vld [vmem:[%s7797_s18 + $0x8] sm:$0x1]  ;;  %v5729_v62 = vld [vmem:[%s7797_s18 + $0xc] sm:$0xf] }
  0x9d   : > { %6556 = vmatpush3.bf16.msra.mxu1 %v7093_v1  ;;  %956 = vst.msk [vmem:[#allocation2 + $0x43c] sm:$0xf] %vm426_vm2, %v883_v36  ;;  %957 = vst.msk [vmem:[#allocation2 + $0x460] sm:$0xf] %vm426_vm2, %v893_v42  ;;  %v613_v59 = vor.u32 %v612_v49, %v609_v48  ;;  %v1059_v61 = vrot.slane %v959_v50, 5  ;;  %v1062_v1 = vrot.slane %v960_v60, 5 }
  0x9e   : > { %6557 = vmatprep.subr.bf16.mxu1 %v7094_v7  ;;  %v2935_v47 = vld [vmem:[#allocation2 + $0xd8] sm:$0xff]  ;;  %v623_v0 = vor.u32 %v622_v55, %v618_v54  ;;  %v5730_v2 = vld [vmem:[%s7797_s18 + $0x10] sm:$0xf]  ;;  %1269 = vst.msk [vmem:[#allocation2 + $0xc] sm:$0xf] %vm426_vm2, %v5729_v62  ;;  %v7111_v3 = vld [vmem:[#allocation3 + $0x120] sm:$0xff]  }
  0x9f   : > { %v2940_v52 = vld [vmem:[#allocation2 + $0xfc] sm:$0xff]  ;;  %v614_v4 = vrot.slane %v613_v59, 4  ;;  %v1060_v5 = vsel %vm7920_vm6, %v5713_v51, %v1059_v61  ;;  %v1061_v6 = vrot.slane %v1059_v61, 4  ;;  %1270 = vst.msk [vmem:[#allocation2 + $0x30] sm:$0xf] %vm426_vm2, %v5730_v2  ;;  %6662 = vmatpush3.bf16.msra.mxu0 %v7111_v3  ;;  %v7117_v46 = vld [vmem:[#allocation3 + $0x1f0] sm:$0xff]  }
  0xa0   : > { %v7087_v53 = vld [vmem:[#allocation2 + $0xdc] ss:$36 sps:$4 sm:$0xff]   ;;  %v6045_v58 = vcombine.low %v2935_v47, %v2940_v52  ;;  %v624_v7 = vrot.slane %v623_v0, 4  ;;  %1201 = vst.msk [vmem:[#allocation2 + $0x8] sm:$0xf] %vm426_vm2, %v1060_v5  ;;  %v7118_v61 = vld [vmem:[#allocation3 + $0x1b0] sm:$0xff]  }
  0xa1   : > { %6558 = vmatpush3.bf16.msra.mxu1 %v7096_v23  ;;  %4440 = vmatprep.mubr.bf16.mxu0 %v7087_v53  ;;  %v404_v8 = vld [vmem:[%s7797_s18 + $0x3c] sm:$0xf]  ;;  %v619_v9 = vsel %vm7815_vm3, %v614_v4, %v618_v54  ;;  %v1063_v10 = vsel %vm7920_vm6, %v1061_v6, %v1062_v1  ;;  %v405_v11 = vld [vmem:[%s7797_s18 + $0x40] sm:$0xf]  ;;  %v476_v18 = vld [vmem:[%s7797_s18 + $0x44] sm:$0x1] }
  0xa2   : > { %6767 = vmatprep.subr.bf16.mxu1 %v7103_v35  ;;  %4441 = vmatmul.mubr.bf16.gmra.mxu0 %v6045_v58  ;;  %437 = vst.msk [vmem:[#allocation2 + $0x168] sm:$0xf] %vm426_vm2, %v404_v8  ;;  %v474_v12 = vld [vmem:[%s7797_s18 + $0x3c] sm:$0xf]  ;;  %v629_v15 = vsel %vm7815_vm3, %v624_v7, %v628_v56  ;;  %934 = vst.msk [vmem:[#allocation2 + $0x124] sm:$0xf] %vm426_vm2, %v619_v9 }
  0xa3   : > { %v7091_v14 = vld [vmem:[#allocation2 + $0x438] ss:$36 sps:$4 sm:$0xff]   ;;  %1202 = vst.msk [vmem:[#allocation2 + $0x2c] sm:$0xf] %vm426_vm2, %v1063_v10  ;;  %438 = vst.msk [vmem:[#allocation2 + $0x18c] sm:$0xf] %vm426_vm2, %v405_v11 }
  0xa4   : > { %v7089_v13 = vld [vmem:[#allocation2 + $0x43c] ss:$36 sps:$4 sm:$0xff]   ;;  %v631_v16 = vshrl.u32 %v474_v12, 16  ;;  %935 = vst.msk [vmem:[#allocation2 + $0x148] sm:$0xf] %vm426_vm2, %v629_v15  ;;  %v634_v19 = vshll.u32 %v474_v12, 16 }
  0xa5   : > { %v475_v17 = vld [vmem:[%s7797_s18 + $0x40] sm:$0xf]  ;;  %4536 = vmatprep.mubr.bf16.mxu1 %v7089_v13  ;;  %v650_v23 = vshll.u32 %v476_v18, 16  ;;  %v961_v24 = vld [vmem:[%s7797_s18 + $0xc] sm:$0xe]  ;;  %v7119_v42 = vld [vmem:[#allocation3 + $0x158] sm:$0xff]  }
  0xa6   : > { %v633_v20 = vrot.slane %v631_v16, 4  ;;  %v640_v21 = vshll.u32 %v475_v17, 16  ;;  %v644_v22 = vshrl.u32 %v475_v17, 16  ;;  %4537 = vmatmul.mubr.bf16.gmra.mxu1 %v7091_v14  ;;  %v636_v25 = vrot.slane %v634_v19, 5  ;;  %v962_v26 = vld [vmem:[%s7797_s18 + $0x10] sm:$0xf]  ;;  %6663 = vmatprep.subr.bf16.mxu0 %v7119_v42 }
  0xa7   : > { %v963_v27 = vld [vmem:[%s7797_s18 + $0x14] sm:$0x1]  ;;  %v5714_v28 = vrot.slane %v961_v24, 9  ;;  %v652_v31 = vrot.slane %v650_v23, 5  ;;  %v1066_v32 = vrot.slane %v962_v26, 5 }
  0xa8   : > { %v642_v29 = vrot.slane %v640_v21, 5  ;;  %v646_v30 = vrot.slane %v644_v22, 4  ;;  %v5731_v33 = vld [vmem:[%s7797_s18 + $0x18] sm:$0xf]  ;;  %v637_v34 = vor.u32 %v636_v25, %v633_v20  ;;  %v1069_v35 = vrot.slane %v963_v27, 5 }
  0xa9   : > { %v5732_v36 = vld [vmem:[%s7797_s18 + $0x1c] sm:$0xf]  ;;  %1271 = vst.msk [vmem:[#allocation2 + $0x54] sm:$0xf] %vm426_vm2, %v5731_v33  ;;  %v1067_v39 = vsel %vm7920_vm6, %v5714_v28, %v1066_v32  ;;  %v1068_v41 = vrot.slane %v1066_v32, 4  ;;  %v2945_v43 = vld [vmem:[#allocation2 + $0x120] sm:$0xff] }
  0xaa   : > { %v647_v38 = vor.u32 %v646_v30, %v642_v29  ;;  %1272 = vst.msk [vmem:[#allocation2 + $0x78] sm:$0xf] %vm426_vm2, %v5732_v36  ;;  %v7100_v44 = vld [vmem:[#allocation2 + $0x8] ss:$36 sps:$4 sm:$0xff]   ;;  %v638_v45 = vrot.slane %v637_v34, 4  ;;  %v7120_v25 = vld [vmem:[#allocation3 + $0x118] sm:$0xff]  }
  0xab   : > { %1203 = vst.msk [vmem:[#allocation2 + $0x50] sm:$0xf] %vm426_vm2, %v1067_v39  ;;  %v2950_v47 = vld [vmem:[#allocation2 + $0x144] sm:$0xff]  ;;  %v7102_v49 = vld [vmem:[#allocation2 + $0xc] ss:$36 sps:$4 sm:$0xff]   ;;  %v1070_v51 = vsel %vm7920_vm6, %v1068_v41, %v1069_v35  ;;  %6664 = vmatpush3.bf16.msra.mxu0 %v7120_v25 }
  0xac   : > { %v7098_v48 = vld [vmem:[#allocation2 + $0x124] ss:$36 sps:$4 sm:$0xff]   ;;  %v648_v50 = vrot.slane %v647_v38, 4  ;;  %v6054_v52 = vcombine.low %v2945_v43, %v2950_v47  ;;  %v643_v53 = vsel %vm7815_vm3, %v638_v45, %v642_v29  ;;  %1204 = vst.msk [vmem:[#allocation2 + $0x74] sm:$0xf] %vm426_vm2, %v1070_v51  ;;  %4577 = vmatprep.mubr.bf16.mxu1 %v7102_v49 }
  0xad   : > { %v406_v54 = vld [vmem:[%s7797_s18 + $0x48] sm:$0xf]  ;;  %v407_v55 = vld [vmem:[%s7797_s18 + $0x4c] sm:$0xf]  ;;  %4448 = vmatprep.mubr.bf16.mxu0 %v7098_v48  ;;  %936 = vst.msk [vmem:[#allocation2 + $0x16c] sm:$0xf] %vm426_vm2, %v643_v53 }
  0xae   : > { %v653_v56 = vsel %vm7815_vm3, %v648_v50, %v652_v31  ;;  %439 = vst.msk [vmem:[#allocation2 + $0x1b0] sm:$0xf] %vm426_vm2, %v406_v54  ;;  %440 = vst.msk [vmem:[#allocation2 + $0x1d4] sm:$0xf] %vm426_vm2, %v407_v55  ;;  %v477_v58 = vld [vmem:[%s7797_s18 + $0x48] sm:$0xf]  ;;  %4449 = vmatmul.mubr.bf16.gmra.mxu0 %v6054_v52  ;;  %4578 = vmatmul.mubr.bf16.vlgmr.msra.gmra.mxu1 %v7100_v44 }
  0xaf   : > { %v478_v59 = vld [vmem:[%s7797_s18 + $0x4c] sm:$0xf]  ;;  %v479_v60 = vld [vmem:[%s7797_s18 + $0x50] sm:$0x1]  ;;  %937 = vst.msk [vmem:[#allocation2 + $0x190] sm:$0xf] %vm426_vm2, %v653_v56  ;;  %6768 = vmatpush3.bf16.msra.mxu1 %v7104_v37 }
  0xb0   : > { %v655_v62 = vshrl.u32 %v477_v58, 16  ;;  %v658_v63 = vshll.u32 %v477_v58, 16  ;;  %v664_v0 = vshll.u32 %v478_v59, 16  ;;  %v668_v1 = vshrl.u32 %v478_v59, 16  ;;  %v964_v2 = vld [vmem:[%s7797_s18 + $0x18] sm:$0xe]  ;;  %6769 = vmatprep.subr.bf16.mxu1 %v7117_v46 }
  0xb1   : > { %v674_v3 = vshll.u32 %v479_v60, 16  ;;  %v965_v4 = vld [vmem:[%s7797_s18 + $0x1c] sm:$0xf]  ;;  %v966_v5 = vld [vmem:[%s7797_s18 + $0x20] sm:$0x1]  ;;  %v5715_v6 = vrot.slane %v964_v2, 9 }
  0xb2   : > { %v657_v7 = vrot.slane %v655_v62, 4  ;;  %v660_v8 = vrot.slane %v658_v63, 5  ;;  %v666_v9 = vrot.slane %v664_v0, 5  ;;  %v670_v10 = vrot.slane %v668_v1, 4  ;;  %v5733_v11 = vld [vmem:[%s7797_s18 + $0x24] sm:$0xf] }
  0xb3   : > { %v676_v12 = vrot.slane %v674_v3, 5  ;;  %v1073_v13 = vrot.slane %v965_v4, 5  ;;  %v1076_v14 = vrot.slane %v966_v5, 5  ;;  %v5734_v15 = vld [vmem:[%s7797_s18 + $0x28] sm:$0xf]  ;;  %6770 = vmatpush3.bf16.msra.mxu1 %v7118_v61  ;;  %v7131_v44 = vld [vmem:[#allocation3 + $0x150] sm:$0xff]  }
  0xb4   : > { %1273 = vst.msk [vmem:[#allocation2 + $0x9c] sm:$0xf] %vm426_vm2, %v5733_v11  ;;  %v661_v16 = vor.u32 %v660_v8, %v657_v7  ;;  %v671_v17 = vor.u32 %v670_v10, %v666_v9  ;;  %1274 = vst.msk [vmem:[#allocation2 + $0xc0] sm:$0xf] %vm426_vm2, %v5734_v15  ;;  %v7107_v18 = vld [vmem:[#allocation2 + $0x54] ss:$36 sps:$4 sm:$0xff]   ;;  %6665 = vmatprep.subr.bf16.mxu0 %v7131_v44 }
  0xb5   : > { %v7109_v19 = vld [vmem:[#allocation2 + $0x50] ss:$36 sps:$4 sm:$0xff]   ;;  %v1074_v20 = vsel %vm7920_vm6, %v5715_v6, %v1073_v13  ;;  %v1075_v21 = vrot.slane %v1073_v13, 4  ;;  %v2955_v22 = vld [vmem:[#allocation2 + $0x168] sm:$0xff]  ;;  %4585 = vmatprep.mubr.bf16.mxu1 %v7107_v18  ;;  %v409_v33 = vld [vmem:[%s7797_s18 + $0x58] sm:$0xf] }
  0xb6   : > { %v662_v23 = vrot.slane %v661_v16, 4  ;;  %v672_v24 = vrot.slane %v671_v17, 4  ;;  %1205 = vst.msk [vmem:[#allocation2 + $0x98] sm:$0xf] %vm426_vm2, %v1074_v20  ;;  %v2960_v26 = vld [vmem:[#allocation2 + $0x18c] sm:$0xff]  ;;  %4586 = vmatmul.mubr.bf16.gmra.mxu1 %v7109_v19 }
  0xb7   : > { %v7105_v27 = vld [vmem:[#allocation2 + $0x16c] ss:$36 sps:$4 sm:$0xff]   ;;  %v1077_v28 = vsel %vm7920_vm6, %v1075_v21, %v1076_v14  ;;  %v6063_v29 = vcombine.low %v2955_v22, %v2960_v26  ;;  %v408_v32 = vld [vmem:[%s7797_s18 + $0x54] sm:$0xf]  ;;  %442 = vst.msk [vmem:[#allocation2 + $0x21c] sm:$0xf] %vm426_vm2, %v409_v33 }
  0xb8   : > { %v667_v30 = vsel %vm7815_vm3, %v662_v23, %v666_v9  ;;  %v677_v31 = vsel %vm7815_vm3, %v672_v24, %v676_v12  ;;  %1206 = vst.msk [vmem:[#allocation2 + $0xbc] sm:$0xf] %vm426_vm2, %v1077_v28  ;;  %4456 = vmatprep.mubr.bf16.mxu0 %v7105_v27  ;;  %v480_v34 = vld [vmem:[%s7797_s18 + $0x54] sm:$0xf]  ;;  %441 = vst.msk [vmem:[#allocation2 + $0x1f8] sm:$0xf] %vm426_vm2, %v408_v32 }
  0xb9   : > { %938 = vst.msk [vmem:[#allocation2 + $0x1b4] sm:$0xf] %vm426_vm2, %v667_v30  ;;  %939 = vst.msk [vmem:[#allocation2 + $0x1d8] sm:$0xf] %vm426_vm2, %v677_v31  ;;  %4457 = vmatmul.mubr.bf16.gmra.mxu0 %v6063_v29  ;;  %v481_v35 = vld [vmem:[%s7797_s18 + $0x58] sm:$0xf] }
  0xba   : > { %v482_v36 = vld [vmem:[%s7797_s18 + $0x5c] sm:$0x1]  ;;  %v679_v37 = vshrl.u32 %v480_v34, 16  ;;  %v682_v38 = vshll.u32 %v480_v34, 16  ;;  %v688_v39 = vshll.u32 %v481_v35, 16  ;;  %v692_v41 = vshrl.u32 %v481_v35, 16 }
  0xbb   : > { %v698_v42 = vshll.u32 %v482_v36, 16  ;;  %v967_v43 = vld [vmem:[%s7797_s18 + $0x24] sm:$0xe]  ;;  %v968_v47 = vld [vmem:[%s7797_s18 + $0x28] sm:$0xf]  ;;  %v7133_v9 = vld [vmem:[#allocation3 + $0x110] sm:$0xff]  }
  0xbc   : > { %v681_v45 = vrot.slane %v679_v37, 4  ;;  %v684_v46 = vrot.slane %v682_v38, 5  ;;  %v969_v48 = vld [vmem:[%s7797_s18 + $0x2c] sm:$0x1]  ;;  %v690_v49 = vrot.slane %v688_v39, 5  ;;  %v694_v50 = vrot.slane %v692_v41, 4  ;;  %6666 = vmatpush3.bf16.msra.mxu0 %v7133_v9 }
  0xbd   : > { %v5716_v51 = vrot.slane %v967_v43, 9  ;;  %v7132_v52 = vld [vmem:[#allocation3 + $0x1e8] sm:$0xff]   ;;  %v1080_v54 = vrot.slane %v968_v47, 5  ;;  %v1083_v55 = vrot.slane %v969_v48, 5  ;;  %v5735_v56 = vld [vmem:[%s7797_s18 + $0x30] sm:$0xf] }
  0xbe   : > { %v685_v53 = vor.u32 %v684_v46, %v681_v45  ;;  %v5736_v58 = vld [vmem:[%s7797_s18 + $0x34] sm:$0xf]  ;;  %v7114_v59 = vld [vmem:[#allocation2 + $0x9c] ss:$36 sps:$4 sm:$0xff]   ;;  %v695_v61 = vor.u32 %v694_v50, %v690_v49  ;;  %v700_v62 = vrot.slane %v698_v42, 5  ;;  %6771 = vmatprep.subr.bf16.mxu1 %v7132_v52  ;;  %v7134_v20 = vld [vmem:[#allocation3 + $0x1a8] sm:$0xff]  }
  0xbf   : > { %v7116_v60 = vld [vmem:[#allocation2 + $0x98] ss:$36 sps:$4 sm:$0xff]   ;;  %1275 = vst.msk [vmem:[#allocation2 + $0xe4] sm:$0xf] %vm426_vm2, %v5735_v56  ;;  %1276 = vst.msk [vmem:[#allocation2 + $0x108] sm:$0xf] %vm426_vm2, %v5736_v58  ;;  %v1081_v3 = vsel %vm7920_vm6, %v5716_v51, %v1080_v54  ;;  %4593 = vmatprep.mubr.bf16.mxu1 %v7114_v59  ;;  %6772 = vmatpush3.bf16.msra.mxu1 %v7134_v20 }
  0xc0   : > { %v2965_v63 = vld [vmem:[#allocation2 + $0x1b0] sm:$0xff]  ;;  %v686_v2 = vrot.slane %v685_v53, 4  ;;  %v1082_v4 = vrot.slane %v1080_v54, 4  ;;  %v696_v6 = vrot.slane %v695_v61, 4  ;;  %1207 = vst.msk [vmem:[#allocation2 + $0xe0] sm:$0xf] %vm426_vm2, %v1081_v3  ;;  %4594 = vmatmul.mubr.bf16.gmra.mxu1 %v7116_v60 }
  0xc1   : > { %v2970_v0 = vld [vmem:[#allocation2 + $0x1d4] sm:$0xff]  ;;  %v410_v7 = vld [vmem:[%s7797_s18 + $0x60] sm:$0xf]  ;;  %v411_v8 = vld [vmem:[%s7797_s18 + $0x64] sm:$0xf] }
  0xc2   : > { %v7112_v1 = vld [vmem:[#allocation2 + $0x1b4] ss:$36 sps:$4 sm:$0xff]   ;;  %v6072_v5 = vcombine.low %v2965_v63, %v2970_v0  ;;  %v691_v10 = vsel %vm7815_vm3, %v686_v2, %v690_v49  ;;  %v1084_v11 = vsel %vm7920_vm6, %v1082_v4, %v1083_v55  ;;  %443 = vst.msk [vmem:[#allocation2 + $0x240] sm:$0xf] %vm426_vm2, %v410_v7  ;;  %444 = vst.msk [vmem:[#allocation2 + $0x264] sm:$0xf] %vm426_vm2, %v411_v8 }
  0xc3   : > { %4464 = vmatprep.mubr.bf16.mxu0 %v7112_v1  ;;  %v483_v12 = vld [vmem:[%s7797_s18 + $0x60] sm:$0xf]  ;;  %v484_v13 = vld [vmem:[%s7797_s18 + $0x64] sm:$0xf]  ;;  %v485_v14 = vld [vmem:[%s7797_s18 + $0x68] sm:$0x1]  ;;  %v701_v15 = vsel %vm7815_vm3, %v696_v6, %v700_v62 }
  0xc4   : > { %4465 = vmatmul.mubr.bf16.gmra.mxu0 %v6072_v5  ;;  %940 = vst.msk [vmem:[#allocation2 + $0x1fc] sm:$0xf] %vm426_vm2, %v691_v10  ;;  %1208 = vst.msk [vmem:[#allocation2 + $0x104] sm:$0xf] %vm426_vm2, %v1084_v11  ;;  %v703_v16 = vshrl.u32 %v483_v12, 16  ;;  %v706_v17 = vshll.u32 %v483_v12, 16 }
  0xc5   : > { %v712_v18 = vshll.u32 %v484_v13, 16  ;;  %v970_v19 = vld [vmem:[%s7797_s18 + $0x30] sm:$0xe]  ;;  %941 = vst.msk [vmem:[#allocation2 + $0x220] sm:$0xf] %vm426_vm2, %v701_v15  ;;  %v716_v21 = vshrl.u32 %v484_v13, 16 }
  0xc6   : > { %v722_v22 = vshll.u32 %v485_v14, 16  ;;  %v971_v23 = vld [vmem:[%s7797_s18 + $0x34] sm:$0xf]  ;;  %v972_v24 = vld [vmem:[%s7797_s18 + $0x38] sm:$0x1]  ;;  %v705_v25 = vrot.slane %v703_v16, 4 }
  0xc7   : > { %v708_v26 = vrot.slane %v706_v17, 5  ;;  %v714_v27 = vrot.slane %v712_v18, 5  ;;  %v5717_v28 = vrot.slane %v970_v19, 9  ;;  %v5737_v29 = vld [vmem:[%s7797_s18 + $0x3c] sm:$0xf]  ;;  %v718_v30 = vrot.slane %v716_v21, 4 }
  0xc8   : > { %v724_v31 = vrot.slane %v722_v22, 5  ;;  %v1087_v32 = vrot.slane %v971_v23, 5  ;;  %v1090_v33 = vrot.slane %v972_v24, 5  ;;  %v5738_v34 = vld [vmem:[%s7797_s18 + $0x40] sm:$0xf]  ;;  %v7140_v41 = vld [vmem:[#allocation3 + $0x148] sm:$0xff]  }
  0xc9   : > { %1277 = vst.msk [vmem:[#allocation2 + $0x12c] sm:$0xf] %vm426_vm2, %v5737_v29  ;;  %v709_v35 = vor.u32 %v708_v26, %v705_v25  ;;  %1278 = vst.msk [vmem:[#allocation2 + $0x150] sm:$0xf] %vm426_vm2, %v5738_v34  ;;  %v719_v36 = vor.u32 %v718_v30, %v714_v27  ;;  %v7123_v43 = vld [vmem:[#allocation2 + $0xe4] ss:$36 sps:$4 sm:$0xff]   ;;  %6667 = vmatprep.subr.bf16.mxu0 %v7140_v41 }
  0xca   : > { %v1088_v37 = vsel %vm7920_vm6, %v5717_v28, %v1087_v32  ;;  %v1089_v38 = vrot.slane %v1087_v32, 4  ;;  %4601 = vmatprep.mubr.bf16.mxu1 %v7123_v43  ;;  %v412_v52 = vld [vmem:[%s7797_s18 + $0x6c] sm:$0xf]  ;;  %v413_v53 = vld [vmem:[%s7797_s18 + $0x70] sm:$0xf]  ;;  %v7147_v11 = vld [vmem:[#allocation3 + $0x1e0] sm:$0xff]  }
  0xcb   : > { %v710_v39 = vrot.slane %v709_v35, 4  ;;  %1209 = vst.msk [vmem:[#allocation2 + $0x128] sm:$0xf] %vm426_vm2, %v1088_v37  ;;  %v2975_v42 = vld [vmem:[#allocation2 + $0x1f8] sm:$0xff]  ;;  %v720_v44 = vrot.slane %v719_v36, 4  ;;  %v7141_v7 = vld [vmem:[#allocation3 + $0x108] sm:$0xff]   ;;  %6773 = vmatprep.subr.bf16.mxu1 %v7147_v11 }
  0xcc   : > { %v1091_v45 = vsel %vm7920_vm6, %v1089_v38, %v1090_v33  ;;  %v2980_v46 = vld [vmem:[#allocation2 + $0x21c] sm:$0xff]  ;;  %445 = vst.msk [vmem:[#allocation2 + $0x288] sm:$0xf] %vm426_vm2, %v412_v52  ;;  %446 = vst.msk [vmem:[#allocation2 + $0x2ac] sm:$0xf] %vm426_vm2, %v413_v53  ;;  %6668 = vmatpush3.bf16.msra.mxu0 %v7141_v7 }
  0xcd   : > { %v7121_v47 = vld [vmem:[#allocation2 + $0x1fc] ss:$36 sps:$4 sm:$0xff]   ;;  %v715_v49 = vsel %vm7815_vm3, %v710_v39, %v714_v27  ;;  %1210 = vst.msk [vmem:[#allocation2 + $0x14c] sm:$0xf] %vm426_vm2, %v1091_v45  ;;  %v6081_v50 = vcombine.low %v2975_v42, %v2980_v46  ;;  %v725_v51 = vsel %vm7815_vm3, %v720_v44, %v724_v31  ;;  %v486_v54 = vld [vmem:[%s7797_s18 + $0x6c] sm:$0xf] }
  0xce   : > { %v7125_v48 = vld [vmem:[#allocation2 + $0xe0] ss:$36 sps:$4 sm:$0xff]   ;;  %942 = vst.msk [vmem:[#allocation2 + $0x244] sm:$0xf] %vm426_vm2, %v715_v49  ;;  %4472 = vmatprep.mubr.bf16.mxu0 %v7121_v47  ;;  %943 = vst.msk [vmem:[#allocation2 + $0x268] sm:$0xf] %vm426_vm2, %v725_v51 }
  0xcf   : > { %4602 = vmatmul.mubr.bf16.gmra.mxu1 %v7125_v48  ;;  %v487_v55 = vld [vmem:[%s7797_s18 + $0x70] sm:$0xf]  ;;  %v488_v56 = vld [vmem:[%s7797_s18 + $0x74] sm:$0x1]  ;;  %4473 = vmatmul.mubr.bf16.gmra.mxu0 %v6081_v50  ;;  %v727_v58 = vshrl.u32 %v486_v54, 16  ;;  %v730_v59 = vshll.u32 %v486_v54, 16 }
  0xd0   : > { %v736_v60 = vshll.u32 %v487_v55, 16  ;;  %v740_v61 = vshrl.u32 %v487_v55, 16  ;;  %v973_v62 = vld [vmem:[%s7797_s18 + $0x3c] sm:$0xe]  ;;  %v746_v63 = vshll.u32 %v488_v56, 16  ;;  %v7148_v25 = vld [vmem:[#allocation3 + $0x1a0] sm:$0xff]  }
  0xd1   : > { %v974_v0 = vld [vmem:[%s7797_s18 + $0x40] sm:$0xf]  ;;  %v975_v1 = vld [vmem:[%s7797_s18 + $0x44] sm:$0x1]  ;;  %v5718_v2 = vrot.slane %v973_v62, 9  ;;  %v729_v3 = vrot.slane %v727_v58, 4  ;;  %6774 = vmatpush3.bf16.msra.mxu1 %v7148_v25 }
  0xd2   : > { %v732_v4 = vrot.slane %v730_v59, 5  ;;  %v738_v5 = vrot.slane %v736_v60, 5  ;;  %v742_v6 = vrot.slane %v740_v61, 4  ;;  %v1094_v8 = vrot.slane %v974_v0, 5  ;;  %v5739_v10 = vld [vmem:[%s7797_s18 + $0x48] sm:$0xf] }
  0xd3   : > { %v1097_v9 = vrot.slane %v975_v1, 5  ;;  %v7128_v12 = vld [vmem:[#allocation2 + $0x12c] ss:$36 sps:$4 sm:$0xff]   ;;  %v748_v16 = vrot.slane %v746_v63, 5  ;;  %1279 = vst.msk [vmem:[#allocation2 + $0x174] sm:$0xf] %vm426_vm2, %v5739_v10 }
  0xd4   : > { %v7130_v13 = vld [vmem:[#allocation2 + $0x128] ss:$36 sps:$4 sm:$0xff]   ;;  %v733_v14 = vor.u32 %v732_v4, %v729_v3  ;;  %v743_v15 = vor.u32 %v742_v6, %v738_v5  ;;  %v1095_v18 = vsel %vm7920_vm6, %v5718_v2, %v1094_v8  ;;  %v1096_v19 = vrot.slane %v1094_v8, 4  ;;  %4609 = vmatprep.mubr.bf16.mxu1 %v7128_v12  ;;  %v414_v30 = vld [vmem:[%s7797_s18 + $0x78] sm:$0xf]  ;;  %v7154_v42 = vld [vmem:[#allocation3 + $0x140] sm:$0xff]  }
  0xd5   : > { %v2985_v17 = vld [vmem:[#allocation2 + $0x240] sm:$0xff]  ;;  %v5740_v20 = vld [vmem:[%s7797_s18 + $0x4c] sm:$0xf]  ;;  %1211 = vst.msk [vmem:[#allocation2 + $0x170] sm:$0xf] %vm426_vm2, %v1095_v18  ;;  %6669 = vmatprep.subr.bf16.mxu0 %v7154_v42  ;;  %v8115_v42 = vld [vmem:[#allocation3 + $0x238] sm:$0xff]  }
  0xd6   : > { %v2990_v21 = vld [vmem:[#allocation2 + $0x264] sm:$0xff]  ;;  %v734_v23 = vrot.slane %v733_v14, 4  ;;  %v744_v24 = vrot.slane %v743_v15, 4  ;;  %1280 = vst.msk [vmem:[#allocation2 + $0x198] sm:$0xf] %vm426_vm2, %v5740_v20  ;;  %v1098_v27 = vsel %vm7920_vm6, %v1096_v19, %v1097_v9 }
  0xd7   : > { %v7126_v22 = vld [vmem:[#allocation2 + $0x244] ss:$36 sps:$4 sm:$0xff]   ;;  %v6090_v26 = vcombine.low %v2985_v17, %v2990_v21  ;;  %4610 = vmatmul.mubr.bf16.gmra.mxu1 %v7130_v13  ;;  %1212 = vst.msk [vmem:[#allocation2 + $0x194] sm:$0xf] %vm426_vm2, %v1098_v27  ;;  %v415_v31 = vld [vmem:[%s7797_s18 + $0x7c] sm:$0xf] }
  0xd8   : > { %4480 = vmatprep.mubr.bf16.mxu0 %v7126_v22  ;;  %v739_v28 = vsel %vm7815_vm3, %v734_v23, %v738_v5  ;;  %v749_v29 = vsel %vm7815_vm3, %v744_v24, %v748_v16  ;;  %v489_v32 = vld [vmem:[%s7797_s18 + $0x78] sm:$0xf]  ;;  %447 = vst.msk [vmem:[#allocation2 + $0x2d0] sm:$0xf] %vm426_vm2, %v414_v30  ;;  %448 = vst.msk [vmem:[#allocation2 + $0x2f4] sm:$0xf] %vm426_vm2, %v415_v31 }
  0xd9   : > { %4481 = vmatmul.mubr.bf16.gmra.mxu0 %v6090_v26  ;;  %944 = vst.msk [vmem:[#allocation2 + $0x28c] sm:$0xf] %vm426_vm2, %v739_v28  ;;  %945 = vst.msk [vmem:[#allocation2 + $0x2b0] sm:$0xf] %vm426_vm2, %v749_v29  ;;  %v490_v33 = vld [vmem:[%s7797_s18 + $0x7c] sm:$0xf] }
  0xda   : > { %v491_v34 = vld [vmem:[%s7797_s18 + $0x80] sm:$0x1]  ;;  %v751_v35 = vshrl.u32 %v489_v32, 16  ;;  %v754_v36 = vshll.u32 %v489_v32, 16  ;;  %v760_v37 = vshll.u32 %v490_v33, 16  ;;  %v764_v38 = vshrl.u32 %v490_v33, 16 }
  0xdb   : > { %v770_v39 = vshll.u32 %v491_v34, 16  ;;  %v976_v41 = vld [vmem:[%s7797_s18 + $0x48] sm:$0xe]  ;;  %v977_v45 = vld [vmem:[%s7797_s18 + $0x4c] sm:$0xf]  ;;  %v7155_v56 = vld [vmem:[#allocation3 + $0x100] sm:$0xff]  }
  0xdc   : > { %v753_v43 = vrot.slane %v751_v35, 4  ;;  %v756_v44 = vrot.slane %v754_v36, 5  ;;  %v978_v46 = vld [vmem:[%s7797_s18 + $0x50] sm:$0x1]  ;;  %v762_v47 = vrot.slane %v760_v37, 5  ;;  %v766_v48 = vrot.slane %v764_v38, 4  ;;  %6670 = vmatpush3.bf16.msra.mxu0 %v7155_v56 }
  0xdd   : > { %v772_v49 = vrot.slane %v770_v39, 5  ;;  %v5719_v50 = vrot.slane %v976_v41, 9  ;;  %v5741_v51 = vld [vmem:[%s7797_s18 + $0x54] sm:$0xf]  ;;  %v1101_v53 = vrot.slane %v977_v45, 5  ;;  %v1104_v54 = vrot.slane %v978_v46, 5  ;;  %6903 = vmatprep.subr.bf16.mxu0 %v8115_v42 }
  0xde   : > { %v757_v52 = vor.u32 %v756_v44, %v753_v43  ;;  %v5742_v55 = vld [vmem:[%s7797_s18 + $0x58] sm:$0xf]  ;;  %1281 = vst.msk [vmem:[#allocation2 + $0x1bc] sm:$0xf] %vm426_vm2, %v5741_v51  ;;  %v767_v58 = vor.u32 %v766_v48, %v762_v47  ;;  %v7139_v60 = vld [vmem:[#allocation2 + $0x170] ss:$36 sps:$4 sm:$0xff]  }
  0xdf   : > { %1282 = vst.msk [vmem:[#allocation2 + $0x1e0] sm:$0xf] %vm426_vm2, %v5742_v55  ;;  %v7137_v59 = vld [vmem:[#allocation2 + $0x174] ss:$36 sps:$4 sm:$0xff]   ;;  %v1102_v62 = vsel %vm7920_vm6, %v5719_v50, %v1101_v53  ;;  %v1103_v3 = vrot.slane %v1101_v53, 4 }
  0xe0   : > { %v758_v61 = vrot.slane %v757_v52, 4  ;;  %v2995_v63 = vld [vmem:[#allocation2 + $0x288] sm:$0xff]  ;;  %v768_v2 = vrot.slane %v767_v58, 4  ;;  %1213 = vst.msk [vmem:[#allocation2 + $0x1b8] sm:$0xf] %vm426_vm2, %v1102_v62  ;;  %4617 = vmatprep.mubr.bf16.mxu1 %v7137_v59  ;;  %v7161_v30 = vld [vmem:[#allocation3 + $0x1d8] sm:$0xff]  }
  0xe1   : > { %v3000_v0 = vld [vmem:[#allocation2 + $0x2ac] sm:$0xff]  ;;  %v416_v6 = vld [vmem:[%s7797_s18 + $0x84] sm:$0xf]  ;;  %v417_v7 = vld [vmem:[%s7797_s18 + $0x88] sm:$0xf]  ;;  %4618 = vmatmul.mubr.bf16.gmra.mxu1 %v7139_v60  ;;  %v1105_v9 = vsel %vm7920_vm6, %v1103_v3, %v1104_v54  ;;  %6775 = vmatprep.subr.bf16.mxu1 %v7161_v30 }
  0xe2   : > { %v7135_v1 = vld [vmem:[#allocation2 + $0x28c] ss:$36 sps:$4 sm:$0xff]   ;;  %v6099_v4 = vcombine.low %v2995_v63, %v3000_v0  ;;  %v763_v5 = vsel %vm7815_vm3, %v758_v61, %v762_v47  ;;  %v773_v8 = vsel %vm7815_vm3, %v768_v2, %v772_v49  ;;  %449 = vst.msk [vmem:[#allocation2 + $0x318] sm:$0xf] %vm426_vm2, %v416_v6  ;;  %450 = vst.msk [vmem:[#allocation2 + $0x33c] sm:$0xf] %vm426_vm2, %v417_v7 }
  0xe3   : > { %4488 = vmatprep.mubr.bf16.mxu0 %v7135_v1  ;;  %946 = vst.msk [vmem:[#allocation2 + $0x2d4] sm:$0xf] %vm426_vm2, %v763_v5  ;;  %v492_v10 = vld [vmem:[%s7797_s18 + $0x84] sm:$0xf]  ;;  %v493_v11 = vld [vmem:[%s7797_s18 + $0x88] sm:$0xf] }
  0xe4   : > { %v494_v12 = vld [vmem:[%s7797_s18 + $0x8c] sm:$0x1]  ;;  %4489 = vmatmul.mubr.bf16.gmra.mxu0 %v6099_v4  ;;  %947 = vst.msk [vmem:[#allocation2 + $0x2f8] sm:$0xf] %vm426_vm2, %v773_v8  ;;  %1214 = vst.msk [vmem:[#allocation2 + $0x1dc] sm:$0xf] %vm426_vm2, %v1105_v9 }
  0xe5   : > { %v775_v13 = vshrl.u32 %v492_v10, 16  ;;  %v778_v14 = vshll.u32 %v492_v10, 16  ;;  %v784_v15 = vshll.u32 %v493_v11, 16  ;;  %v788_v16 = vshrl.u32 %v493_v11, 16  ;;  %v979_v17 = vld [vmem:[%s7797_s18 + $0x54] sm:$0xe] }
  0xe6   : > { %v794_v18 = vshll.u32 %v494_v12, 16  ;;  %v980_v19 = vld [vmem:[%s7797_s18 + $0x58] sm:$0xf]  ;;  %v981_v20 = vld [vmem:[%s7797_s18 + $0x5c] sm:$0x1]  ;;  %v5720_v21 = vrot.slane %v979_v17, 9 }
  0xe7   : > { %v777_v22 = vrot.slane %v775_v13, 4  ;;  %v780_v23 = vrot.slane %v778_v14, 5  ;;  %v786_v24 = vrot.slane %v784_v15, 5  ;;  %v790_v25 = vrot.slane %v788_v16, 4  ;;  %v5743_v26 = vld [vmem:[%s7797_s18 + $0x60] sm:$0xf] }
  0xe8   : > { %v1108_v27 = vrot.slane %v980_v19, 5  ;;  %v1111_v28 = vrot.slane %v981_v20, 5  ;;  %v5744_v29 = vld [vmem:[%s7797_s18 + $0x64] sm:$0xf]  ;;  %1283 = vst.msk [vmem:[#allocation2 + $0x204] sm:$0xf] %vm426_vm2, %v5743_v26 }
  0xe9   : > { %v781_v31 = vor.u32 %v780_v23, %v777_v22  ;;  %v791_v32 = vor.u32 %v790_v25, %v786_v24  ;;  %v796_v33 = vrot.slane %v794_v18, 5  ;;  %1284 = vst.msk [vmem:[#allocation2 + $0x228] sm:$0xf] %vm426_vm2, %v5744_v29  ;;  %v7162_v36 = vld [vmem:[#allocation3 + $0x198] sm:$0xff]   ;;  %v982_v41 = vld [vmem:[%s7797_s18 + $0x60] sm:$0xe] }
  0xea   : > { %v1109_v34 = vsel %vm7920_vm6, %v5720_v21, %v1108_v27  ;;  %v1110_v35 = vrot.slane %v1108_v27, 4  ;;  %v3005_v37 = vld [vmem:[#allocation2 + $0x2d0] sm:$0xff]  ;;  %v5721_v46 = vrot.slane %v982_v41, 9  ;;  %6776 = vmatpush3.bf16.msra.mxu1 %v7162_v36  ;;  %v7144_v47 = vld [vmem:[#allocation2 + $0x1bc] ss:$36 sps:$4 sm:$0xff]  }
  0xeb   : > { %v782_v38 = vrot.slane %v781_v31, 4  ;;  %v792_v39 = vrot.slane %v791_v32, 4  ;;  %1215 = vst.msk [vmem:[#allocation2 + $0x200] sm:$0xf] %vm426_vm2, %v1109_v34  ;;  %v3010_v43 = vld [vmem:[#allocation2 + $0x2f4] sm:$0xff]  ;;  %4625 = vmatprep.mubr.bf16.mxu1 %v7144_v47 }
  0xec   : > { %v7142_v44 = vld [vmem:[#allocation2 + $0x2d4] ss:$36 sps:$4 sm:$0xff]   ;;  %v1112_v45 = vsel %vm7920_vm6, %v1110_v35, %v1111_v28  ;;  %v6108_v48 = vcombine.low %v3005_v37, %v3010_v43  ;;  %v983_v52 = vld [vmem:[%s7797_s18 + $0x64] sm:$0xf]  ;;  %v984_v53 = vld [vmem:[%s7797_s18 + $0x68] sm:$0x1] }
  0xed   : > { %v7146_v49 = vld [vmem:[#allocation2 + $0x1b8] ss:$36 sps:$4 sm:$0xff]   ;;  %v787_v50 = vsel %vm7815_vm3, %v782_v38, %v786_v24  ;;  %v797_v51 = vsel %vm7815_vm3, %v792_v39, %v796_v33  ;;  %1216 = vst.msk [vmem:[#allocation2 + $0x224] sm:$0xf] %vm426_vm2, %v1112_v45  ;;  %4496 = vmatprep.mubr.bf16.mxu0 %v7142_v44  ;;  %v1115_v54 = vrot.slane %v983_v52, 5  ;;  %v7174_v56 = vld [vmem:[#allocation3 + $0x1d0] sm:$0xff]  }
  0xee   : > { %948 = vst.msk [vmem:[#allocation2 + $0x31c] sm:$0xf] %vm426_vm2, %v787_v50  ;;  %949 = vst.msk [vmem:[#allocation2 + $0x340] sm:$0xf] %vm426_vm2, %v797_v51  ;;  %v5745_v55 = vld [vmem:[%s7797_s18 + $0x6c] sm:$0xf]  ;;  %4497 = vmatmul.mubr.bf16.gmra.mxu0 %v6108_v48  ;;  %4626 = vmatmul.mubr.bf16.gmra.mxu1 %v7146_v49 }
  0xef   : > { %v1118_v58 = vrot.slane %v984_v53, 5  ;;  %v5746_v59 = vld [vmem:[%s7797_s18 + $0x70] sm:$0xf]  ;;  %1285 = vst.msk [vmem:[#allocation2 + $0x24c] sm:$0xf] %vm426_vm2, %v5745_v55  ;;  %v1116_v62 = vsel %vm7920_vm6, %v5721_v46, %v1115_v54  ;;  %v1117_v63 = vrot.slane %v1115_v54, 4  ;;  %6777 = vmatprep.subr.bf16.mxu1 %v7174_v56 }
  0xf0   : > { %v5761_v60 = vld [vmem:[%s7797_s18 + $0xc] sm:$0xf]  ;;  %v7175_v61 = vld [vmem:[#allocation3 + $0x190] sm:$0xff]   ;;  %1286 = vst.msk [vmem:[#allocation2 + $0x270] sm:$0xf] %vm426_vm2, %v5746_v59 }
  0xf1   : > { %v5762_v0 = vld [vmem:[%s7797_s18 + $0x10] sm:$0xf]  ;;  %v5763_v1 = vld [vmem:[%s7797_s18 + $0x14] sm:$0x1]  ;;  %v1350_v2 = vshrl.u32 %v5761_v60, 16  ;;  %v1353_v3 = vshll.u32 %v5761_v60, 16  ;;  %6778 = vmatpush3.bf16.msra.mxu1 %v7175_v61  ;;  %v1119_v8 = vsel %vm7920_vm6, %v1117_v63, %v1118_v58 }
  0xf2   : > { %1217 = vst.msk [vmem:[#allocation2 + $0x248] sm:$0xf] %vm426_vm2, %v1116_v62  ;;  %v1359_v4 = vshll.u32 %v5762_v0, 16  ;;  %v1363_v5 = vshrl.u32 %v5762_v0, 16  ;;  %v1369_v6 = vshll.u32 %v5763_v1, 16  ;;  %v7187_v39 = vld [vmem:[#allocation3 + $0x1c8] sm:$0xff]  }
  0xf3   : > { %v5809_v7 = vld [vmem:[%s7797_s18 + $0xc] sm:$0xe]  ;;  %v1352_v9 = vrot.slane %v1350_v2, 4  ;;  %v5810_v10 = vld [vmem:[%s7797_s18 + $0x10] sm:$0xf]  ;;  %v1355_v12 = vrot.slane %v1353_v3, 5  ;;  %6779 = vmatprep.subr.bf16.mxu1 %v7187_v39 }
  0xf4   : > { %v5811_v11 = vld [vmem:[%s7797_s18 + $0x14] sm:$0x1]  ;;  %1218 = vst.msk [vmem:[#allocation2 + $0x26c] sm:$0xf] %vm426_vm2, %v1119_v8  ;;  %v1361_v13 = vrot.slane %v1359_v4, 5  ;;  %v1365_v14 = vrot.slane %v1363_v5, 4 }
  0xf5   : > { %v1371_v15 = vrot.slane %v1369_v6, 5  ;;  %v7151_v16 = vld [vmem:[#allocation2 + $0x204] ss:$36 sps:$4 sm:$0xff]   ;;  %v5857_v18 = vrot.slane %v5809_v7, 9  ;;  %v3015_v19 = vld [vmem:[#allocation2 + $0x318] sm:$0xff]  ;;  %v1356_v22 = vor.u32 %v1355_v12, %v1352_v9  ;;  %v1895_v24 = vrot.slane %v5810_v10, 5 }
  0xf6   : > { %v7153_v17 = vld [vmem:[#allocation2 + $0x200] ss:$36 sps:$4 sm:$0xff]   ;;  %v1366_v23 = vor.u32 %v1365_v14, %v1361_v13  ;;  %v1898_v25 = vrot.slane %v5811_v11, 5  ;;  %4633 = vmatprep.mubr.bf16.mxu1 %v7151_v16  ;;  %v985_v32 = vld [vmem:[%s7797_s18 + $0x6c] sm:$0xe] }
  0xf7   : > { %v3020_v20 = vld [vmem:[#allocation2 + $0x33c] sm:$0xff]  ;;  %v1357_v27 = vrot.slane %v1356_v22, 4  ;;  %v1896_v29 = vsel %vm7920_vm6, %v5857_v18, %v1895_v24  ;;  %v1897_v30 = vrot.slane %v1895_v24, 4  ;;  %4634 = vmatmul.mubr.bf16.gmra.mxu1 %v7153_v17  ;;  %v986_v36 = vld [vmem:[%s7797_s18 + $0x70] sm:$0xf]  ;;  %v5722_v38 = vrot.slane %v985_v32, 9 }
  0xf8   : > { %v7149_v21 = vld [vmem:[#allocation2 + $0x31c] ss:$36 sps:$4 sm:$0xff]   ;;  %v6117_v26 = vcombine.low %v3015_v19, %v3020_v20  ;;  %v1367_v28 = vrot.slane %v1366_v23, 4  ;;  %2037 = vst.msk [vmem:[#allocation2 + $0x14] sm:$0xf] %vm426_vm2, %v1896_v29  ;;  %v1122_v44 = vrot.slane %v986_v36, 5 }
  0xf9   : > { %4504 = vmatprep.mubr.bf16.mxu0 %v7149_v21  ;;  %v2986_v31 = vld [vmem:[#allocation2 + $0x248] sm:$0xff]  ;;  %v1362_v33 = vsel %vm7815_vm3, %v1357_v27, %v1361_v13  ;;  %v1899_v35 = vsel %vm7920_vm6, %v1897_v30, %v1898_v25  ;;  %v987_v37 = vld [vmem:[%s7797_s18 + $0x74] sm:$0x1]  ;;  %v5747_v47 = vld [vmem:[%s7797_s18 + $0x78] sm:$0xf] }
  0xfa   : > { %4505 = vmatmul.mubr.bf16.gmra.mxu0 %v6117_v26  ;;  %v1372_v34 = vsel %vm7815_vm3, %v1367_v28, %v1371_v15  ;;  %v7156_v43 = vld [vmem:[#allocation2 + $0x24c] ss:$36 sps:$4 sm:$0xff]   ;;  %1765 = vst.msk [vmem:[#allocation2 + $0x10] sm:$0xf] %vm426_vm2, %v1362_v33  ;;  %2038 = vst.msk [vmem:[#allocation2 + $0x38] sm:$0xf] %vm426_vm2, %v1899_v35  ;;  %v1123_v51 = vsel %vm7920_vm6, %v5722_v38, %v1122_v44 }
  0xfb   : > { %v2991_v41 = vld [vmem:[#allocation2 + $0x26c] sm:$0xff]  ;;  %1766 = vst.msk [vmem:[#allocation2 + $0x34] sm:$0xf] %vm426_vm2, %v1372_v34  ;;  %v1125_v45 = vrot.slane %v987_v37, 5  ;;  %v5748_v48 = vld [vmem:[%s7797_s18 + $0x7c] sm:$0xf]  ;;  %4641 = vmatprep.mubr.bf16.mxu1 %v7156_v43 }
  0xfc   : > { %v7188_v46 = vld [vmem:[#allocation3 + $0x188] sm:$0xff]   ;;  %v5764_v49 = vld [vmem:[%s7797_s18 + $0x18] sm:$0xf]  ;;  %v6092_v50 = vcombine.low %v2986_v31, %v2991_v41  ;;  %v1124_v52 = vrot.slane %v1122_v44, 4  ;;  %1287 = vst.msk [vmem:[#allocation2 + $0x294] sm:$0xf] %vm426_vm2, %v5747_v47 }
  0xfd   : > { %1288 = vst.msk [vmem:[#allocation2 + $0x2b8] sm:$0xf] %vm426_vm2, %v5748_v48  ;;  %v5765_v53 = vld [vmem:[%s7797_s18 + $0x1c] sm:$0xf]  ;;  %v5766_v54 = vld [vmem:[%s7797_s18 + $0x20] sm:$0x1]  ;;  %6780 = vmatpush3.bf16.msra.mxu1 %v7188_v46 }
  0xfe   : > { %v1374_v55 = vshrl.u32 %v5764_v49, 16  ;;  %1219 = vst.msk [vmem:[#allocation2 + $0x290] sm:$0xf] %vm426_vm2, %v1123_v51  ;;  %v1377_v56 = vshll.u32 %v5764_v49, 16  ;;  %v1383_v58 = vshll.u32 %v5765_v53, 16  ;;  %v1387_v59 = vshrl.u32 %v5765_v53, 16 }
  0xff   : > { %v1393_v60 = vshll.u32 %v5766_v54, 16  ;;  %v5812_v61 = vld [vmem:[%s7797_s18 + $0x18] sm:$0xe]  ;;  %v1126_v62 = vsel %vm7920_vm6, %v1124_v52, %v1125_v45  ;;  %v5813_v0 = vld [vmem:[%s7797_s18 + $0x1c] sm:$0xf]  ;;  %4642 = vmatmul.mubr.bf16.gmra.mxu1 %v6092_v50  ;;  %v7176_v27 = vld [vmem:[#allocation3 + $0x230] sm:$0xff]  }
 0x100   : > { %v1376_v63 = vrot.slane %v1374_v55, 4  ;;  %v5814_v1 = vld [vmem:[%s7797_s18 + $0x20] sm:$0x1]  ;;  %v5858_v2 = vrot.slane %v5812_v61, 9  ;;  %1220 = vst.msk [vmem:[#allocation2 + $0x2b4] sm:$0xf] %vm426_vm2, %v1126_v62 }
 0x101   : > { %v1379_v3 = vrot.slane %v1377_v56, 5  ;;  %v1385_v4 = vrot.slane %v1383_v58, 5  ;;  %v1389_v5 = vrot.slane %v1387_v59, 4  ;;  %v1395_v6 = vrot.slane %v1393_v60, 5  ;;  %v988_v7 = vld [vmem:[%s7797_s18 + $0x78] sm:$0xe] }
 0x102   : > { %v1902_v8 = vrot.slane %v5813_v0, 5  ;;  %v1905_v9 = vrot.slane %v5814_v1, 5  ;;  %v989_v10 = vld [vmem:[%s7797_s18 + $0x7c] sm:$0xf]  ;;  %v990_v11 = vld [vmem:[%s7797_s18 + $0x80] sm:$0x1] }
 0x103   : > { %v7158_v12 = vld [vmem:[#allocation2 + $0x10] ss:$36 sps:$4 sm:$0xff]   ;;  %v1380_v13 = vor.u32 %v1379_v3, %v1376_v63  ;;  %v1390_v14 = vor.u32 %v1389_v5, %v1385_v4  ;;  %v5723_v15 = vrot.slane %v988_v7, 9  ;;  %v1129_v16 = vrot.slane %v989_v10, 5  ;;  %v5749_v21 = vld [vmem:[%s7797_s18 + $0x84] sm:$0xf] }
 0x104   : > { %v7160_v17 = vld [vmem:[#allocation2 + $0x14] ss:$36 sps:$4 sm:$0xff]   ;;  %v1903_v18 = vsel %vm7920_vm6, %v5858_v2, %v1902_v8  ;;  %v1904_v19 = vrot.slane %v1902_v8, 4  ;;  %v1132_v20 = vrot.slane %v990_v11, 5  ;;  %v5750_v26 = vld [vmem:[%s7797_s18 + $0x88] sm:$0xf] }
 0x105   : > { %v1381_v22 = vrot.slane %v1380_v13, 4  ;;  %v1391_v23 = vrot.slane %v1390_v14, 4  ;;  %2039 = vst.msk [vmem:[#allocation2 + $0x5c] sm:$0xf] %vm426_vm2, %v1903_v18  ;;  %v1130_v24 = vsel %vm7920_vm6, %v5723_v15, %v1129_v16  ;;  %v1131_v25 = vrot.slane %v1129_v16, 4  ;;  %4738 = vmatprep.mubr.bf16.mxu0 %v7160_v17  ;;  %v2996_v28 = vld [vmem:[#allocation2 + $0x290] sm:$0xff] }
 0x106   : > { %1289 = vst.msk [vmem:[#allocation2 + $0x2dc] sm:$0xf] %vm426_vm2, %v5749_v21  ;;  %v1906_v29 = vsel %vm7920_vm6, %v1904_v19, %v1905_v9  ;;  %1221 = vst.msk [vmem:[#allocation2 + $0x2d8] sm:$0xf] %vm426_vm2, %v1130_v24  ;;  %v5767_v30 = vld [vmem:[%s7797_s18 + $0x24] sm:$0xf]  ;;  %4739 = vmatmul.mubr.bf16.vlgmr.msra.gmra.mxu0 %v7158_v12 }
 0x107   : > { %1290 = vst.msk [vmem:[#allocation2 + $0x300] sm:$0xf] %vm426_vm2, %v5750_v26  ;;  %v5768_v31 = vld [vmem:[%s7797_s18 + $0x28] sm:$0xf]  ;;  %v1386_v32 = vsel %vm7815_vm3, %v1381_v22, %v1385_v4  ;;  %v1396_v33 = vsel %vm7815_vm3, %v1391_v23, %v1395_v6  ;;  %2040 = vst.msk [vmem:[#allocation2 + $0x80] sm:$0xf] %vm426_vm2, %v1906_v29  ;;  %v1133_v34 = vsel %vm7920_vm6, %v1131_v25, %v1132_v20  ;;  %6904 = vmatpush3.bf16.msra.mxu0 %v8115_v42 }
 0x108   : > { %v5769_v35 = vld [vmem:[%s7797_s18 + $0x2c] sm:$0x1]  ;;  %v1398_v36 = vshrl.u32 %v5767_v30, 16  ;;  %v5815_v37 = vld [vmem:[%s7797_s18 + $0x24] sm:$0xe]  ;;  %v3001_v41 = vld [vmem:[#allocation2 + $0x2b4] sm:$0xff]  ;;  %6905 = vmatprep.subr.bf16.mxu0 %v7176_v27 }
 0x109   : > { %v7189_v38 = vld [vmem:[#allocation3 + $0x228] sm:$0xff]   ;;  %v7200_v39 = vld [vmem:[#allocation3 + $0x1c0] sm:$0xff]   ;;  %v7164_v43 = vld [vmem:[#allocation2 + $0x294] ss:$36 sps:$4 sm:$0xff]   ;;  %1767 = vst.msk [vmem:[#allocation2 + $0x58] sm:$0xf] %vm426_vm2, %v1386_v32  ;;  %v6101_v47 = vcombine.low %v2996_v28, %v3001_v41 }
 0x10a   : > { %1768 = vst.msk [vmem:[#allocation2 + $0x7c] sm:$0xf] %vm426_vm2, %v1396_v33  ;;  %1222 = vst.msk [vmem:[#allocation2 + $0x2fc] sm:$0xf] %vm426_vm2, %v1133_v34  ;;  %v1401_v44 = vshll.u32 %v5767_v30, 16  ;;  %v1407_v45 = vshll.u32 %v5768_v31, 16  ;;  %6781 = vmatprep.subr.bf16.mxu1 %v7200_v39  ;;  %4649 = vmatprep.mubr.bf16.mxu1 %v7164_v43 }
 0x10b   : > { %v1411_v46 = vshrl.u32 %v5768_v31, 16  ;;  %v1400_v48 = vrot.slane %v1398_v36, 4  ;;  %v1417_v49 = vshll.u32 %v5769_v35, 16  ;;  %v5816_v50 = vld [vmem:[%s7797_s18 + $0x28] sm:$0xf]  ;;  %v5859_v54 = vrot.slane %v5815_v37, 9  ;;  %4650 = vmatmul.mubr.bf16.gmra.mxu1 %v6101_v47  ;;  %6906 = vmatpush3.bf16.msra.mxu0 %v7176_v27 }
 0x10c   : > { %v5817_v51 = vld [vmem:[%s7797_s18 + $0x2c] sm:$0x1]  ;;  %v1403_v42 = vrot.slane %v1401_v44, 5  ;;  %v1409_v52 = vrot.slane %v1407_v45, 5  ;;  %v1909_v56 = vrot.slane %v5816_v50, 5  ;;  %v7201_v59 = vld [vmem:[#allocation3 + $0x180] sm:$0xff]   ;;  %6907 = vmatprep.subr.bf16.mxu0 %v7189_v38 }
 0x10d   : > { %v1413_v53 = vrot.slane %v1411_v46, 4  ;;  %v1419_v55 = vrot.slane %v1417_v49, 5  ;;  %v1912_v58 = vrot.slane %v5817_v51, 5  ;;  %v3006_v62 = vld [vmem:[#allocation2 + $0x2d8] sm:$0xff]  ;;  %v991_v1 = vld [vmem:[%s7797_s18 + $0x84] sm:$0xe]  ;;  %6782 = vmatpush3.bf16.msra.mxu1 %v7201_v59 }
 0x10e   : > { %v1404_v60 = vor.u32 %v1403_v42, %v1400_v48  ;;  %v1910_v63 = vsel %vm7920_vm6, %v5859_v54, %v1909_v56  ;;  %v1911_v0 = vrot.slane %v1909_v56, 4  ;;  %v992_v4 = vld [vmem:[%s7797_s18 + $0x88] sm:$0xf]  ;;  %v993_v5 = vld [vmem:[%s7797_s18 + $0x8c] sm:$0x1]  ;;  %v5724_v8 = vrot.slane %v991_v1, 9 }
 0x10f   : > { %v1414_v61 = vor.u32 %v1413_v53, %v1409_v52  ;;  %2041 = vst.msk [vmem:[#allocation2 + $0xa4] sm:$0xf] %vm426_vm2, %v1910_v63  ;;  %v7166_v6 = vld [vmem:[#allocation2 + $0x5c] ss:$36 sps:$4 sm:$0xff]   ;;  %v1136_v9 = vrot.slane %v992_v4, 5  ;;  %v1139_v15 = vrot.slane %v993_v5, 5  ;;  %6908 = vmatpush3.bf16.msra.mxu0 %v7189_v38 }
 0x110   : > { %v1405_v2 = vrot.slane %v1404_v60, 4  ;;  %v1913_v7 = vsel %vm7920_vm6, %v1911_v0, %v1912_v58  ;;  %v7169_v12 = vld [vmem:[#allocation2 + $0x2dc] ss:$36 sps:$4 sm:$0xff]   ;;  %4746 = vmatprep.mubr.bf16.mxu0 %v7166_v6  ;;  %v5751_v19 = vld [vmem:[%s7797_s18 + $0x90] sm:$0xf] }
 0x111   : > { %v1415_v3 = vrot.slane %v1414_v61, 4  ;;  %v7168_v10 = vld [vmem:[#allocation2 + $0x58] ss:$36 sps:$4 sm:$0xff]   ;;  %2042 = vst.msk [vmem:[#allocation2 + $0xc8] sm:$0xf] %vm426_vm2, %v1913_v7  ;;  %v1137_v17 = vsel %vm7920_vm6, %v5724_v8, %v1136_v9  ;;  %v1138_v18 = vrot.slane %v1136_v9, 4  ;;  %4657 = vmatprep.mubr.bf16.mxu1 %v7169_v12 }
 0x112   : > { %v3011_v11 = vld [vmem:[#allocation2 + $0x2fc] sm:$0xff]  ;;  %v1410_v13 = vsel %vm7815_vm3, %v1405_v2, %v1409_v52  ;;  %v5752_v20 = vld [vmem:[%s7797_s18 + $0x94] sm:$0xf]  ;;  %4747 = vmatmul.mubr.bf16.gmra.mxu0 %v7168_v10  ;;  %1223 = vst.msk [vmem:[#allocation2 + $0x320] sm:$0xf] %vm426_vm2, %v1137_v17 }
 0x113   : > { %v1420_v14 = vsel %vm7815_vm3, %v1415_v3, %v1419_v55  ;;  %1769 = vst.msk [vmem:[#allocation2 + $0xa0] sm:$0xf] %vm426_vm2, %v1410_v13  ;;  %v6110_v16 = vcombine.low %v3006_v62, %v3011_v11  ;;  %v7202_v21 = vld [vmem:[#allocation3 + $0x220] sm:$0xff]   ;;  %1291 = vst.msk [vmem:[#allocation2 + $0x324] sm:$0xf] %vm426_vm2, %v5751_v19  ;;  %v1140_v25 = vsel %vm7920_vm6, %v1138_v18, %v1139_v15  ;;  %v7213_v30 = vld [vmem:[#allocation3 + $0x218] sm:$0xff]  }
 0x114   : > { %1770 = vst.msk [vmem:[#allocation2 + $0xc4] sm:$0xf] %vm426_vm2, %v1420_v14  ;;  %1292 = vst.msk [vmem:[#allocation2 + $0x348] sm:$0xf] %vm426_vm2, %v5752_v20  ;;  %v5770_v22 = vld [vmem:[%s7797_s18 + $0x30] sm:$0xf]  ;;  %6909 = vmatprep.subr.bf16.mxu0 %v7202_v21 }
 0x115   : > { %v5771_v23 = vld [vmem:[%s7797_s18 + $0x34] sm:$0xf]  ;;  %v5772_v24 = vld [vmem:[%s7797_s18 + $0x38] sm:$0x1]  ;;  %4658 = vmatmul.mubr.bf16.gmra.mxu1 %v6110_v16  ;;  %v1422_v26 = vshrl.u32 %v5770_v22, 16  ;;  %v1425_v27 = vshll.u32 %v5770_v22, 16  ;;  %6910 = vmatpush3.bf16.msra.mxu0 %v7202_v21 }
 0x116   : > { %v1431_v28 = vshll.u32 %v5771_v23, 16  ;;  %v5818_v29 = vld [vmem:[%s7797_s18 + $0x30] sm:$0xe]  ;;  %1224 = vst.msk [vmem:[#allocation2 + $0x344] sm:$0xf] %vm426_vm2, %v1140_v25  ;;  %v1435_v31 = vshrl.u32 %v5771_v23, 16  ;;  %6911 = vmatprep.subr.bf16.mxu0 %v7213_v30 }
 0x117   : > { %v1441_v32 = vshll.u32 %v5772_v24, 16  ;;  %v5819_v33 = vld [vmem:[%s7797_s18 + $0x34] sm:$0xf]  ;;  %v5820_v34 = vld [vmem:[%s7797_s18 + $0x38] sm:$0x1]  ;;  %v1424_v35 = vrot.slane %v1422_v26, 4 }
 0x118   : > { %v1427_v36 = vrot.slane %v1425_v27, 5  ;;  %v1433_v37 = vrot.slane %v1431_v28, 5  ;;  %v5860_v38 = vrot.slane %v5818_v29, 9  ;;  %v994_v39 = vld [vmem:[%s7797_s18 + $0x90] sm:$0xe]  ;;  %v1437_v41 = vrot.slane %v1435_v31, 4 }
 0x119   : > { %v1443_v43 = vrot.slane %v1441_v32, 5  ;;  %v1916_v44 = vrot.slane %v5819_v33, 5  ;;  %v1919_v45 = vrot.slane %v5820_v34, 5  ;;  %v995_v46 = vld [vmem:[%s7797_s18 + $0x94] sm:$0xf]  ;;  %v5725_v49 = vrot.slane %v994_v39, 9  ;;  %6912 = vmatpush3.bf16.msra.mxu0 %v7213_v30 }
 0x11a   : > { %v1428_v47 = vor.u32 %v1427_v36, %v1424_v35  ;;  %v996_v48 = vld [vmem:[%s7797_s18 + $0x98] sm:$0x1]  ;;  %v1143_v50 = vrot.slane %v995_v46, 5  ;;  %v5753_v51 = vld [vmem:[%s7797_s18 + $0x9c] sm:$0xf]  ;;  %v1438_v52 = vor.u32 %v1437_v41, %v1433_v37  ;;  %v3016_v58 = vld [vmem:[#allocation2 + $0x320] sm:$0xff] }
 0x11b   : > { %v7171_v42 = vld [vmem:[#allocation2 + $0xa4] ss:$36 sps:$4 sm:$0xff]   ;;  %v1917_v53 = vsel %vm7920_vm6, %v5860_v38, %v1916_v44  ;;  %v1918_v54 = vrot.slane %v1916_v44, 4  ;;  %v1146_v55 = vrot.slane %v996_v48, 5  ;;  %1293 = vst.msk [vmem:[#allocation2 + $0x36c] sm:$0xf] %vm426_vm2, %v5753_v51 }
 0x11c   : > { %v7173_v56 = vld [vmem:[#allocation2 + $0xa0] ss:$36 sps:$4 sm:$0xff]   ;;  %v1429_v59 = vrot.slane %v1428_v47, 4  ;;  %2043 = vst.msk [vmem:[#allocation2 + $0xec] sm:$0xf] %vm426_vm2, %v1917_v53  ;;  %v1144_v60 = vsel %vm7920_vm6, %v5725_v49, %v1143_v50  ;;  %v1145_v61 = vrot.slane %v1143_v50, 4  ;;  %4754 = vmatprep.mubr.bf16.mxu0 %v7171_v42 }
 0x11d   : > { %v7224_v62 = vld [vmem:[#allocation3 + $0x210] sm:$0xff]   ;;  %v1439_v63 = vrot.slane %v1438_v52, 4  ;;  %v1920_v0 = vsel %vm7920_vm6, %v1918_v54, %v1919_v45  ;;  %1225 = vst.msk [vmem:[#allocation2 + $0x368] sm:$0xf] %vm426_vm2, %v1144_v60  ;;  %v5754_v1 = vld [vmem:[%s7797_s18 + $0xa0] sm:$0xf]  ;;  %4755 = vmatmul.mubr.bf16.gmra.mxu0 %v7173_v56 }
 0x11e   : > { %v5773_v2 = vld [vmem:[%s7797_s18 + $0x3c] sm:$0xf]  ;;  %v7235_v3 = vld [vmem:[#allocation3 + $0x208] sm:$0xff]   ;;  %v1434_v6 = vsel %vm7815_vm3, %v1429_v59, %v1433_v37  ;;  %2044 = vst.msk [vmem:[#allocation2 + $0x110] sm:$0xf] %vm426_vm2, %v1920_v0  ;;  %v1147_v7 = vsel %vm7920_vm6, %v1145_v61, %v1146_v55  ;;  %6913 = vmatprep.subr.bf16.mxu0 %v7224_v62  ;;  %v7246_v30 = vld [vmem:[#allocation3 + $0x200] sm:$0xff]  }
 0x11f   : > { %v3021_v4 = vld [vmem:[#allocation2 + $0x344] sm:$0xff]  ;;  %1294 = vst.msk [vmem:[#allocation2 + $0x390] sm:$0xf] %vm426_vm2, %v5754_v1  ;;  %v5774_v8 = vld [vmem:[%s7797_s18 + $0x40] sm:$0xf]  ;;  %v1446_v9 = vshrl.u32 %v5773_v2, 16  ;;  %v1444_v10 = vsel %vm7815_vm3, %v1439_v63, %v1443_v43  ;;  %6914 = vmatpush3.bf16.msra.mxu0 %v7224_v62 }
 0x120   : > { %v7177_v5 = vld [vmem:[#allocation2 + $0x324] ss:$36 sps:$4 sm:$0xff]   ;;  %1771 = vst.msk [vmem:[#allocation2 + $0xe8] sm:$0xf] %vm426_vm2, %v1434_v6  ;;  %v6119_v11 = vcombine.low %v3016_v58, %v3021_v4  ;;  %1226 = vst.msk [vmem:[#allocation2 + $0x38c] sm:$0xf] %vm426_vm2, %v1147_v7  ;;  %6915 = vmatprep.subr.bf16.mxu0 %v7235_v3 }
 0x121   : > { %v5775_v12 = vld [vmem:[%s7797_s18 + $0x44] sm:$0x1]  ;;  %v1449_v13 = vshll.u32 %v5773_v2, 16  ;;  %v1455_v14 = vshll.u32 %v5774_v8, 16  ;;  %v5821_v15 = vld [vmem:[%s7797_s18 + $0x3c] sm:$0xe]  ;;  %4665 = vmatprep.mubr.bf16.mxu1 %v7177_v5 }
 0x122   : > { %1772 = vst.msk [vmem:[#allocation2 + $0x10c] sm:$0xf] %vm426_vm2, %v1444_v10  ;;  %v1448_v16 = vrot.slane %v1446_v9, 4  ;;  %v1459_v17 = vshrl.u32 %v5774_v8, 16  ;;  %v1465_v18 = vshll.u32 %v5775_v12, 16  ;;  %v5861_v20 = vrot.slane %v5821_v15, 9  ;;  %4666 = vmatmul.mubr.bf16.gmra.mxu1 %v6119_v11 }
 0x123   : > { %v5822_v19 = vld [vmem:[%s7797_s18 + $0x40] sm:$0xf]  ;;  %v1451_v21 = vrot.slane %v1449_v13, 5  ;;  %v1457_v22 = vrot.slane %v1455_v14, 5  ;;  %v5823_v23 = vld [vmem:[%s7797_s18 + $0x44] sm:$0x1]  ;;  %6916 = vmatpush3.bf16.msra.mxu0 %v7235_v3 }
 0x124   : > { %v1923_v24 = vrot.slane %v5822_v19, 5  ;;  %v1461_v25 = vrot.slane %v1459_v17, 4  ;;  %v1926_v26 = vrot.slane %v5823_v23, 5  ;;  %v3026_v31 = vld [vmem:[#allocation2 + $0x368] sm:$0xff]  ;;  %v1467_v33 = vrot.slane %v1465_v18, 5  ;;  %6917 = vmatprep.subr.bf16.mxu0 %v7246_v30 }
 0x125   : > { %v1452_v27 = vor.u32 %v1451_v21, %v1448_v16  ;;  %v997_v36 = vld [vmem:[%s7797_s18 + $0x9c] sm:$0xe]  ;;  %v7179_v41 = vld [vmem:[#allocation2 + $0xec] ss:$36 sps:$4 sm:$0xff]   ;;  %v998_v48 = vld [vmem:[%s7797_s18 + $0xa0] sm:$0xf] }
 0x126   : > { %v1924_v28 = vsel %vm7920_vm6, %v5861_v20, %v1923_v24  ;;  %v1925_v29 = vrot.slane %v1923_v24, 4  ;;  %v1462_v32 = vor.u32 %v1461_v25, %v1457_v22  ;;  %v7182_v38 = vld [vmem:[#allocation2 + $0x36c] ss:$36 sps:$4 sm:$0xff]   ;;  %v5726_v46 = vrot.slane %v997_v36, 9  ;;  %v999_v49 = vld [vmem:[%s7797_s18 + $0xa4] sm:$0x1]  ;;  %4762 = vmatprep.mubr.bf16.mxu0 %v7179_v41 }
 0x127   : > { %2045 = vst.msk [vmem:[#allocation2 + $0x134] sm:$0xf] %vm426_vm2, %v1924_v28  ;;  %v1453_v34 = vrot.slane %v1452_v27, 4  ;;  %v3031_v37 = vld [vmem:[#allocation2 + $0x38c] sm:$0xff]  ;;  %6918 = vmatpush3.bf16.msra.mxu0 %v7246_v30  ;;  %4673 = vmatprep.mubr.bf16.mxu1 %v7182_v38  ;;  %v5755_v50 = vld [vmem:[%s7797_s18 + $0xa8] sm:$0xf] }
 0x128   : > { %v1927_v35 = vsel %vm7920_vm6, %v1925_v29, %v1926_v26  ;;  %v1463_v39 = vrot.slane %v1462_v32, 4  ;;  %v6128_v45 = vcombine.low %v3026_v31, %v3031_v37  ;;  %v1150_v51 = vrot.slane %v998_v48, 5  ;;  %v5756_v52 = vld [vmem:[%s7797_s18 + $0xac] sm:$0xf]  ;;  %1295 = vst.msk [vmem:[#allocation2 + $0x3b4] sm:$0xf] %vm426_vm2, %v5755_v50 }
 0x129   : > { %2046 = vst.msk [vmem:[#allocation2 + $0x158] sm:$0xf] %vm426_vm2, %v1927_v35  ;;  %v7181_v43 = vld [vmem:[#allocation2 + $0xe8] ss:$36 sps:$4 sm:$0xff]   ;;  %v1458_v44 = vsel %vm7815_vm3, %v1453_v34, %v1457_v22  ;;  %v1153_v42 = vrot.slane %v999_v49, 5 }
 0x12a   : > { %v1468_v47 = vsel %vm7815_vm3, %v1463_v39, %v1467_v33  ;;  %1773 = vst.msk [vmem:[#allocation2 + $0x130] sm:$0xf] %vm426_vm2, %v1458_v44  ;;  %4674 = vmatmul.mubr.bf16.gmra.mxu1 %v6128_v45  ;;  %v5776_v53 = vld [vmem:[%s7797_s18 + $0x48] sm:$0xf]  ;;  %4763 = vmatmul.mubr.bf16.gmra.mxu0 %v7181_v43  ;;  %1296 = vst.msk [vmem:[#allocation2 + $0x3d8] sm:$0xf] %vm426_vm2, %v5756_v52  ;;  %v1151_v59 = vsel %vm7920_vm6, %v5726_v46, %v1150_v51 }
 0x12b   : > { %1774 = vst.msk [vmem:[#allocation2 + $0x154] sm:$0xf] %vm426_vm2, %v1468_v47  ;;  %v5777_v54 = vld [vmem:[%s7797_s18 + $0x4c] sm:$0xf]  ;;  %v5778_v55 = vld [vmem:[%s7797_s18 + $0x50] sm:$0x1] }
 0x12c   : > { %v1470_v56 = vshrl.u32 %v5776_v53, 16  ;;  %v1473_v58 = vshll.u32 %v5776_v53, 16  ;;  %v1152_v60 = vrot.slane %v1150_v51, 4  ;;  %v1479_v61 = vshll.u32 %v5777_v54, 16  ;;  %v5824_v63 = vld [vmem:[%s7797_s18 + $0x48] sm:$0xe] }
 0x12d   : > { %v1483_v62 = vshrl.u32 %v5777_v54, 16  ;;  %1227 = vst.msk [vmem:[#allocation2 + $0x3b0] sm:$0xf] %vm426_vm2, %v1151_v59  ;;  %v1489_v2 = vshll.u32 %v5778_v55, 16  ;;  %v5825_v3 = vld [vmem:[%s7797_s18 + $0x4c] sm:$0xf] }
 0x12e   : > { %v1472_v0 = vrot.slane %v1470_v56, 4  ;;  %v1475_v1 = vrot.slane %v1473_v58, 5  ;;  %v5862_v4 = vrot.slane %v5824_v63, 9  ;;  %v1154_v5 = vsel %vm7920_vm6, %v1152_v60, %v1153_v42  ;;  %v5826_v8 = vld [vmem:[%s7797_s18 + $0x50] sm:$0x1] }
 0x12f   : > { %v1481_v6 = vrot.slane %v1479_v61, 5  ;;  %v1485_v7 = vrot.slane %v1483_v62, 4  ;;  %v1930_v9 = vrot.slane %v5825_v3, 5  ;;  %1228 = vst.msk [vmem:[#allocation2 + $0x3d4] sm:$0xf] %vm426_vm2, %v1154_v5  ;;  %v1491_v11 = vrot.slane %v1489_v2, 5 }
 0x130   : > { %v1476_v10 = vor.u32 %v1475_v1, %v1472_v0  ;;  %v1933_v12 = vrot.slane %v5826_v8, 5  ;;  %v1000_v13 = vld [vmem:[%s7797_s18 + $0xa8] sm:$0xe]  ;;  %v1001_v14 = vld [vmem:[%s7797_s18 + $0xac] sm:$0xf] }
 0x131   : > { %v1486_v15 = vor.u32 %v1485_v7, %v1481_v6  ;;  %v1931_v16 = vsel %vm7920_vm6, %v5862_v4, %v1930_v9  ;;  %v1932_v17 = vrot.slane %v1930_v9, 4  ;;  %v1002_v18 = vld [vmem:[%s7797_s18 + $0xb0] sm:$0x1]  ;;  %v5727_v19 = vrot.slane %v1000_v13, 9  ;;  %v7184_v20 = vld [vmem:[#allocation2 + $0x134] ss:$36 sps:$4 sm:$0xff]  }
 0x132   : > { %v7186_v21 = vld [vmem:[#allocation2 + $0x130] ss:$36 sps:$4 sm:$0xff]   ;;  %v1477_v22 = vrot.slane %v1476_v10, 4  ;;  %2047 = vst.msk [vmem:[#allocation2 + $0x17c] sm:$0xf] %vm426_vm2, %v1931_v16  ;;  %v1157_v25 = vrot.slane %v1001_v14, 5  ;;  %4770 = vmatprep.mubr.bf16.mxu0 %v7184_v20 }
 0x133   : > { %v1487_v23 = vrot.slane %v1486_v15, 4  ;;  %v1934_v24 = vsel %vm7920_vm6, %v1932_v17, %v1933_v12  ;;  %v1160_v26 = vrot.slane %v1002_v18, 5  ;;  %v5757_v27 = vld [vmem:[%s7797_s18 + $0xb4] sm:$0xf]  ;;  %v5758_v29 = vld [vmem:[%s7797_s18 + $0xb8] sm:$0xf]  ;;  %4771 = vmatmul.mubr.bf16.gmra.mxu0 %v7186_v21 }
 0x134   : > { %v1482_v28 = vsel %vm7815_vm3, %v1477_v22, %v1481_v6  ;;  %2048 = vst.msk [vmem:[#allocation2 + $0x1a0] sm:$0xf] %vm426_vm2, %v1934_v24  ;;  %1297 = vst.msk [vmem:[#allocation2 + $0x3fc] sm:$0xf] %vm426_vm2, %v5757_v27  ;;  %v5779_v30 = vld [vmem:[%s7797_s18 + $0x54] sm:$0xf]  ;;  %v1158_v34 = vsel %vm7920_vm6, %v5727_v19, %v1157_v25 }
 0x135   : > { %v5780_v31 = vld [vmem:[%s7797_s18 + $0x58] sm:$0xf]  ;;  %v3036_v32 = vld [vmem:[#allocation2 + $0x3b0] sm:$0xff]  ;;  %v1492_v33 = vsel %vm7815_vm3, %v1487_v23, %v1491_v11  ;;  %1775 = vst.msk [vmem:[#allocation2 + $0x178] sm:$0xf] %vm426_vm2, %v1482_v28  ;;  %v1159_v35 = vrot.slane %v1157_v25, 4 }
 0x136   : > { %1298 = vst.msk [vmem:[#allocation2 + $0x420] sm:$0xf] %vm426_vm2, %v5758_v29  ;;  %v5781_v36 = vld [vmem:[%s7797_s18 + $0x5c] sm:$0x1]  ;;  %v1494_v37 = vshrl.u32 %v5779_v30, 16  ;;  %v1497_v38 = vshll.u32 %v5779_v30, 16 }
 0x137   : > { %1776 = vst.msk [vmem:[#allocation2 + $0x19c] sm:$0xf] %vm426_vm2, %v1492_v33  ;;  %1229 = vst.msk [vmem:[#allocation2 + $0x3f8] sm:$0xf] %vm426_vm2, %v1158_v34  ;;  %v1503_v39 = vshll.u32 %v5780_v31, 16  ;;  %v1507_v41 = vshrl.u32 %v5780_v31, 16  ;;  %v1161_v47 = vsel %vm7920_vm6, %v1159_v35, %v1160_v26 }
 0x138   : > { %v1513_v43 = vshll.u32 %v5781_v36, 16  ;;  %v5827_v44 = vld [vmem:[%s7797_s18 + $0x54] sm:$0xe]  ;;  %v1496_v48 = vrot.slane %v1494_v37, 4  ;;  %v5828_v49 = vld [vmem:[%s7797_s18 + $0x58] sm:$0xf] }
 0x139   : > { %v3041_v45 = vld [vmem:[#allocation2 + $0x3d4] sm:$0xff]  ;;  %1230 = vst.msk [vmem:[#allocation2 + $0x41c] sm:$0xf] %vm426_vm2, %v1161_v47  ;;  %v1499_v51 = vrot.slane %v1497_v38, 5  ;;  %v1505_v42 = vrot.slane %v1503_v39, 5  ;;  %v1509_v52 = vrot.slane %v1507_v41, 4 }
 0x13a   : > { %v7190_v46 = vld [vmem:[#allocation2 + $0x3b4] ss:$36 sps:$4 sm:$0xff]   ;;  %v6137_v50 = vcombine.low %v3036_v32, %v3041_v45  ;;  %v5829_v53 = vld [vmem:[%s7797_s18 + $0x5c] sm:$0x1]  ;;  %v1515_v54 = vrot.slane %v1513_v43, 5  ;;  %v5863_v55 = vrot.slane %v5827_v44, 9 }
 0x13b   : > { %4681 = vmatprep.mubr.bf16.mxu1 %v7190_v46  ;;  %v1937_v56 = vrot.slane %v5828_v49, 5  ;;  %v1940_v58 = vrot.slane %v5829_v53, 5  ;;  %v1500_v59 = vor.u32 %v1499_v51, %v1496_v48  ;;  %v1510_v60 = vor.u32 %v1509_v52, %v1505_v42  ;;  %v1003_v1 = vld [vmem:[%s7797_s18 + $0xb4] sm:$0xe]  ;;  %v7192_v2 = vld [vmem:[#allocation2 + $0x17c] ss:$36 sps:$4 sm:$0xff]  }
 0x13c   : > { %4682 = vmatmul.mubr.bf16.gmra.mxu1 %v6137_v50  ;;  %v5728_v5 = vrot.slane %v1003_v1, 9  ;;  %v1004_v9 = vld [vmem:[%s7797_s18 + $0xb8] sm:$0xf]  ;;  %v1005_v10 = vld [vmem:[%s7797_s18 + $0xbc] sm:$0x1]  ;;  %4778 = vmatprep.mubr.bf16.mxu0 %v7192_v2 }
 0x13d   : > { %v1938_v61 = vsel %vm7920_vm6, %v5863_v55, %v1937_v56  ;;  %v1939_v62 = vrot.slane %v1937_v56, 4  ;;  %v1501_v63 = vrot.slane %v1500_v59, 4  ;;  %v1511_v0 = vrot.slane %v1510_v60, 4  ;;  %v7195_v12 = vld [vmem:[#allocation2 + $0x3fc] ss:$36 sps:$4 sm:$0xff]  }
 0x13e   : > { %2049 = vst.msk [vmem:[#allocation2 + $0x1c4] sm:$0xf] %vm426_vm2, %v1938_v61  ;;  %v7194_v3 = vld [vmem:[#allocation2 + $0x178] ss:$36 sps:$4 sm:$0xff]   ;;  %v1164_v13 = vrot.slane %v1004_v9, 5  ;;  %v1167_v14 = vrot.slane %v1005_v10, 5  ;;  %4689 = vmatprep.mubr.bf16.mxu1 %v7195_v12 }
 0x13f   : > { %v1941_v4 = vsel %vm7920_vm6, %v1939_v62, %v1940_v58  ;;  %v3046_v6 = vld [vmem:[#allocation2 + $0x3f8] sm:$0xff]  ;;  %v1506_v7 = vsel %vm7815_vm3, %v1501_v63, %v1505_v42  ;;  %v1516_v8 = vsel %vm7815_vm3, %v1511_v0, %v1515_v54  ;;  %4779 = vmatmul.mubr.bf16.gmra.mxu0 %v7194_v3  ;;  %v5759_v16 = vld [vmem:[%s7797_s18 + $0xc0] sm:$0xf]  ;;  %v5760_v17 = vld [vmem:[%s7797_s18 + $0xc4] sm:$0xf] }
 0x140   : > { %2050 = vst.msk [vmem:[#allocation2 + $0x1e8] sm:$0xf] %vm426_vm2, %v1941_v4  ;;  %v3051_v11 = vld [vmem:[#allocation2 + $0x41c] sm:$0xff]  ;;  %1777 = vst.msk [vmem:[#allocation2 + $0x1c0] sm:$0xf] %vm426_vm2, %v1506_v7  ;;  %v1165_v19 = vsel %vm7920_vm6, %v5728_v5, %v1164_v13  ;;  %v1166_v20 = vrot.slane %v1164_v13, 4 }
 0x141   : > { %1778 = vst.msk [vmem:[#allocation2 + $0x1e4] sm:$0xf] %vm426_vm2, %v1516_v8  ;;  %v6146_v15 = vcombine.low %v3046_v6, %v3051_v11  ;;  %v5782_v18 = vld [vmem:[%s7797_s18 + $0x60] sm:$0xf]  ;;  %1299 = vst.msk [vmem:[#allocation2 + $0x444] sm:$0xf] %vm426_vm2, %v5759_v16 }
 0x142   : > { %1300 = vst.msk [vmem:[#allocation2 + $0x468] sm:$0xf] %vm426_vm2, %v5760_v17  ;;  %v5783_v21 = vld [vmem:[%s7797_s18 + $0x64] sm:$0xf]  ;;  %v5784_v22 = vld [vmem:[%s7797_s18 + $0x68] sm:$0x1]  ;;  %v1168_v29 = vsel %vm7920_vm6, %v1166_v20, %v1167_v14 }
 0x143   : > { %v1518_v23 = vshrl.u32 %v5782_v18, 16  ;;  %1231 = vst.msk [vmem:[#allocation2 + $0x440] sm:$0xf] %vm426_vm2, %v1165_v19  ;;  %v1521_v24 = vshll.u32 %v5782_v18, 16  ;;  %v1527_v25 = vshll.u32 %v5783_v21, 16  ;;  %v1531_v26 = vshrl.u32 %v5783_v21, 16  ;;  %v6447_v45 = vpop.f32.mrf.mxu0 }
 0x144   : > { %4690 = vmatmul.mubr.bf16.gmra.mxu1 %v6146_v15  ;;  %v1537_v27 = vshll.u32 %v5784_v22, 16  ;;  %v5830_v28 = vld [vmem:[%s7797_s18 + $0x60] sm:$0xe]  ;;  %v5831_v31 = vld [vmem:[%s7797_s18 + $0x64] sm:$0xf]  ;;  %v6519_v4 = vpop.f32.mrf.mxu1 }
 0x145   : > { %v1520_v30 = vrot.slane %v1518_v23, 4  ;;  %v5832_v32 = vld [vmem:[%s7797_s18 + $0x68] sm:$0x1]  ;;  %v5864_v33 = vrot.slane %v5830_v28, 9  ;;  %1232 = vst.msk [vmem:[#allocation2 + $0x464] sm:$0xf] %vm426_vm2, %v1168_v29  ;;  %v6448_v55 = vpop.f32.mrf.mxu0 }
 0x146   : > { %v1523_v34 = vrot.slane %v1521_v24, 5  ;;  %v1529_v35 = vrot.slane %v1527_v25, 5  ;;  %v1533_v36 = vrot.slane %v1531_v26, 4  ;;  %v1539_v37 = vrot.slane %v1537_v27, 5  ;;  %v5785_v38 = vld [vmem:[%s7797_s18 + $0x6c] sm:$0xf]  ;;  %v6520_v18 = vpop.f32.mrf.mxu1 }
 0x147   : > { %v1944_v39 = vrot.slane %v5831_v31, 5  ;;  %v1947_v41 = vrot.slane %v5832_v32, 5  ;;  %v5786_v43 = vld [vmem:[%s7797_s18 + $0x70] sm:$0xf]  ;;  %v5787_v44 = vld [vmem:[%s7797_s18 + $0x74] sm:$0x1]  ;;  %v8373_v5 = vpop.f32.mrf.mxu0  ;;  %v8387_v23 = vadd.f32 %v6448_v55, %v6447_v45  ;;  %v8389_v24 = vadd.f32 %v6520_v18, %v6519_v4 }
 0x148   : > { %v7197_v46 = vld [vmem:[#allocation2 + $0x1c4] ss:$36 sps:$4 sm:$0xff]   ;;  %v1524_v47 = vor.u32 %v1523_v34, %v1520_v30  ;;  %v1534_v48 = vor.u32 %v1533_v36, %v1529_v35  ;;  %v1542_v49 = vshrl.u32 %v5785_v38, 16  ;;  %v1545_v50 = vshll.u32 %v5785_v38, 16  ;;  %v5833_v61 = vld [vmem:[%s7797_s18 + $0x6c] sm:$0xe] }
 0x149   : > { %v7199_v51 = vld [vmem:[#allocation2 + $0x1c0] ss:$36 sps:$4 sm:$0xff]   ;;  %v1945_v42 = vsel %vm7920_vm6, %v5864_v33, %v1944_v39  ;;  %v1946_v52 = vrot.slane %v1944_v39, 4  ;;  %v1551_v53 = vshll.u32 %v5786_v43, 16  ;;  %v1555_v54 = vshrl.u32 %v5786_v43, 16  ;;  %4786 = vmatprep.mubr.bf16.mxu0 %v7197_v46  ;;  %9843 = vst [vmem:[#allocation9_spill] sm:$0xff] %v8389_v24  ;;  %v8396_v30 = vpop.f32.mrf.mxu0 }
 0x14a   : > { %v1525_v56 = vrot.slane %v1524_v47, 4  ;;  %v1535_v58 = vrot.slane %v1534_v48, 4  ;;  %2051 = vst.msk [vmem:[#allocation2 + $0x20c] sm:$0xf] %vm426_vm2, %v1945_v42  ;;  %v1544_v59 = vrot.slane %v1542_v49, 4  ;;  %v1547_v60 = vrot.slane %v1545_v50, 5  ;;  %4787 = vmatmul.mubr.bf16.gmra.mxu0 %v7199_v51 }
 0x14b   : > { %v3056_v62 = vld [vmem:[#allocation2 + $0x440] sm:$0xff]  ;;  %v1948_v63 = vsel %vm7920_vm6, %v1946_v52, %v1947_v41  ;;  %v1553_v0 = vrot.slane %v1551_v53, 5  ;;  %v1557_v1 = vrot.slane %v1555_v54, 4  ;;  %v1561_v2 = vshll.u32 %v5787_v44, 16  ;;  %v5834_v3 = vld [vmem:[%s7797_s18 + $0x70] sm:$0xf]  ;;  %v8407_v41 = vpop.f32.mrf.mxu1  ;;  %v6453_v52 = vpop.f32.mrf.mxu0 }
 0x14c   : > { %v1530_v6 = vsel %vm7815_vm3, %v1525_v56, %v1529_v35  ;;  %v1540_v7 = vsel %vm7815_vm3, %v1535_v58, %v1539_v37  ;;  %2052 = vst.msk [vmem:[#allocation2 + $0x230] sm:$0xf] %vm426_vm2, %v1948_v63  ;;  %v1548_v8 = vor.u32 %v1547_v60, %v1544_v59  ;;  %v5835_v9 = vld [vmem:[%s7797_s18 + $0x74] sm:$0x1]  ;;  %v5865_v10 = vrot.slane %v5833_v61, 9  ;;  %v3061_v12 = vld [vmem:[#allocation2 + $0x464] sm:$0xff] }
 0x14d   : > { %v5873_v11 = vld [vmem:[%s7797_s18 + $0x18] sm:$0xf]  ;;  %v7203_v13 = vld [vmem:[#allocation2 + $0x444] ss:$36 sps:$4 sm:$0xff]   ;;  %1779 = vst.msk [vmem:[#allocation2 + $0x208] sm:$0xf] %vm426_vm2, %v1530_v6  ;;  %v1558_v14 = vor.u32 %v1557_v1, %v1553_v0  ;;  %v6155_v19 = vcombine.low %v3056_v62, %v3061_v12  ;;  %v8413_v63 = vpop.f32.mrf.mxu1 }
 0x14e   : > { %1780 = vst.msk [vmem:[#allocation2 + $0x22c] sm:$0xf] %vm426_vm2, %v1540_v7  ;;  %v1563_v15 = vrot.slane %v1561_v2, 5  ;;  %v1951_v16 = vrot.slane %v5834_v3, 5  ;;  %v1954_v17 = vrot.slane %v5835_v9, 5  ;;  %v1549_v20 = vrot.slane %v1548_v8, 4  ;;  %4697 = vmatprep.mubr.bf16.mxu1 %v7203_v13 }
 0x14f   : > { %2105 = vst.msk [vmem:[#allocation2 + $0x18] sm:$0xf] %vm426_vm2, %v5873_v11  ;;  %v5874_v21 = vld [vmem:[%s7797_s18 + $0x1c] sm:$0xf]  ;;  %v5905_v22 = vld [vmem:[%s7797_s18 + $0x18] sm:$0xf]  ;;  %4698 = vmatmul.mubr.bf16.gmra.mxu1 %v6155_v19 }
 0x150   : > { %v1559_v25 = vrot.slane %v1558_v14, 4  ;;  %v1952_v26 = vsel %vm7920_vm6, %v5865_v10, %v1951_v16  ;;  %v1953_v27 = vrot.slane %v1951_v16, 4  ;;  %2106 = vst.msk [vmem:[#allocation2 + $0x3c] sm:$0xf] %vm426_vm2, %v5874_v21  ;;  %v5906_v28 = vld [vmem:[%s7797_s18 + $0x1c] sm:$0xf]  ;;  %v1554_v31 = vsel %vm7815_vm3, %v1549_v20, %v1553_v0  ;;  %v6454_v0 = vpop.f32.mrf.mxu0 }
 0x151   : > { %v5907_v29 = vld [vmem:[%s7797_s18 + $0x20] sm:$0x1]  ;;  %2053 = vst.msk [vmem:[#allocation2 + $0x254] sm:$0xf] %vm426_vm2, %v1952_v26  ;;  %v2186_v32 = vshrl.u32 %v5905_v22, 16  ;;  %v2189_v33 = vshll.u32 %v5905_v22, 16  ;;  %v8417_v6 = vadd.f32 %v6454_v0, %v6453_v52 }
 0x152   : > { %v2195_v34 = vshll.u32 %v5906_v28, 16  ;;  %v1564_v35 = vsel %vm7815_vm3, %v1559_v25, %v1563_v15  ;;  %1781 = vst.msk [vmem:[#allocation2 + $0x250] sm:$0xf] %vm426_vm2, %v1554_v31  ;;  %v1955_v36 = vsel %vm7920_vm6, %v1953_v27, %v1954_v17  ;;  %v2199_v37 = vshrl.u32 %v5906_v28, 16  ;;  %v5788_v39 = vld [vmem:[%s7797_s18 + $0x78] sm:$0xf]  ;;  %v6525_v25 = vpop.f32.mrf.mxu1  ;;  %v8428_v26 = vpop.f32.mrf.mxu0 }
 0x153   : > { %v2205_v38 = vshll.u32 %v5907_v29, 16  ;;  %9844 = vst [vmem:[#allocation10_spill] sm:$0xff] %v8407_v41  ;;  %1782 = vst.msk [vmem:[#allocation2 + $0x274] sm:$0xf] %vm426_vm2, %v1564_v35  ;;  %v2188_v43 = vrot.slane %v2186_v32, 4  ;;  %v2191_v44 = vrot.slane %v2189_v33, 5 }
 0x154   : > { %2054 = vst.msk [vmem:[#allocation2 + $0x278] sm:$0xf] %vm426_vm2, %v1955_v36  ;;  %v2197_v45 = vrot.slane %v2195_v34, 5  ;;  %v5789_v46 = vld [vmem:[%s7797_s18 + $0x7c] sm:$0xf]  ;;  %v1566_v47 = vshrl.u32 %v5788_v39, 16 }
 0x155   : > { %v2201_v48 = vrot.slane %v2199_v37, 4  ;;  %v2207_v49 = vrot.slane %v2205_v38, 5  ;;  %v5790_v50 = vld [vmem:[%s7797_s18 + $0x80] sm:$0x1]  ;;  %v1569_v51 = vshll.u32 %v5788_v39, 16  ;;  %v1575_v42 = vshll.u32 %v5789_v46, 16  ;;  %v6526_v39 = vpop.f32.mrf.mxu1 }
 0x156   : > { %v7205_v53 = vld [vmem:[#allocation2 + $0x20c] ss:$36 sps:$4 sm:$0xff]   ;;  %v2192_v54 = vor.u32 %v2191_v44, %v2188_v43  ;;  %v1568_v55 = vrot.slane %v1566_v47, 4  ;;  %v1579_v56 = vshrl.u32 %v5789_v46, 16  ;;  %v1585_v62 = vshll.u32 %v5790_v50, 16  ;;  %9845 = vst [vmem:[#allocation11_spill] sm:$0xff] %v8413_v63 }
 0x157   : > { %v7207_v58 = vld [vmem:[#allocation2 + $0x208] ss:$36 sps:$4 sm:$0xff]   ;;  %v2202_v59 = vor.u32 %v2201_v48, %v2197_v45  ;;  %v1571_v60 = vrot.slane %v1569_v51, 5  ;;  %v1577_v61 = vrot.slane %v1575_v42, 5  ;;  %4794 = vmatprep.mubr.bf16.mxu0 %v7205_v53  ;;  %v5836_v3 = vld [vmem:[%s7797_s18 + $0x78] sm:$0xe]  ;;  %v8450_v53 = vpop.f32.mrf.mxu1 }
 0x158   : > { %v2193_v1 = vrot.slane %v2192_v54, 4  ;;  %v1581_v2 = vrot.slane %v1579_v56, 4  ;;  %v5837_v4 = vld [vmem:[%s7797_s18 + $0x7c] sm:$0xf]  ;;  %4795 = vmatmul.mubr.bf16.gmra.mxu0 %v7207_v58  ;;  %v1587_v9 = vrot.slane %v1585_v62, 5  ;;  %v5866_v11 = vrot.slane %v5836_v3, 9  ;;  %v8452_v54 = vpop.f32.mrf.mxu0 }
 0x159   : > { %v2203_v7 = vrot.slane %v2202_v59, 4  ;;  %v1572_v8 = vor.u32 %v1571_v60, %v1568_v55  ;;  %v5838_v10 = vld [vmem:[%s7797_s18 + $0x80] sm:$0x1]  ;;  %v2987_v12 = vld [vmem:[#allocation2 + $0x250] sm:$0xff]  ;;  %v1958_v15 = vrot.slane %v5837_v4, 5  ;;  %9846 = vst [vmem:[#allocation12_spill] sm:$0xff] %v8450_v53 }
 0x15a   : > { %v2198_v13 = vsel %vm7815_vm3, %v2193_v1, %v2197_v45  ;;  %v1582_v14 = vor.u32 %v1581_v2, %v1577_v61  ;;  %v1961_v16 = vrot.slane %v5838_v10, 5  ;;  %v5875_v17 = vld [vmem:[%s7797_s18 + $0x24] sm:$0xf]  ;;  %v5876_v22 = vld [vmem:[%s7797_s18 + $0x28] sm:$0xf] }
 0x15b   : > { %v2992_v18 = vld [vmem:[#allocation2 + $0x274] sm:$0xff]  ;;  %v2208_v20 = vsel %vm7815_vm3, %v2203_v7, %v2207_v49  ;;  %2601 = vst.msk [vmem:[#allocation2 + $0x1c] sm:$0xf] %vm426_vm2, %v2198_v13  ;;  %v1573_v21 = vrot.slane %v1572_v8, 4  ;;  %2107 = vst.msk [vmem:[#allocation2 + $0x60] sm:$0xf] %vm426_vm2, %v5875_v17  ;;  %v1959_v29 = vsel %vm7920_vm6, %v5866_v11, %v1958_v15  ;;  %v8457_v13 = vadd.f32 %v6526_v39, %v6525_v25 }
 0x15c   : > { %v7208_v19 = vld [vmem:[#allocation2 + $0x254] ss:$36 sps:$4 sm:$0xff]   ;;  %2602 = vst.msk [vmem:[#allocation2 + $0x40] sm:$0xf] %vm426_vm2, %v2208_v20  ;;  %v6094_v27 = vcombine.low %v2987_v12, %v2992_v18  ;;  %v1583_v28 = vrot.slane %v1582_v14, 4  ;;  %v1960_v31 = vrot.slane %v1958_v15, 4  ;;  %v8459_v14 = vpop.f32.mrf.mxu1  ;;  %v6459_v15 = vpop.f32.mrf.mxu0 }
 0x15d   : > { %2108 = vst.msk [vmem:[#allocation2 + $0x84] sm:$0xf] %vm426_vm2, %v5876_v22  ;;  %v5908_v32 = vld [vmem:[%s7797_s18 + $0x24] sm:$0xf]  ;;  %v5909_v33 = vld [vmem:[%s7797_s18 + $0x28] sm:$0xf]  ;;  %4802 = vmatprep.mubr.bf16.mxu0 %v7208_v19  ;;  %v1578_v34 = vsel %vm7815_vm3, %v1573_v21, %v1577_v61 }
 0x15e   : > { %2055 = vst.msk [vmem:[#allocation2 + $0x29c] sm:$0xf] %vm426_vm2, %v1959_v29  ;;  %v5910_v35 = vld [vmem:[%s7797_s18 + $0x2c] sm:$0x1]  ;;  %v2210_v36 = vshrl.u32 %v5908_v32, 16  ;;  %v2213_v37 = vshll.u32 %v5908_v32, 16  ;;  %v1588_v43 = vsel %vm7815_vm3, %v1583_v28, %v1587_v9  ;;  %v1962_v44 = vsel %vm7920_vm6, %v1960_v31, %v1961_v16  ;;  %v6460_v25 = vpop.f32.mrf.mxu0 }
 0x15f   : > { %v2219_v38 = vshll.u32 %v5909_v33, 16  ;;  %1783 = vst.msk [vmem:[#allocation2 + $0x298] sm:$0xf] %vm426_vm2, %v1578_v34  ;;  %v2223_v45 = vshrl.u32 %v5909_v33, 16  ;;  %v2229_v46 = vshll.u32 %v5910_v35, 16  ;;  %9847 = vst [vmem:[#allocation13_spill] sm:$0xff] %v8457_v13 }
 0x160   : > { %v5791_v47 = vld [vmem:[%s7797_s18 + $0x84] sm:$0xf]  ;;  %v5792_v48 = vld [vmem:[%s7797_s18 + $0x88] sm:$0xf]  ;;  %1784 = vst.msk [vmem:[#allocation2 + $0x2bc] sm:$0xf] %vm426_vm2, %v1588_v43  ;;  %4803 = vmatmul.mubr.bf16.gmra.mxu0 %v6094_v27 }
 0x161   : > { %2056 = vst.msk [vmem:[#allocation2 + $0x2c0] sm:$0xf] %vm426_vm2, %v1962_v44  ;;  %v2212_v49 = vrot.slane %v2210_v36, 4  ;;  %v2215_v50 = vrot.slane %v2213_v37, 5  ;;  %v2221_v51 = vrot.slane %v2219_v38, 5  ;;  %v1590_v52 = vshrl.u32 %v5791_v47, 16 }
 0x162   : > { %v5793_v42 = vld [vmem:[%s7797_s18 + $0x8c] sm:$0x1]  ;;  %v2225_v55 = vrot.slane %v2223_v45, 4  ;;  %v2231_v56 = vrot.slane %v2229_v46, 5  ;;  %v1593_v58 = vshll.u32 %v5791_v47, 16  ;;  %v1599_v59 = vshll.u32 %v5792_v48, 16  ;;  %v6531_v47 = vpop.f32.mrf.mxu1 }
 0x163   : > { %v5839_v60 = vld [vmem:[%s7797_s18 + $0x84] sm:$0xe]  ;;  %v2216_v61 = vor.u32 %v2215_v50, %v2212_v49  ;;  %v1592_v62 = vrot.slane %v1590_v52, 4  ;;  %v1603_v0 = vshrl.u32 %v5792_v48, 16  ;;  %v1609_v1 = vshll.u32 %v5793_v42, 16  ;;  %9848 = vst [vmem:[#allocation14_spill] sm:$0xff] %v8459_v14 }
 0x164   : > { %v5840_v2 = vld [vmem:[%s7797_s18 + $0x88] sm:$0xf]  ;;  %v2226_v3 = vor.u32 %v2225_v55, %v2221_v51  ;;  %v1595_v4 = vrot.slane %v1593_v58, 5  ;;  %v1601_v7 = vrot.slane %v1599_v59, 5  ;;  %v5841_v8 = vld [vmem:[%s7797_s18 + $0x8c] sm:$0x1]  ;;  %v8471_v37 = vadd.f32 %v6460_v25, %v6459_v15  ;;  %v6532_v58 = vpop.f32.mrf.mxu1  ;;  %v8484_v59 = vpop.f32.mrf.mxu0 }
 0x165   : > { %v5867_v9 = vrot.slane %v5839_v60, 9  ;;  %v7210_v10 = vld [vmem:[#allocation2 + $0x18] ss:$36 sps:$4 sm:$0xff]   ;;  %v2217_v12 = vrot.slane %v2216_v61, 4  ;;  %v1605_v18 = vrot.slane %v1603_v0, 4  ;;  %v1611_v22 = vrot.slane %v1609_v1, 5 }
 0x166   : > { %v7212_v11 = vld [vmem:[#allocation2 + $0x1c] ss:$36 sps:$4 sm:$0xff]   ;;  %v2227_v16 = vrot.slane %v2226_v3, 4  ;;  %v1596_v17 = vor.u32 %v1595_v4, %v1592_v62  ;;  %v5877_v19 = vld [vmem:[%s7797_s18 + $0x30] sm:$0xf]  ;;  %v1965_v27 = vrot.slane %v5840_v2, 5  ;;  %v8491_v2 = vadd.f32 %v6532_v58, %v6531_v47 }
 0x167   : > { %4899 = vmatprep.mubr.bf16.mxu1 %v7212_v11  ;;  %v2997_v20 = vld [vmem:[#allocation2 + $0x298] sm:$0xff]  ;;  %v2222_v21 = vsel %vm7815_vm3, %v2217_v12, %v2221_v51  ;;  %v1968_v28 = vrot.slane %v5841_v8, 5  ;;  %v5878_v29 = vld [vmem:[%s7797_s18 + $0x34] sm:$0xf]  ;;  %2109 = vst.msk [vmem:[#allocation2 + $0xa8] sm:$0xf] %vm426_vm2, %v5877_v19  ;;  %v1606_v35 = vor.u32 %v1605_v18, %v1601_v7 }
 0x168   : > { %4900 = vmatmul.mubr.bf16.vlgmr.msra.gmra.mxu1 %v7210_v10  ;;  %v3002_v31 = vld [vmem:[#allocation2 + $0x2bc] sm:$0xff]  ;;  %v2232_v33 = vsel %vm7815_vm3, %v2227_v16, %v2231_v56  ;;  %2603 = vst.msk [vmem:[#allocation2 + $0x64] sm:$0xf] %vm426_vm2, %v2222_v21  ;;  %v1597_v34 = vrot.slane %v1596_v17, 4  ;;  %2110 = vst.msk [vmem:[#allocation2 + $0xcc] sm:$0xf] %vm426_vm2, %v5878_v29  ;;  %v1966_v39 = vsel %vm7920_vm6, %v5867_v9, %v1965_v27 }
 0x169   : > { %v7214_v32 = vld [vmem:[#allocation2 + $0x29c] ss:$36 sps:$4 sm:$0xff]   ;;  %v5911_v36 = vld [vmem:[%s7797_s18 + $0x30] sm:$0xf]  ;;  %2604 = vst.msk [vmem:[#allocation2 + $0x88] sm:$0xf] %vm426_vm2, %v2232_v33  ;;  %v6103_v38 = vcombine.low %v2997_v20, %v3002_v31 }
 0x16a   : > { %v1967_v43 = vrot.slane %v1965_v27, 4  ;;  %v5912_v44 = vld [vmem:[%s7797_s18 + $0x34] sm:$0xf]  ;;  %v5913_v45 = vld [vmem:[%s7797_s18 + $0x38] sm:$0x1]  ;;  %v2234_v46 = vshrl.u32 %v5911_v36, 16  ;;  %4810 = vmatprep.mubr.bf16.mxu0 %v7214_v32  ;;  %v1602_v48 = vsel %vm7815_vm3, %v1597_v34, %v1601_v7 }
 0x16b   : > { %v1607_v49 = vrot.slane %v1606_v35, 4  ;;  %2057 = vst.msk [vmem:[#allocation2 + $0x2e4] sm:$0xf] %vm426_vm2, %v1966_v39  ;;  %v2237_v50 = vshll.u32 %v5911_v36, 16  ;;  %v2243_v51 = vshll.u32 %v5912_v44, 16  ;;  %4811 = vmatmul.mubr.bf16.gmra.mxu0 %v6103_v38  ;;  %v2247_v55 = vshrl.u32 %v5912_v44, 16  ;;  %v8500_v35 = vpop.f32.mrf.mxu1 }
 0x16c   : > { %1785 = vst.msk [vmem:[#allocation2 + $0x2e0] sm:$0xf] %vm426_vm2, %v1602_v48  ;;  %v1969_v42 = vsel %vm7920_vm6, %v1967_v43, %v1968_v28  ;;  %v2236_v52 = vrot.slane %v2234_v46, 4  ;;  %v2253_v56 = vshll.u32 %v5913_v45, 16  ;;  %v5794_v0 = vld [vmem:[%s7797_s18 + $0x90] sm:$0xf] }
 0x16d   : > { %v1612_v60 = vsel %vm7815_vm3, %v1607_v49, %v1611_v22  ;;  %2058 = vst.msk [vmem:[#allocation2 + $0x308] sm:$0xf] %vm426_vm2, %v1969_v42  ;;  %v2239_v61 = vrot.slane %v2237_v50, 5  ;;  %v2245_v62 = vrot.slane %v2243_v51, 5  ;;  %v5795_v1 = vld [vmem:[%s7797_s18 + $0x94] sm:$0xf]  ;;  %v8497_v22 = vpop.f32.mrf.mxu0 }
 0x16e   : > { %9849 = vst [vmem:[#allocation15_spill] sm:$0xff] %v8491_v2  ;;  %1786 = vst.msk [vmem:[#allocation2 + $0x304] sm:$0xf] %vm426_vm2, %v1612_v60  ;;  %v2249_v3 = vrot.slane %v2247_v55, 4  ;;  %v2255_v4 = vrot.slane %v2253_v56, 5  ;;  %v1614_v8 = vshrl.u32 %v5794_v0, 16 }
 0x16f   : > { %v5796_v7 = vld [vmem:[%s7797_s18 + $0x98] sm:$0x1]  ;;  %v1617_v9 = vshll.u32 %v5794_v0, 16  ;;  %v2240_v10 = vor.u32 %v2239_v61, %v2236_v52  ;;  %v1623_v11 = vshll.u32 %v5795_v1, 16  ;;  %v1627_v12 = vshrl.u32 %v5795_v1, 16  ;;  %9850 = vst [vmem:[#allocation16_spill] sm:$0xff] %v8500_v35  ;;  %v6465_v51 = vpop.f32.mrf.mxu0 }
 0x170   : > { %v1633_v15 = vshll.u32 %v5796_v7, 16  ;;  %v5842_v16 = vld [vmem:[%s7797_s18 + $0x90] sm:$0xe]  ;;  %v2250_v17 = vor.u32 %v2249_v3, %v2245_v62  ;;  %v1616_v18 = vrot.slane %v1614_v8, 4  ;;  %v5843_v20 = vld [vmem:[%s7797_s18 + $0x94] sm:$0xf] }
 0x171   : > { %v1619_v19 = vrot.slane %v1617_v9, 5  ;;  %v5868_v21 = vrot.slane %v5842_v16, 9  ;;  %v7216_v27 = vld [vmem:[#allocation2 + $0x64] ss:$36 sps:$4 sm:$0xff]   ;;  %v2241_v29 = vrot.slane %v2240_v10, 4  ;;  %v1625_v32 = vrot.slane %v1623_v11, 5  ;;  %v6466_v7 = vpop.f32.mrf.mxu0 }
 0x172   : > { %v7218_v28 = vld [vmem:[#allocation2 + $0x60] ss:$36 sps:$4 sm:$0xff]   ;;  %v2251_v25 = vrot.slane %v2250_v17, 4  ;;  %v1629_v33 = vrot.slane %v1627_v12, 4  ;;  %v5844_v34 = vld [vmem:[%s7797_s18 + $0x98] sm:$0x1]  ;;  %4907 = vmatprep.mubr.bf16.mxu1 %v7216_v27 }
 0x173   : > { %v1620_v31 = vor.u32 %v1619_v19, %v1616_v18  ;;  %v3007_v36 = vld [vmem:[#allocation2 + $0x2e0] sm:$0xff]  ;;  %v2246_v38 = vsel %vm7815_vm3, %v2241_v29, %v2245_v62  ;;  %v1972_v39 = vrot.slane %v5843_v20, 5  ;;  %v1975_v43 = vrot.slane %v5844_v34, 5  ;;  %v5879_v44 = vld [vmem:[%s7797_s18 + $0x3c] sm:$0xf]  ;;  %4908 = vmatmul.mubr.bf16.gmra.mxu1 %v7218_v28 }
 0x174   : > { %v2256_v45 = vsel %vm7815_vm3, %v2251_v25, %v2255_v4  ;;  %2605 = vst.msk [vmem:[#allocation2 + $0xac] sm:$0xf] %vm426_vm2, %v2246_v38  ;;  %v1630_v47 = vor.u32 %v1629_v33, %v1625_v32  ;;  %v1635_v48 = vrot.slane %v1633_v15, 5  ;;  %v5880_v49 = vld [vmem:[%s7797_s18 + $0x40] sm:$0xf]  ;;  %v8521_v4 = vpop.f32.mrf.mxu1  ;;  %v8534_v38 = vpop.f32.mrf.mxu0 }
 0x175   : > { %v1621_v46 = vrot.slane %v1620_v31, 4  ;;  %2111 = vst.msk [vmem:[#allocation2 + $0xf0] sm:$0xf] %vm426_vm2, %v5879_v44  ;;  %v5914_v50 = vld [vmem:[%s7797_s18 + $0x3c] sm:$0xf]  ;;  %v3012_v42 = vld [vmem:[#allocation2 + $0x304] sm:$0xff]  ;;  %v1973_v55 = vsel %vm7920_vm6, %v5868_v21, %v1972_v39 }
 0x176   : > { %v7219_v52 = vld [vmem:[#allocation2 + $0x2e4] ss:$36 sps:$4 sm:$0xff]   ;;  %2606 = vst.msk [vmem:[#allocation2 + $0xd0] sm:$0xf] %vm426_vm2, %v2256_v45  ;;  %v1974_v56 = vrot.slane %v1972_v39, 4  ;;  %v6112_v60 = vcombine.low %v3007_v36, %v3012_v42  ;;  %v1631_v62 = vrot.slane %v1630_v47, 4  ;;  %v6537_v36 = vpop.f32.mrf.mxu1 }
 0x177   : > { %2112 = vst.msk [vmem:[#allocation2 + $0x114] sm:$0xf] %vm426_vm2, %v5880_v49  ;;  %v5915_v58 = vld [vmem:[%s7797_s18 + $0x40] sm:$0xf]  ;;  %v1626_v61 = vsel %vm7815_vm3, %v1621_v46, %v1625_v32  ;;  %2059 = vst.msk [vmem:[#allocation2 + $0x32c] sm:$0xf] %vm426_vm2, %v1973_v55  ;;  %4818 = vmatprep.mubr.bf16.mxu0 %v7219_v52 }
 0x178   : > { %v5916_v0 = vld [vmem:[%s7797_s18 + $0x44] sm:$0x1]  ;;  %v2258_v1 = vshrl.u32 %v5914_v50, 16  ;;  %v5797_v3 = vld [vmem:[%s7797_s18 + $0x9c] sm:$0xf]  ;;  %9851 = vst [vmem:[#allocation17_spill] sm:$0xff] %v8521_v4  ;;  %v1976_v8 = vsel %vm7920_vm6, %v1974_v56, %v1975_v43  ;;  %4819 = vmatmul.mubr.bf16.gmra.mxu0 %v6112_v60  ;;  %v1636_v15 = vsel %vm7815_vm3, %v1631_v62, %v1635_v48  ;;  %v6538_v42 = vpop.f32.mrf.mxu1 }
 0x179   : > { %1787 = vst.msk [vmem:[#allocation2 + $0x328] sm:$0xf] %vm426_vm2, %v1626_v61  ;;  %v2261_v9 = vshll.u32 %v5914_v50, 16  ;;  %v2267_v10 = vshll.u32 %v5915_v58, 16  ;;  %v2271_v11 = vshrl.u32 %v5915_v58, 16  ;;  %v2277_v17 = vshll.u32 %v5916_v0, 16 }
 0x17a   : > { %v5798_v12 = vld [vmem:[%s7797_s18 + $0xa0] sm:$0xf]  ;;  %2060 = vst.msk [vmem:[#allocation2 + $0x350] sm:$0xf] %vm426_vm2, %v1976_v8  ;;  %v2260_v16 = vrot.slane %v2258_v1, 4  ;;  %v1638_v19 = vshrl.u32 %v5797_v3, 16  ;;  %v8537_v50 = vadd.f32 %v6466_v7, %v6465_v51  ;;  %v8541_v8 = vpop.f32.mrf.mxu1  ;;  %v8543_v51 = vpop.f32.mrf.mxu0 }
 0x17b   : > { %v5799_v18 = vld [vmem:[%s7797_s18 + $0xa4] sm:$0x1]  ;;  %1788 = vst.msk [vmem:[#allocation2 + $0x34c] sm:$0xf] %vm426_vm2, %v1636_v15  ;;  %v2263_v20 = vrot.slane %v2261_v9, 5  ;;  %v2269_v21 = vrot.slane %v2267_v10, 5 }
 0x17c   : > { %v2273_v27 = vrot.slane %v2271_v11, 4  ;;  %v1641_v28 = vshll.u32 %v5797_v3, 16  ;;  %v5845_v29 = vld [vmem:[%s7797_s18 + $0x9c] sm:$0xe]  ;;  %v2279_v25 = vrot.slane %v2277_v17, 5  ;;  %v1640_v31 = vrot.slane %v1638_v19, 4 }
 0x17d   : > { %v1647_v32 = vshll.u32 %v5798_v12, 16  ;;  %v1651_v33 = vshrl.u32 %v5798_v12, 16  ;;  %v5846_v34 = vld [vmem:[%s7797_s18 + $0xa0] sm:$0xf]  ;;  %v2264_v39 = vor.u32 %v2263_v20, %v2260_v16  ;;  %v1657_v45 = vshll.u32 %v5799_v18, 16  ;;  %9852 = vst [vmem:[#allocation18_spill] sm:$0xff] %v8541_v8 }
 0x17e   : > { %v2274_v43 = vor.u32 %v2273_v27, %v2269_v21  ;;  %v1643_v44 = vrot.slane %v1641_v28, 5  ;;  %v5847_v46 = vld [vmem:[%s7797_s18 + $0xa4] sm:$0x1]  ;;  %v7221_v47 = vld [vmem:[#allocation2 + $0xac] ss:$36 sps:$4 sm:$0xff]   ;;  %v5869_v0 = vrot.slane %v5845_v29, 9  ;;  %v8559_v27 = vpop.f32.mrf.mxu1 }
 0x17f   : > { %v7223_v48 = vld [vmem:[#allocation2 + $0xa8] ss:$36 sps:$4 sm:$0xff]   ;;  %v1649_v49 = vrot.slane %v1647_v32, 5  ;;  %v2265_v52 = vrot.slane %v2264_v39, 4  ;;  %v1653_v58 = vrot.slane %v1651_v33, 4  ;;  %4915 = vmatprep.mubr.bf16.mxu1 %v7221_v47  ;;  %v1659_v62 = vrot.slane %v1657_v45, 5 }
 0x180   : > { %v2275_v55 = vrot.slane %v2274_v43, 4  ;;  %v1644_v56 = vor.u32 %v1643_v44, %v1640_v31  ;;  %v5881_v60 = vld [vmem:[%s7797_s18 + $0x48] sm:$0xf]  ;;  %v1979_v1 = vrot.slane %v5846_v34, 5  ;;  %v1982_v3 = vrot.slane %v5847_v46, 5  ;;  %4916 = vmatmul.mubr.bf16.gmra.mxu1 %v7223_v48  ;;  %9854 = vst [vmem:[#allocation20_spill] sm:$0xff] %v8559_v27  ;;  %v8568_v43 = vpop.f32.mrf.mxu0  ;;  %v8570_v44 = vpop.f32.mrf.mxu1 }
 0x181   : > { %v3017_v61 = vld [vmem:[#allocation2 + $0x328] sm:$0xff]  ;;  %2113 = vst.msk [vmem:[#allocation2 + $0x138] sm:$0xf] %vm426_vm2, %v5881_v60  ;;  %v2270_v7 = vsel %vm7815_vm3, %v2265_v52, %v2269_v21  ;;  %v1654_v11 = vor.u32 %v1653_v58, %v1649_v49  ;;  %v8557_v21 = vadd.f32 %v6538_v42, %v6537_v36  ;;  %v5919_v31 = vld [vmem:[%s7797_s18 + $0x50] sm:$0x1] }
 0x182   : > { %v2280_v9 = vsel %vm7815_vm3, %v2275_v55, %v2279_v25  ;;  %v1645_v10 = vrot.slane %v1644_v56, 4  ;;  %v5882_v12 = vld [vmem:[%s7797_s18 + $0x4c] sm:$0xf]  ;;  %v5917_v15 = vld [vmem:[%s7797_s18 + $0x48] sm:$0xf]  ;;  %v1980_v18 = vsel %vm7920_vm6, %v5869_v0, %v1979_v1  ;;  %v1981_v19 = vrot.slane %v1979_v1, 4  ;;  %v8578_v56 = vpop.f32.mrf.mxu0  ;;  %v8580_v58 = vpop.f32.mrf.mxu1 }
 0x183   : > { %v3022_v16 = vld [vmem:[#allocation2 + $0x34c] sm:$0xff]  ;;  %2607 = vst.msk [vmem:[#allocation2 + $0xf4] sm:$0xf] %vm426_vm2, %v2270_v7  ;;  %2608 = vst.msk [vmem:[#allocation2 + $0x118] sm:$0xf] %vm426_vm2, %v2280_v9  ;;  %v1655_v25 = vrot.slane %v1654_v11, 4 }
 0x184   : > { %v7225_v17 = vld [vmem:[#allocation2 + $0x32c] ss:$36 sps:$4 sm:$0xff]   ;;  %2114 = vst.msk [vmem:[#allocation2 + $0x15c] sm:$0xf] %vm426_vm2, %v5882_v12  ;;  %9853 = vst [vmem:[#allocation19_spill] sm:$0xff] %v8557_v21  ;;  %v6121_v28 = vcombine.low %v3017_v61, %v3022_v16  ;;  %v1650_v29 = vsel %vm7815_vm3, %v1645_v10, %v1649_v49  ;;  %v2282_v32 = vshrl.u32 %v5917_v15, 16  ;;  %v1983_v33 = vsel %vm7920_vm6, %v1981_v19, %v1982_v3  ;;  %v8586_v12 = vpop.f32.mrf.mxu0 }
 0x185   : > { %v5918_v20 = vld [vmem:[%s7797_s18 + $0x4c] sm:$0xf]  ;;  %2061 = vst.msk [vmem:[#allocation2 + $0x374] sm:$0xf] %vm426_vm2, %v1980_v18  ;;  %4826 = vmatprep.mubr.bf16.mxu0 %v7225_v17  ;;  %1789 = vst.msk [vmem:[#allocation2 + $0x370] sm:$0xf] %vm426_vm2, %v1650_v29  ;;  %v1660_v45 = vsel %vm7815_vm3, %v1655_v25, %v1659_v62 }
 0x186   : > { %v2285_v34 = vshll.u32 %v5917_v15, 16  ;;  %v2291_v36 = vshll.u32 %v5918_v20, 16  ;;  %v2295_v39 = vshrl.u32 %v5918_v20, 16  ;;  %4827 = vmatmul.mubr.bf16.gmra.mxu0 %v6121_v28  ;;  %2062 = vst.msk [vmem:[#allocation2 + $0x398] sm:$0xf] %vm426_vm2, %v1983_v33  ;;  %v2284_v46 = vrot.slane %v2282_v32, 4  ;;  %v8588_v15 = vpop.f32.mrf.mxu1 }
 0x187   : > { %v2301_v47 = vshll.u32 %v5919_v31, 16  ;;  %v5800_v48 = vld [vmem:[%s7797_s18 + $0xa8] sm:$0xf]  ;;  %1790 = vst.msk [vmem:[#allocation2 + $0x394] sm:$0xf] %vm426_vm2, %v1660_v45  ;;  %v8590_v31 = vpop.f32.mrf.mxu0 }
 0x188   : > { %v2287_v49 = vrot.slane %v2285_v34, 5  ;;  %v2293_v42 = vrot.slane %v2291_v36, 5  ;;  %v2297_v52 = vrot.slane %v2295_v39, 4  ;;  %v5801_v55 = vld [vmem:[%s7797_s18 + $0xac] sm:$0xf]  ;;  %v1662_v62 = vshrl.u32 %v5800_v48, 16  ;;  %v8592_v32 = vpop.f32.mrf.mxu1 }
 0x189   : > { %v2303_v60 = vrot.slane %v2301_v47, 5  ;;  %v5802_v61 = vld [vmem:[%s7797_s18 + $0xb0] sm:$0x1]  ;;  %v5848_v0 = vld [vmem:[%s7797_s18 + $0xa8] sm:$0xe]  ;;  %v1665_v7 = vshll.u32 %v5800_v48, 16 }
 0x18a   : > { %v2288_v1 = vor.u32 %v2287_v49, %v2284_v46  ;;  %v2298_v3 = vor.u32 %v2297_v52, %v2293_v42  ;;  %v1671_v9 = vshll.u32 %v5801_v55, 16  ;;  %v5849_v10 = vld [vmem:[%s7797_s18 + $0xac] sm:$0xf]  ;;  %v5850_v11 = vld [vmem:[%s7797_s18 + $0xb0] sm:$0x1]  ;;  %v1664_v17 = vrot.slane %v1662_v62, 4  ;;  %v8600_v62 = vpop.f32.mrf.mxu1 }
 0x18b   : > { %v7227_v16 = vld [vmem:[#allocation2 + $0xf4] ss:$36 sps:$4 sm:$0xff]   ;;  %v1675_v18 = vshrl.u32 %v5801_v55, 16  ;;  %v1667_v29 = vrot.slane %v1665_v7, 5  ;;  %v1681_v36 = vshll.u32 %v5802_v61, 16  ;;  %v5870_v39 = vrot.slane %v5848_v0, 9 }
 0x18c   : > { %v7229_v19 = vld [vmem:[#allocation2 + $0xf0] ss:$36 sps:$4 sm:$0xff]   ;;  %v2289_v20 = vrot.slane %v2288_v1, 4  ;;  %v2299_v28 = vrot.slane %v2298_v3, 4  ;;  %v1673_v25 = vrot.slane %v1671_v9, 5  ;;  %4923 = vmatprep.mubr.bf16.mxu1 %v7227_v16  ;;  %v1986_v45 = vrot.slane %v5849_v10, 5 }
 0x18d   : > { %v3027_v33 = vld [vmem:[#allocation2 + $0x370] sm:$0xff]  ;;  %v1677_v34 = vrot.slane %v1675_v18, 4  ;;  %4924 = vmatmul.mubr.bf16.gmra.mxu1 %v7229_v19  ;;  %v1668_v48 = vor.u32 %v1667_v29, %v1664_v17  ;;  %v1989_v49 = vrot.slane %v5850_v11, 5  ;;  %v5884_v55 = vld [vmem:[%s7797_s18 + $0x58] sm:$0xf]  ;;  %v1683_v0 = vrot.slane %v1681_v36, 5  ;;  %v8615_v17 = vpop.f32.mrf.mxu0  ;;  %v8617_v18 = vpop.f32.mrf.mxu1 }
 0x18e   : > { %v2294_v46 = vsel %vm7815_vm3, %v2289_v20, %v2293_v42  ;;  %v2304_v47 = vsel %vm7815_vm3, %v2299_v28, %v2303_v60  ;;  %v5883_v52 = vld [vmem:[%s7797_s18 + $0x54] sm:$0xf]  ;;  %v1987_v42 = vsel %vm7920_vm6, %v5870_v39, %v1986_v45  ;;  %v1988_v60 = vrot.slane %v1986_v45, 4  ;;  %2116 = vst.msk [vmem:[#allocation2 + $0x1a4] sm:$0xf] %vm426_vm2, %v5884_v55 }
 0x18f   : > { %v3032_v1 = vld [vmem:[#allocation2 + $0x394] sm:$0xff]  ;;  %2609 = vst.msk [vmem:[#allocation2 + $0x13c] sm:$0xf] %vm426_vm2, %v2294_v46  ;;  %2610 = vst.msk [vmem:[#allocation2 + $0x160] sm:$0xf] %vm426_vm2, %v2304_v47  ;;  %v1678_v61 = vor.u32 %v1677_v34, %v1673_v25  ;;  %v8610_v9 = vadd.f32 %v8396_v30, %v8373_v5  ;;  %v1669_v10 = vrot.slane %v1668_v48, 4  ;;  %v8626_v45 = vpop.f32.mrf.mxu0  ;;  %v8628_v46 = vpop.f32.mrf.mxu1 }
 0x190   : > { %v7230_v3 = vld [vmem:[#allocation2 + $0x374] ss:$36 sps:$4 sm:$0xff]   ;;  %2115 = vst.msk [vmem:[#allocation2 + $0x180] sm:$0xf] %vm426_vm2, %v5883_v52  ;;  %v6130_v7 = vcombine.low %v3027_v33, %v3032_v1  ;;  %2063 = vst.msk [vmem:[#allocation2 + $0x3bc] sm:$0xf] %vm426_vm2, %v1987_v42  ;;  %v1990_v20 = vsel %vm7920_vm6, %v1988_v60, %v1989_v49 }
 0x191   : > { %v5920_v11 = vld [vmem:[%s7797_s18 + $0x54] sm:$0xf]  ;;  %v5921_v16 = vld [vmem:[%s7797_s18 + $0x58] sm:$0xf]  ;;  %4834 = vmatprep.mubr.bf16.mxu0 %v7230_v3  ;;  %v1679_v19 = vrot.slane %v1678_v61, 4  ;;  %v1674_v30 = vsel %vm7815_vm3, %v1669_v10, %v1673_v25  ;;  %v8635_v25 = vadd.f32 %v8452_v54, %v8428_v26 }
 0x192   : > { %v5922_v28 = vld [vmem:[%s7797_s18 + $0x5c] sm:$0x1]  ;;  %v2306_v29 = vshrl.u32 %v5920_v11, 16  ;;  %v2309_v5 = vshll.u32 %v5920_v11, 16  ;;  %4835 = vmatmul.mubr.bf16.gmra.mxu0 %v6130_v7  ;;  %2064 = vst.msk [vmem:[#allocation2 + $0x3e0] sm:$0xf] %vm426_vm2, %v1990_v20  ;;  %v8641_v7 = vpop.f32.mrf.mxu0 }
 0x193   : > { %v2315_v33 = vshll.u32 %v5921_v16, 16  ;;  %v2319_v34 = vshrl.u32 %v5921_v16, 16  ;;  %v2325_v36 = vshll.u32 %v5922_v28, 16  ;;  %v5803_v39 = vld [vmem:[%s7797_s18 + $0xb4] sm:$0xf]  ;;  %v1684_v47 = vsel %vm7815_vm3, %v1679_v19, %v1683_v0  ;;  %v8643_v0 = vpop.f32.mrf.mxu1 }
 0x194   : > { %1791 = vst.msk [vmem:[#allocation2 + $0x3b8] sm:$0xf] %vm426_vm2, %v1674_v30  ;;  %v2308_v48 = vrot.slane %v2306_v29, 4  ;;  %v2311_v49 = vrot.slane %v2309_v5, 5  ;;  %v5804_v52 = vld [vmem:[%s7797_s18 + $0xb8] sm:$0xf]  ;;  %v8648_v5 = vadd.f32 %v8497_v22, %v8484_v59  ;;  %v8650_v30 = vpop.f32.mrf.mxu0 }
 0x195   : > { %v5805_v55 = vld [vmem:[%s7797_s18 + $0xbc] sm:$0x1]  ;;  %1792 = vst.msk [vmem:[#allocation2 + $0x3dc] sm:$0xf] %vm426_vm2, %v1684_v47  ;;  %v2317_v1 = vrot.slane %v2315_v33, 5  ;;  %v2321_v3 = vrot.slane %v2319_v34, 4 }
 0x196   : > { %v2327_v61 = vrot.slane %v2325_v36, 5  ;;  %v1686_v42 = vshrl.u32 %v5803_v39, 16  ;;  %v5851_v60 = vld [vmem:[%s7797_s18 + $0xb4] sm:$0xe]  ;;  %v2312_v10 = vor.u32 %v2311_v49, %v2308_v48  ;;  %v1689_v11 = vshll.u32 %v5803_v39, 16  ;;  %v8664_v27 = vpop.f32.mrf.mxu0 }
 0x197   : > { %v1695_v16 = vshll.u32 %v5804_v52, 16  ;;  %v1699_v19 = vshrl.u32 %v5804_v52, 16  ;;  %v5852_v20 = vld [vmem:[%s7797_s18 + $0xb8] sm:$0xf]  ;;  %v7232_v26 = vld [vmem:[#allocation2 + $0x13c] ss:$36 sps:$4 sm:$0xff]   ;;  %v2322_v54 = vor.u32 %v2321_v3, %v2317_v1  ;;  %v8658_v3 = vpop.f32.mrf.mxu1 }
 0x198   : > { %v1688_v28 = vrot.slane %v1686_v42, 4  ;;  %v1705_v29 = vshll.u32 %v5805_v55, 16  ;;  %v7234_v33 = vld [vmem:[#allocation2 + $0x138] ss:$36 sps:$4 sm:$0xff]   ;;  %v2313_v34 = vrot.slane %v2312_v10, 4  ;;  %v1691_v36 = vrot.slane %v1689_v11, 5  ;;  %4931 = vmatprep.mubr.bf16.mxu1 %v7232_v26 }
 0x199   : > { %v1697_v47 = vrot.slane %v1695_v16, 5  ;;  %v1701_v39 = vrot.slane %v1699_v19, 4  ;;  %v8655_v48 = vld [vmem:[%s9833_s2] ss:$0 sm:$0xff]  ;;  %v2323_v49 = vrot.slane %v2322_v54, 4  ;;  %v5871_v59 = vrot.slane %v5851_v60, 9  ;;  %4932 = vmatmul.mubr.bf16.gmra.mxu1 %v7234_v33 }
 0x19a   : > { %v1707_v52 = vrot.slane %v1705_v29, 5  ;;  %v5853_v55 = vld [vmem:[%s7797_s18 + $0xbc] sm:$0x1]  ;;  %v1993_v22 = vrot.slane %v5852_v20, 5  ;;  %v2318_v42 = vsel %vm7815_vm3, %v2313_v34, %v2317_v1  ;;  %v1692_v10 = vor.u32 %v1691_v36, %v1688_v28  ;;  %v5885_v19 = vld [vmem:[%s7797_s18 + $0x60] sm:$0xf]  ;;  %v8679_v34 = vpop.f32.mrf.mxu1 }
 0x19b   : > { %v1702_v11 = vor.u32 %v1701_v39, %v1697_v47  ;;  %v1996_v16 = vrot.slane %v5853_v55, 5  ;;  %v5886_v26 = vld [vmem:[%s7797_s18 + $0x64] sm:$0xf]  ;;  %v3037_v54 = vld [vmem:[#allocation2 + $0x3b8] sm:$0xff]  ;;  %v2328_v60 = vsel %vm7815_vm3, %v2323_v49, %v2327_v61  ;;  %2611 = vst.msk [vmem:[#allocation2 + $0x184] sm:$0xf] %vm426_vm2, %v2318_v42  ;;  %v8677_v33 = vadd.f32 %v8543_v51, %v8534_v38 }
 0x19c   : > { %v1994_v20 = vsel %vm7920_vm6, %v5871_v59, %v1993_v22  ;;  %v1995_v29 = vrot.slane %v1993_v22, 4  ;;  %2117 = vst.msk [vmem:[#allocation2 + $0x1c8] sm:$0xf] %vm426_vm2, %v5885_v19  ;;  %2118 = vst.msk [vmem:[#allocation2 + $0x1ec] sm:$0xf] %vm426_vm2, %v5886_v26  ;;  %v8683_v61 = vadd.f32 %v8387_v23, %v8655_v48  ;;  %v3042_v36 = vld [vmem:[#allocation2 + $0x3dc] sm:$0xff]  ;;  %v8687_v22 = vpop.f32.mrf.mxu0  ;;  %v8692_v26 = vpop.f32.mrf.mxu1 }
 0x19d   : > { %v5923_v1 = vld [vmem:[%s7797_s18 + $0x60] sm:$0xf]  ;;  %v5924_v28 = vld [vmem:[%s7797_s18 + $0x64] sm:$0xf]  ;;  %2612 = vst.msk [vmem:[#allocation2 + $0x1a8] sm:$0xf] %vm426_vm2, %v2328_v60  ;;  %v6139_v38 = vcombine.low %v3037_v54, %v3042_v36 }
 0x19e   : > { %v7236_v39 = vld [vmem:[#allocation2 + $0x3bc] ss:$36 sps:$4 sm:$0xff]   ;;  %v1693_v49 = vrot.slane %v1692_v10, 4  ;;  %v1703_v55 = vrot.slane %v1702_v11, 4  ;;  %2065 = vst.msk [vmem:[#allocation2 + $0x404] sm:$0xf] %vm426_vm2, %v1994_v20  ;;  %v1997_v51 = vsel %vm7920_vm6, %v1995_v29, %v1996_v16  ;;  %v8700_v16 = vpop.f32.mrf.mxu0 }
 0x19f   : > { %v2330_v59 = vshrl.u32 %v5923_v1, 16  ;;  %v5925_v42 = vld [vmem:[%s7797_s18 + $0x68] sm:$0x1]  ;;  %v2333_v19 = vshll.u32 %v5923_v1, 16  ;;  %v2339_v23 = vshll.u32 %v5924_v28, 16  ;;  %4842 = vmatprep.mubr.bf16.mxu0 %v7236_v39  ;;  %v2343_v60 = vshrl.u32 %v5924_v28, 16 }
 0x1a0   : > { %v1698_v10 = vsel %vm7815_vm3, %v1693_v49, %v1697_v47  ;;  %v1708_v11 = vsel %vm7815_vm3, %v1703_v55, %v1707_v52  ;;  %2066 = vst.msk [vmem:[#allocation2 + $0x428] sm:$0xf] %vm426_vm2, %v1997_v51  ;;  %v5806_v20 = vld [vmem:[%s7797_s18 + $0xc0] sm:$0xf]  ;;  %4843 = vmatmul.mubr.bf16.gmra.mxu0 %v6139_v38  ;;  %v2349_v47 = vshll.u32 %v5925_v42, 16  ;;  %v8706_v51 = vpop.f32.mrf.mxu1 }
 0x1a1   : > { %v2332_v54 = vrot.slane %v2330_v59, 4  ;;  %1793 = vst.msk [vmem:[#allocation2 + $0x400] sm:$0xf] %vm426_vm2, %v1698_v10  ;;  %1794 = vst.msk [vmem:[#allocation2 + $0x424] sm:$0xf] %vm426_vm2, %v1708_v11  ;;  %v2335_v29 = vrot.slane %v2333_v19, 5  ;;  %v8709_v11 = vpop.f32.mrf.mxu0 }
 0x1a2   : > { %v2341_v1 = vrot.slane %v2339_v23, 5  ;;  %v5807_v36 = vld [vmem:[%s7797_s18 + $0xc4] sm:$0xf]  ;;  %v1710_v39 = vshrl.u32 %v5806_v20, 16  ;;  %v2345_v49 = vrot.slane %v2343_v60, 4  ;;  %v1713_v55 = vshll.u32 %v5806_v20, 16 }
 0x1a3   : > { %v5808_v52 = vld [vmem:[%s7797_s18 + $0xc8] sm:$0x1]  ;;  %v1719_v59 = vshll.u32 %v5807_v36, 16  ;;  %v1723_v28 = vshrl.u32 %v5807_v36, 16  ;;  %v2336_v8 = vor.u32 %v2335_v29, %v2332_v54  ;;  %v2351_v38 = vrot.slane %v2349_v47, 5 }
 0x1a4   : > { %v1712_v21 = vrot.slane %v1710_v39, 4  ;;  %v1729_v10 = vshll.u32 %v5808_v52, 16  ;;  %v5854_v4 = vld [vmem:[%s7797_s18 + $0xc0] sm:$0xe]  ;;  %v2346_v19 = vor.u32 %v2345_v49, %v2341_v1  ;;  %v1715_v42 = vrot.slane %v1713_v55, 5 }
 0x1a5   : > { %v1721_v23 = vrot.slane %v1719_v59, 5  ;;  %v1725_v60 = vrot.slane %v1723_v28, 4  ;;  %v5855_v35 = vld [vmem:[%s7797_s18 + $0xc4] sm:$0xf]  ;;  %v8714_v20 = vadd.f32 %v8610_v9, %v8655_v48  ;;  %v8718_v54 = vadd.f32 %v8417_v6, %v8655_v48  ;;  %v5856_v59 = vld [vmem:[%s7797_s18 + $0xc8] sm:$0x1]  ;;  %v8726_v9 = vpop.f32.mrf.mxu1 }
 0x1a6   : > { %v7238_v36 = vld [vmem:[#allocation2 + $0x184] ss:$36 sps:$4 sm:$0xff]   ;;  %v8722_v29 = vadd.f32 %v8635_v25, %v8655_v48  ;;  %v2337_v47 = vrot.slane %v2336_v8, 4  ;;  %v2347_v39 = vrot.slane %v2346_v19, 4  ;;  %v1716_v49 = vor.u32 %v1715_v42, %v1712_v21  ;;  %v5887_v28 = vld [vmem:[%s7797_s18 + $0x6c] sm:$0xf]  ;;  %v8732_v25 = vpop.f32.mrf.mxu0 }
 0x1a7   : > { %v7240_v2 = vld [vmem:[#allocation2 + $0x180] ss:$36 sps:$4 sm:$0xff]   ;;  %v1726_v52 = vor.u32 %v1725_v60, %v1721_v23  ;;  %v1731_v55 = vrot.slane %v1729_v10, 5  ;;  %4939 = vmatprep.mubr.bf16.mxu1 %v7238_v36  ;;  %v5872_v53 = vrot.slane %v5854_v4, 9  ;;  %v2000_v6 = vrot.slane %v5855_v35, 5  ;;  %v8742_v42 = vpop.f32.mrf.mxu1 }
 0x1a8   : > { %v2342_v14 = vsel %vm7815_vm3, %v2337_v47, %v2341_v1  ;;  %v2003_v13 = vrot.slane %v5856_v59, 5  ;;  %v5888_v63 = vld [vmem:[%s7797_s18 + $0x70] sm:$0xf]  ;;  %2119 = vst.msk [vmem:[#allocation2 + $0x210] sm:$0xf] %vm426_vm2, %v5887_v28  ;;  %4940 = vmatmul.mubr.bf16.gmra.mxu1 %v7240_v2  ;;  %v3047_v8 = vld [vmem:[#allocation2 + $0x400] sm:$0xff]  ;;  %v2352_v19 = vsel %vm7815_vm3, %v2347_v39, %v2351_v38  ;;  %v8739_v35 = vadd.f32 %v8471_v37, %v8655_v48  ;;  %v8753_v47 = vpop.f32.mrf.mxu0 }
 0x1a9   : > { %v3052_v21 = vld [vmem:[#allocation2 + $0x424] sm:$0xff]  ;;  %2613 = vst.msk [vmem:[#allocation2 + $0x1cc] sm:$0xf] %vm426_vm2, %v2342_v14  ;;  %v1717_v4 = vrot.slane %v1716_v49, 4  ;;  %v1727_v1 = vrot.slane %v1726_v52, 4  ;;  %v2001_v38 = vsel %vm7920_vm6, %v5872_v53, %v2000_v6  ;;  %v2002_v60 = vrot.slane %v2000_v6, 4  ;;  %v8762_v28 = vpop.f32.mrf.mxu1 }
 0x1aa   : > { %v7241_v10 = vld [vmem:[#allocation2 + $0x404] ss:$36 sps:$4 sm:$0xff]   ;;  %2120 = vst.msk [vmem:[#allocation2 + $0x234] sm:$0xf] %vm426_vm2, %v5888_v63  ;;  %2614 = vst.msk [vmem:[#allocation2 + $0x1f0] sm:$0xf] %vm426_vm2, %v2352_v19  ;;  %v6148_v2 = vcombine.low %v3047_v8, %v3052_v21  ;;  %v8751_v37 = vadd.f32 %v8578_v56, %v8568_v43  ;;  %v8770_v8 = vpop.f32.mrf.mxu0  ;;  %v8774_v21 = vadd.f32 %v8648_v5, %v8655_v48 }
 0x1ab   : > { %v5926_v14 = vld [vmem:[%s7797_s18 + $0x6c] sm:$0xf]  ;;  %v5927_v36 = vld [vmem:[%s7797_s18 + $0x70] sm:$0xf]  ;;  %4850 = vmatprep.mubr.bf16.mxu0 %v7241_v10  ;;  %v1722_v63 = vsel %vm7815_vm3, %v1717_v4, %v1721_v23  ;;  %v1732_v39 = vsel %vm7815_vm3, %v1727_v1, %v1731_v55  ;;  %2067 = vst.msk [vmem:[#allocation2 + $0x44c] sm:$0xf] %vm426_vm2, %v2001_v38  ;;  %v2004_v43 = vsel %vm7920_vm6, %v2002_v60, %v2003_v13 }
 0x1ac   : > { %v5928_v53 = vld [vmem:[%s7797_s18 + $0x74] sm:$0x1]  ;;  %v2354_v49 = vshrl.u32 %v5926_v14, 16  ;;  %v2357_v52 = vshll.u32 %v5926_v14, 16  ;;  %v5889_v59 = vld [vmem:[%s7797_s18 + $0x78] sm:$0xf]  ;;  %4851 = vmatmul.mubr.bf16.gmra.mxu0 %v6148_v2  ;;  %v8779_v13 = vadd.f32 %v8537_v50, %v8655_v48  ;;  %v8784_v2 = vpop.f32.mrf.mxu1 }
 0x1ad   : > { %1795 = vst.msk [vmem:[#allocation2 + $0x448] sm:$0xf] %vm426_vm2, %v1722_v63  ;;  %1796 = vst.msk [vmem:[#allocation2 + $0x46c] sm:$0xf] %vm426_vm2, %v1732_v39  ;;  %v2363_v56 = vshll.u32 %v5927_v36, 16  ;;  %v2367_v23 = vshrl.u32 %v5927_v36, 16  ;;  %v8787_v63 = vpop.f32.mrf.mxu0 }
 0x1ae   : > { %v2373_v55 = vshll.u32 %v5928_v53, 16  ;;  %v5890_v6 = vld [vmem:[%s7797_s18 + $0x7c] sm:$0xf]  ;;  %2121 = vst.msk [vmem:[#allocation2 + $0x258] sm:$0xf] %vm426_vm2, %v5889_v59  ;;  %9855 = vst [vmem:[#allocation21_spill] sm:$0xff] %v8770_v8  ;;  %v8790_v59 = vpop.f32.mrf.mxu1 }
 0x1af   : > { %2068 = vst.msk [vmem:[#allocation2 + $0x470] sm:$0xf] %vm426_vm2, %v2004_v43  ;;  %v2356_v10 = vrot.slane %v2354_v49, 4  ;;  %v2359_v19 = vrot.slane %v2357_v52, 5  ;;  %2122 = vst.msk [vmem:[#allocation2 + $0x27c] sm:$0xf] %vm426_vm2, %v5890_v6 }
 0x1b0   : > { %v5929_v4 = vld [vmem:[%s7797_s18 + $0x78] sm:$0xf]  ;;  %v5930_v1 = vld [vmem:[%s7797_s18 + $0x7c] sm:$0xf]  ;;  %9856 = vst [vmem:[#allocation22_spill] sm:$0xff] %v8784_v2  ;;  %v2365_v38 = vrot.slane %v2363_v56, 5  ;;  %v8795_v2 = vadd.f32 %v8677_v33, %v8655_v48 }
 0x1b1   : > { %v2369_v60 = vrot.slane %v2367_v23, 4  ;;  %v2375_v5 = vrot.slane %v2373_v55, 5  ;;  %v5931_v14 = vld [vmem:[%s7797_s18 + $0x80] sm:$0x1]  ;;  %v2378_v36 = vshrl.u32 %v5929_v4, 16  ;;  %9857 = vst [vmem:[#allocation23_spill] sm:$0xff] %v8787_v63  ;;  %v2360_v39 = vor.u32 %v2359_v19, %v2356_v10 }
 0x1b2   : > { %v2381_v53 = vshll.u32 %v5929_v4, 16  ;;  %v2387_v49 = vshll.u32 %v5930_v1, 16  ;;  %v2391_v52 = vshrl.u32 %v5930_v1, 16  ;;  %v5953_v50 = vld [vmem:[%s7797_s18 + $0x18] sm:$0xe]  ;;  %9858 = vst [vmem:[#allocation24_spill] sm:$0xff] %v8790_v59  ;;  %v6561_v10 = vadd.f32 %v8580_v58, %v8570_v44  ;;  %v8801_v4 = vpop.f32.mrf.mxu0  ;;  %v8803_v1 = vpop.f32.mrf.mxu1 }
 0x1b3   : > { %v2370_v43 = vor.u32 %v2369_v60, %v2365_v38  ;;  %v2380_v6 = vrot.slane %v2378_v36, 4  ;;  %v2397_v41 = vshll.u32 %v5931_v14, 16  ;;  %v5954_v24 = vld [vmem:[%s7797_s18 + $0x1c] sm:$0xf]  ;;  %v6001_v8 = vrot.slane %v5953_v50, 9  ;;  %9859 = vst [vmem:[#allocation25_spill] sm:$0xff] %v8795_v2 }
 0x1b4   : > { %v7243_v56 = vld [vmem:[#allocation2 + $0x1cc] ss:$36 sps:$4 sm:$0xff]   ;;  %v2361_v55 = vrot.slane %v2360_v39, 4  ;;  %v6564_v19 = vadd.f32 %v8592_v32, %v8588_v15  ;;  %9860 = vst [vmem:[#allocation26_spill] sm:$0xff] %v8803_v1  ;;  %v2383_v14 = vrot.slane %v2381_v53, 5  ;;  %v2389_v36 = vrot.slane %v2387_v49, 5  ;;  %v8809_v15 = vpop.f32.mrf.mxu0  ;;  %v8811_v32 = vpop.f32.mrf.mxu1 }
 0x1b5   : > { %v7245_v23 = vld [vmem:[#allocation2 + $0x1c8] ss:$36 sps:$4 sm:$0xff]   ;;  %v2371_v60 = vrot.slane %v2370_v43, 4  ;;  %v2393_v50 = vrot.slane %v2391_v52, 4  ;;  %v5955_v39 = vld [vmem:[%s7797_s18 + $0x20] sm:$0x1]  ;;  %4947 = vmatprep.mubr.bf16.mxu1 %v7243_v56 }
 0x1b6   : > { %v3057_v33 = vld [vmem:[#allocation2 + $0x448] sm:$0xff]  ;;  %v2366_v59 = vsel %vm7815_vm3, %v2361_v55, %v2365_v38  ;;  %v2399_v2 = vrot.slane %v2397_v41, 5  ;;  %v2731_v44 = vrot.slane %v5954_v24, 5  ;;  %v2734_v58 = vrot.slane %v5955_v39, 5  ;;  %v5956_v63 = vld [vmem:[%s7797_s18 + $0x24] sm:$0xe]  ;;  %4948 = vmatmul.mubr.bf16.gmra.mxu1 %v7245_v23 }
 0x1b7   : > { %9861 = vst [vmem:[#allocation27_spill] sm:$0xff] %v8809_v15  ;;  %9862 = vst [vmem:[#allocation28_spill] sm:$0xff] %v8811_v32  ;;  %v3062_v53 = vld [vmem:[#allocation2 + $0x46c] sm:$0xff]  ;;  %v2376_v52 = vsel %vm7815_vm3, %v2371_v60, %v2375_v5  ;;  %v2384_v43 = vor.u32 %v2383_v14, %v2380_v6  ;;  %v2394_v38 = vor.u32 %v2393_v50, %v2389_v36  ;;  %v5957_v41 = vld [vmem:[%s7797_s18 + $0x28] sm:$0xf]  ;;  %v6002_v24 = vrot.slane %v5956_v63, 9  ;;  %v8822_v15 = vpop.f32.mrf.mxu0 }
 0x1b8   : > { %v7247_v49 = vld [vmem:[#allocation2 + $0x44c] ss:$36 sps:$4 sm:$0xff]   ;;  %2615 = vst.msk [vmem:[#allocation2 + $0x214] sm:$0xf] %vm426_vm2, %v2366_v59  ;;  %2616 = vst.msk [vmem:[#allocation2 + $0x238] sm:$0xf] %vm426_vm2, %v2376_v52  ;;  %v6157_v56 = vcombine.low %v3057_v33, %v3062_v53  ;;  %v2732_v55 = vsel %vm7920_vm6, %v6001_v8, %v2731_v44  ;;  %v8826_v6 = vadd.f32 %v6561_v10, %v8683_v61  ;;  %v8830_v8 = vpop.f32.mrf.mxu1 }
 0x1b9   : > { %v2733_v39 = vrot.slane %v2731_v44, 4  ;;  %v5958_v23 = vld [vmem:[%s7797_s18 + $0x2c] sm:$0x1]  ;;  %v2738_v32 = vrot.slane %v5957_v41, 5  ;;  %v5891_v1 = vld [vmem:[%s7797_s18 + $0x84] sm:$0xf]  ;;  %4858 = vmatprep.mubr.bf16.mxu0 %v7247_v49  ;;  %v6476_v44 = vadd.f32 %v8590_v31, %v8586_v12  ;;  %v8850_v12 = vadd.f32 %v6564_v19, %v8714_v20 }
 0x1ba   : > { %v2385_v5 = vrot.slane %v2384_v43, 4  ;;  %v2395_v59 = vrot.slane %v2394_v38, 4  ;;  %2873 = vst.msk [vmem:[#allocation2 + $0x20] sm:$0xf] %vm426_vm2, %v2732_v55  ;;  %v2741_v63 = vrot.slane %v5958_v23, 5  ;;  %4859 = vmatmul.mubr.bf16.gmra.mxu0 %v6157_v56  ;;  %v8861_v55 = vpop.f32.mrf.mxu1 }
 0x1bb   : > { %v5892_v60 = vld [vmem:[%s7797_s18 + $0x88] sm:$0xf]  ;;  %2123 = vst.msk [vmem:[#allocation2 + $0x2a0] sm:$0xf] %vm426_vm2, %v5891_v1  ;;  %v2735_v14 = vsel %vm7920_vm6, %v2733_v39, %v2734_v58  ;;  %v2739_v50 = vsel %vm7920_vm6, %v6002_v24, %v2738_v32  ;;  %v2740_v33 = vrot.slane %v2738_v32, 4  ;;  %v8841_v1 = vpop.f32.mrf.mxu0 }
 0x1bc   : > { %2124 = vst.msk [vmem:[#allocation2 + $0x2c4] sm:$0xf] %vm426_vm2, %v5892_v60  ;;  %v5932_v61 = vld [vmem:[%s7797_s18 + $0x84] sm:$0xf]  ;;  %v5933_v10 = vld [vmem:[%s7797_s18 + $0x88] sm:$0xf]  ;;  %v2390_v53 = vsel %vm7815_vm3, %v2385_v5, %v2389_v36  ;;  %v2400_v58 = vsel %vm7815_vm3, %v2395_v59, %v2399_v2 }
 0x1bd   : > { %2874 = vst.msk [vmem:[#allocation2 + $0x44] sm:$0xf] %vm426_vm2, %v2735_v14  ;;  %2875 = vst.msk [vmem:[#allocation2 + $0x68] sm:$0xf] %vm426_vm2, %v2739_v50  ;;  %v5934_v31 = vld [vmem:[%s7797_s18 + $0x8c] sm:$0x1]  ;;  %v2742_v36 = vsel %vm7920_vm6, %v2740_v33, %v2741_v63  ;;  %v8863_v60 = vpop.f32.mrf.mxu0  ;;  %v8867_v50 = vadd.f32 %v8751_v37, %v8655_v48 }
 0x1be   : > { %v2402_v32 = vshrl.u32 %v5932_v61, 16  ;;  %v5959_v49 = vld [vmem:[%s7797_s18 + $0x30] sm:$0xe]  ;;  %2617 = vst.msk [vmem:[#allocation2 + $0x25c] sm:$0xf] %vm426_vm2, %v2390_v53  ;;  %v2405_v52 = vshll.u32 %v5932_v61, 16  ;;  %v6479_v61 = vadd.f32 %v8626_v45, %v8615_v17  ;;  %v8875_v53 = vpop.f32.mrf.mxu1 }
 0x1bf   : > { %2618 = vst.msk [vmem:[#allocation2 + $0x280] sm:$0xf] %vm426_vm2, %v2400_v58  ;;  %v2411_v2 = vshll.u32 %v5933_v10, 16  ;;  %v2415_v43 = vshrl.u32 %v5933_v10, 16  ;;  %v5960_v38 = vld [vmem:[%s7797_s18 + $0x34] sm:$0xf]  ;;  %v6567_v10 = vadd.f32 %v8617_v18, %v8600_v62  ;;  %v8878_v58 = vadd.f32 %v6476_v44, %v8655_v48 }
 0x1c0   : > { %2876 = vst.msk [vmem:[#allocation2 + $0x8c] sm:$0xf] %vm426_vm2, %v2742_v36  ;;  %v2404_v41 = vrot.slane %v2402_v32, 4  ;;  %v2421_v24 = vshll.u32 %v5934_v31, 16  ;;  %v5961_v20 = vld [vmem:[%s7797_s18 + $0x38] sm:$0x1]  ;;  %v8882_v36 = vpop.f32.mrf.mxu0  ;;  %v6570_v18 = vadd.f32 %v8643_v0, %v8628_v46  ;;  %v8891_v44 = vpop.f32.mrf.mxu1  ;;  %v8905_v0 = vadd.f32 %v6479_v61, %v8655_v48 }
 0x1c1   : > { %v6003_v19 = vrot.slane %v5959_v49, 9  ;;  %v2745_v56 = vrot.slane %v5960_v38, 5  ;;  %v2407_v39 = vrot.slane %v2405_v52, 5  ;;  %v2413_v23 = vrot.slane %v2411_v2, 5  ;;  %v7249_v63 = vld [vmem:[#allocation2 + $0x214] ss:$36 sps:$4 sm:$0xff]  }
 0x1c2   : > { %v2417_v5 = vrot.slane %v2415_v43, 4  ;;  %v2748_v59 = vrot.slane %v5961_v20, 5  ;;  %v7251_v14 = vld [vmem:[#allocation2 + $0x210] ss:$36 sps:$4 sm:$0xff]   ;;  %v5962_v37 = vld [vmem:[%s7797_s18 + $0x3c] sm:$0xe]  ;;  %4955 = vmatprep.mubr.bf16.mxu1 %v7249_v63  ;;  %v8887_v62 = vadd.f32 %v6567_v10, %v8718_v54  ;;  %v6573_v54 = vadd.f32 %v8679_v34, %v8658_v3  ;;  %v8901_v20 = vpop.f32.mrf.mxu0 }
 0x1c3   : > { %v2746_v33 = vsel %vm7920_vm6, %v6003_v19, %v2745_v56  ;;  %v2408_v31 = vor.u32 %v2407_v39, %v2404_v41  ;;  %v2747_v49 = vrot.slane %v2745_v56, 4  ;;  %v2423_v52 = vrot.slane %v2421_v24, 5  ;;  %v5963_v2 = vld [vmem:[%s7797_s18 + $0x40] sm:$0xf]  ;;  %v5964_v17 = vld [vmem:[%s7797_s18 + $0x44] sm:$0x1]  ;;  %4956 = vmatmul.mubr.bf16.gmra.mxu1 %v7251_v14 }
 0x1c4   : > { %v2418_v32 = vor.u32 %v2417_v5, %v2413_v23  ;;  %2877 = vst.msk [vmem:[#allocation2 + $0xb0] sm:$0xf] %vm426_vm2, %v2746_v33  ;;  %v6004_v45 = vrot.slane %v5962_v37, 9  ;;  %v7255_v43 = vld [vmem:[#allocation2 + $0x20] ss:$36 sps:$4 sm:$0xff]   ;;  %v6482_v41 = vadd.f32 %v8650_v30, %v8641_v7  ;;  %v6485_v24 = vadd.f32 %v8687_v22, %v8664_v27 }
 0x1c5   : > { %v2749_v38 = vsel %vm7920_vm6, %v2747_v49, %v2748_v59  ;;  %v2409_v19 = vrot.slane %v2408_v31, 4  ;;  %v8908_v56 = vadd.f32 %v6570_v18, %v8722_v29  ;;  %v7252_v7 = vld [vmem:[#allocation2 + $0x258] ss:$36 sps:$4 sm:$0xff]   ;;  %6919 = vmatprep.mubr.bf16.mxu0 %v7255_v43  ;;  %v8911_v3 = vadd.f32 %v6573_v54, %v8739_v35  ;;  %v8921_v29 = vpop.f32.mrf.mxu0  ;;  %v5894_v63 = vld [vmem:[%s7797_s18 + $0x94] sm:$0xf] }
 0x1c6   : > { %v2419_v46 = vrot.slane %v2418_v32, 4  ;;  %2878 = vst.msk [vmem:[#allocation2 + $0xd4] sm:$0xf] %vm426_vm2, %v2749_v38  ;;  %v7254_v30 = vld [vmem:[#allocation2 + $0x25c] ss:$36 sps:$4 sm:$0xff]   ;;  %v6488_v34 = vadd.f32 %v8709_v11, %v8700_v16  ;;  %v6576_v22 = vadd.f32 %v8706_v51, %v8692_v26  ;;  %v8919_v39 = vadd.f32 %v8753_v47, %v8732_v25  ;;  %v8929_v26 = vpop.f32.mrf.mxu1 }
 0x1c7   : > { %v7256_v27 = vld [vmem:[#allocation2 + $0x68] ss:$36 sps:$4 sm:$0xff]   ;;  %v2414_v5 = vsel %vm7815_vm3, %v2409_v19, %v2413_v23  ;;  %v2752_v59 = vrot.slane %v5963_v2, 5  ;;  %v2755_v16 = vrot.slane %v5964_v17, 5  ;;  %v5893_v11 = vld [vmem:[%s7797_s18 + $0x90] sm:$0xf]  ;;  %4963 = vmatprep.mubr.bf16.mxu1 %v7254_v30  ;;  %v8934_v51 = vadd.f32 %v6482_v41, %v8655_v48  ;;  %v8953_v18 = vpop.f32.mrf.mxu0 }
 0x1c8   : > { %v2424_v35 = vsel %vm7815_vm3, %v2419_v46, %v2423_v52  ;;  %6920 = vmatmul.mubr.bf16.vlgmr.msra.gmra.mxu0 %v7256_v27  ;;  %2619 = vst.msk [vmem:[#allocation2 + $0x2a4] sm:$0xf] %vm426_vm2, %v2414_v5  ;;  %2125 = vst.msk [vmem:[#allocation2 + $0x2e8] sm:$0xf] %vm426_vm2, %v5893_v11  ;;  %v5935_v25 = vld [vmem:[%s7797_s18 + $0x90] sm:$0xf]  ;;  %v8942_v14 = vadd.f32 %v6485_v24, %v8655_v48  ;;  %v8945_v33 = vadd.f32 %v6576_v22, %v8774_v21  ;;  %v8962_v54 = vpop.f32.mrf.mxu1 }
 0x1c9   : > { %2620 = vst.msk [vmem:[#allocation2 + $0x2c8] sm:$0xf] %vm426_vm2, %v2424_v35  ;;  %2126 = vst.msk [vmem:[#allocation2 + $0x30c] sm:$0xf] %vm426_vm2, %v5894_v63  ;;  %v5936_v47 = vld [vmem:[%s7797_s18 + $0x94] sm:$0xf]  ;;  %v2753_v61 = vsel %vm7920_vm6, %v6004_v45, %v2752_v59  ;;  %v6579_v17 = vadd.f32 %v8742_v42, %v8726_v9  ;;  %v8960_v24 = vadd.f32 %v6488_v34, %v8655_v48  ;;  %v8970_v22 = vpop.f32.mrf.mxu0 }
 0x1ca   : > { %v5937_v23 = vld [vmem:[%s7797_s18 + $0x98] sm:$0x1]  ;;  %v2754_v10 = vrot.slane %v2752_v59, 4  ;;  %v2426_v31 = vshrl.u32 %v5935_v25, 16  ;;  %v2429_v32 = vshll.u32 %v5935_v25, 16  ;;  %v2435_v49 = vshll.u32 %v5936_v47, 16 }
 0x1cb   : > { %2879 = vst.msk [vmem:[#allocation2 + $0xf8] sm:$0xf] %vm426_vm2, %v2753_v61  ;;  %v2439_v37 = vshrl.u32 %v5936_v47, 16  ;;  %v2445_v52 = vshll.u32 %v5937_v23, 16  ;;  %v5965_v2 = vld [vmem:[%s7797_s18 + $0x48] sm:$0xe]  ;;  %4964 = vmatmul.mubr.bf16.gmra.mxu1 %v7252_v7  ;;  %v8966_v46 = vadd.f32 %v6579_v17, %v8779_v13 }
 0x1cc   : > { %v2756_v21 = vsel %vm7920_vm6, %v2754_v10, %v2755_v16  ;;  %v2428_v43 = vrot.slane %v2426_v31, 4  ;;  %v2431_v38 = vrot.slane %v2429_v32, 5  ;;  %v5966_v45 = vld [vmem:[%s7797_s18 + $0x4c] sm:$0xf]  ;;  %v5967_v41 = vld [vmem:[%s7797_s18 + $0x50] sm:$0x1]  ;;  %v8973_v16 = vpop.f32.mrf.mxu1  ;;  %v8979_v31 = vpop.f32.mrf.mxu0 }
 0x1cd   : > { %v7260_v19 = vld [vmem:[#allocation2 + $0xb0] ss:$36 sps:$4 sm:$0xff]   ;;  %2880 = vst.msk [vmem:[#allocation2 + $0x11c] sm:$0xf] %vm426_vm2, %v2756_v21  ;;  %v2437_v9 = vrot.slane %v2435_v49, 5  ;;  %v2441_v42 = vrot.slane %v2439_v37, 4 }
 0x1ce   : > { %v9863_v30 = vld [vmem:[#allocation22_spill] sm:$0xff]  ;;  %v2432_v34 = vor.u32 %v2431_v38, %v2428_v43  ;;  %v2447_v5 = vrot.slane %v2445_v52, 5  ;;  %v6005_v35 = vrot.slane %v5965_v2, 9  ;;  %v2759_v59 = vrot.slane %v5966_v45, 5  ;;  %v5968_v7 = vld [vmem:[%s7797_s18 + $0x54] sm:$0xe]  ;;  %6923 = vmatprep.mubr.bf16.mxu0 %v7260_v19  ;;  %v8986_v17 = vpop.f32.mrf.mxu1 }
 0x1cf   : > { %v6582_v27 = vadd.f32 %v9863_v30, %v8762_v28  ;;  %v2442_v11 = vor.u32 %v2441_v42, %v2437_v9  ;;  %v2762_v63 = vrot.slane %v5967_v41, 5  ;;  %v5969_v25 = vld [vmem:[%s7797_s18 + $0x58] sm:$0xf]  ;;  %v5970_v47 = vld [vmem:[%s7797_s18 + $0x5c] sm:$0x1]  ;;  %v6006_v23 = vrot.slane %v5968_v7, 9  ;;  %v8991_v42 = vpop.f32.mrf.mxu0 }
 0x1d0   : > { %v9864_v13 = vld [vmem:[#allocation21_spill] sm:$0xff]  ;;  %v9865_v61 = vld [vmem:[#allocation23_spill] sm:$0xff]  ;;  %v2433_v32 = vrot.slane %v2432_v34, 4  ;;  %v2760_v49 = vsel %vm7920_vm6, %v6005_v35, %v2759_v59  ;;  %v2761_v37 = vrot.slane %v2759_v59, 4  ;;  %v2766_v38 = vrot.slane %v5969_v25, 5  ;;  %v9868_v59 = vld [vmem:[#allocation24_spill] sm:$0xff] }
 0x1d1   : > { %v6494_v10 = vadd.f32 %v9865_v61, %v9864_v13  ;;  %v7257_v28 = vld [vmem:[#allocation2 + $0x2a0] ss:$36 sps:$4 sm:$0xff]   ;;  %v2443_v43 = vrot.slane %v2442_v11, 4  ;;  %2881 = vst.msk [vmem:[#allocation2 + $0x140] sm:$0xf] %vm426_vm2, %v2760_v49  ;;  %v2769_v45 = vrot.slane %v5970_v47, 5  ;;  %v9003_v25 = vadd.f32 %v8841_v1, %v8822_v15 }
 0x1d2   : > { %v9866_v52 = vld [vmem:[#allocation25_spill] sm:$0xff]  ;;  %v9867_v41 = vld [vmem:[#allocation27_spill] sm:$0xff]  ;;  %v2438_v30 = vsel %vm7815_vm3, %v2433_v32, %v2437_v9  ;;  %v5895_v34 = vld [vmem:[%s7797_s18 + $0x9c] sm:$0xf]  ;;  %v2768_v47 = vrot.slane %v2766_v38, 4  ;;  %v9019_v13 = vadd.f32 %v8919_v39, %v8655_v48  ;;  %v6503_v39 = vadd.f32 %v8882_v36, %v8863_v60 }
 0x1d3   : > { %v8984_v2 = vadd.f32 %v6582_v27, %v9866_v52  ;;  %v7259_v21 = vld [vmem:[#allocation2 + $0x2a4] ss:$36 sps:$4 sm:$0xff]   ;;  %v6497_v19 = vadd.f32 %v9867_v41, %v8801_v4  ;;  %v2763_v27 = vsel %vm7920_vm6, %v2761_v37, %v2762_v63  ;;  %v5896_v35 = vld [vmem:[%s7797_s18 + $0xa0] sm:$0xf]  ;;  %v9005_v4 = vpop.f32.mrf.mxu1  ;;  %v2448_v9 = vsel %vm7815_vm3, %v2443_v43, %v2447_v5  ;;  %2621 = vst.msk [vmem:[#allocation2 + $0x2ec] sm:$0xf] %vm426_vm2, %v2438_v30  ;;  %v9034_v52 = vpop.f32.mrf.mxu0 }
 0x1d4   : > { %v9869_v7 = vld [vmem:[#allocation26_spill] sm:$0xff]  ;;  %4971 = vmatprep.mubr.bf16.mxu1 %v7259_v21  ;;  %2882 = vst.msk [vmem:[#allocation2 + $0x164] sm:$0xf] %vm426_vm2, %v2763_v27  ;;  %v2767_v63 = vsel %vm7920_vm6, %v6006_v23, %v2766_v38  ;;  %2127 = vst.msk [vmem:[#allocation2 + $0x330] sm:$0xf] %vm426_vm2, %v5895_v34  ;;  %v9025_v23 = vadd.f32 %v6494_v10, %v8655_v48  ;;  %v9870_v49 = vld [vmem:[#allocation28_spill] sm:$0xff]  ;;  %v2770_v10 = vsel %vm7920_vm6, %v2768_v47, %v2769_v45 }
 0x1d5   : > { %v6585_v11 = vadd.f32 %v9869_v7, %v9868_v59  ;;  %2128 = vst.msk [vmem:[#allocation2 + $0x354] sm:$0xf] %vm426_vm2, %v5896_v35  ;;  %v5938_v15 = vld [vmem:[%s7797_s18 + $0x9c] sm:$0xf]  ;;  %v5939_v1 = vld [vmem:[%s7797_s18 + $0xa0] sm:$0xf]  ;;  %v6588_v37 = vadd.f32 %v8830_v8, %v9870_v49  ;;  %v9036_v21 = vpop.f32.mrf.mxu1  ;;  %4972 = vmatmul.mubr.bf16.gmra.mxu1 %v7257_v28  ;;  %v9045_v36 = vadd.f32 %v6497_v19, %v8655_v48  ;;  %v9050_v45 = vpop.f32.mrf.mxu0 }
 0x1d6   : > { %v7261_v5 = vld [vmem:[#allocation2 + $0xf8] ss:$36 sps:$4 sm:$0xff]   ;;  %2622 = vst.msk [vmem:[#allocation2 + $0x310] sm:$0xf] %vm426_vm2, %v2448_v9  ;;  %2883 = vst.msk [vmem:[#allocation2 + $0x188] sm:$0xf] %vm426_vm2, %v2767_v63 }
 0x1d7   : > { %v5940_v61 = vld [vmem:[%s7797_s18 + $0xa4] sm:$0x1]  ;;  %v9028_v32 = vadd.f32 %v6585_v11, %v8867_v50  ;;  %v2450_v43 = vshrl.u32 %v5938_v15, 16  ;;  %v2453_v38 = vshll.u32 %v5938_v15, 16  ;;  %v2459_v41 = vshll.u32 %v5939_v1, 16  ;;  %6924 = vmatmul.mubr.bf16.gmra.mxu0 %v7261_v5  ;;  %v9052_v34 = vpop.f32.mrf.mxu1 }
 0x1d8   : > { %v5971_v50 = vld [vmem:[%s7797_s18 + $0x60] sm:$0xe]  ;;  %2884 = vst.msk [vmem:[#allocation2 + $0x1ac] sm:$0xf] %vm426_vm2, %v2770_v10  ;;  %v2463_v8 = vshrl.u32 %v5939_v1, 16  ;;  %v2469_v30 = vshll.u32 %v5940_v61, 16  ;;  %v9048_v28 = vadd.f32 %v6588_v37, %v8878_v58  ;;  %v6591_v37 = vadd.f32 %v8875_v53, %v8861_v55 }
 0x1d9   : > { %v5972_v27 = vld [vmem:[%s7797_s18 + $0x64] sm:$0xf]  ;;  %v5973_v60 = vld [vmem:[%s7797_s18 + $0x68] sm:$0x1]  ;;  %v2452_v35 = vrot.slane %v2450_v43, 4  ;;  %v2455_v59 = vrot.slane %v2453_v38, 5  ;;  %v9055_v5 = vpop.f32.mrf.mxu1  ;;  %v6506_v10 = vadd.f32 %v8921_v29, %v8901_v20  ;;  %v9063_v43 = vpop.f32.mrf.mxu0  ;;  %v9074_v53 = vadd.f32 %v9003_v25, %v8655_v48 }
 0x1da   : > { %v2461_v7 = vrot.slane %v2459_v41, 5  ;;  %v6007_v11 = vrot.slane %v5971_v50, 9  ;;  %v5974_v9 = vld [vmem:[%s7797_s18 + $0x6c] sm:$0xe]  ;;  %v2465_v63 = vrot.slane %v2463_v8, 4  ;;  %v2471_v47 = vrot.slane %v2469_v30, 5 }
 0x1db   : > { %v2773_v15 = vrot.slane %v5972_v27, 5  ;;  %v2776_v1 = vrot.slane %v5973_v60, 5  ;;  %v2456_v19 = vor.u32 %v2455_v59, %v2452_v35  ;;  %v5975_v61 = vld [vmem:[%s7797_s18 + $0x70] sm:$0xf]  ;;  %v5976_v49 = vld [vmem:[%s7797_s18 + $0x74] sm:$0x1]  ;;  %v6594_v30 = vadd.f32 %v8929_v26, %v8891_v44  ;;  %v9069_v27 = vpop.f32.mrf.mxu1 }
 0x1dc   : > { %v6008_v58 = vrot.slane %v5974_v9, 9  ;;  %v7265_v38 = vld [vmem:[#allocation2 + $0x140] ss:$36 sps:$4 sm:$0xff]   ;;  %v2466_v41 = vor.u32 %v2465_v63, %v2461_v7  ;;  %v7262_v60 = vld [vmem:[#allocation2 + $0x2e8] ss:$36 sps:$4 sm:$0xff]   ;;  %v9077_v20 = vadd.f32 %v6591_v37, %v8905_v0  ;;  %v9081_v29 = vadd.f32 %v8970_v22, %v8953_v18 }
 0x1dd   : > { %v2774_v50 = vsel %vm7920_vm6, %v6007_v11, %v2773_v15  ;;  %v2775_v8 = vrot.slane %v2773_v15, 4  ;;  %v7264_v35 = vld [vmem:[#allocation2 + $0x2ec] ss:$36 sps:$4 sm:$0xff]   ;;  %v2457_v55 = vrot.slane %v2456_v19, 4  ;;  %6927 = vmatprep.mubr.bf16.mxu0 %v7265_v38  ;;  %v2780_v59 = vrot.slane %v5975_v61, 5  ;;  %v9085_v9 = vpop.f32.mrf.mxu1 }
 0x1de   : > { %2885 = vst.msk [vmem:[#allocation2 + $0x1d0] sm:$0xf] %vm426_vm2, %v2774_v50  ;;  %v2467_v44 = vrot.slane %v2466_v41, 4  ;;  %v2783_v11 = vrot.slane %v5976_v49, 5  ;;  %4979 = vmatprep.mubr.bf16.mxu1 %v7264_v35  ;;  %v5897_v18 = vld [vmem:[%s7797_s18 + $0xa8] sm:$0xf]  ;;  %v9092_v22 = vadd.f32 %v6503_v39, %v8655_v48  ;;  %v9095_v63 = vadd.f32 %v6594_v30, %v8934_v51 }
 0x1df   : > { %v2777_v26 = vsel %vm7920_vm6, %v2775_v8, %v2776_v1  ;;  %v7266_v25 = vld [vmem:[#allocation2 + $0x188] ss:$36 sps:$4 sm:$0xff]   ;;  %v2462_v0 = vsel %vm7815_vm3, %v2457_v55, %v2461_v7  ;;  %v6597_v15 = vadd.f32 %v8973_v16, %v8962_v54  ;;  %v6517_v1 = vpop.f32.mrf.mxu0  ;;  %4980 = vmatmul.mubr.bf16.gmra.mxu1 %v7262_v60  ;;  %v2781_v7 = vsel %vm7920_vm6, %v6008_v58, %v2780_v59  ;;  %v9109_v16 = vpop.f32.mrf.mxu1  ;;  %v5943_v49 = vld [vmem:[%s7797_s18 + $0xb0] sm:$0x1]  ;;  %v5977_v30 = vld [vmem:[%s7797_s18 + $0x78] sm:$0xe] }
 0x1e0   : > { %2886 = vst.msk [vmem:[#allocation2 + $0x1f4] sm:$0xf] %vm426_vm2, %v2777_v26  ;;  %v2472_v19 = vsel %vm7815_vm3, %v2467_v44, %v2471_v47  ;;  %2623 = vst.msk [vmem:[#allocation2 + $0x334] sm:$0xf] %vm426_vm2, %v2462_v0  ;;  %v2782_v39 = vrot.slane %v2780_v59, 4  ;;  %v6512_v54 = vadd.f32 %v8991_v42, %v8979_v31  ;;  %6928 = vmatmul.mubr.bf16.gmra.mxu0 %v7266_v25  ;;  %v2493_v8 = vshll.u32 %v5943_v49, 16 }
 0x1e1   : > { %v5898_v61 = vld [vmem:[%s7797_s18 + $0xac] sm:$0xf]  ;;  %2129 = vst.msk [vmem:[#allocation2 + $0x378] sm:$0xf] %vm426_vm2, %v5897_v18  ;;  %v5941_v51 = vld [vmem:[%s7797_s18 + $0xa8] sm:$0xf]  ;;  %v9117_v38 = vadd.f32 %v6597_v15, %v8942_v14  ;;  %v6600_v31 = vadd.f32 %v9005_v4, %v8986_v17  ;;  %v9124_v60 = vpop.f32.mrf.mxu1  ;;  %v9130_v26 = vadd.f32 %v6506_v10, %v8655_v48  ;;  %v6671_v4 = vpop.f32.mrf.mxu0  ;;  %v9139_v48 = vadd.f32 %v9050_v45, %v9034_v52 }
 0x1e2   : > { %2624 = vst.msk [vmem:[#allocation2 + $0x358] sm:$0xf] %vm426_vm2, %v2472_v19  ;;  %2887 = vst.msk [vmem:[#allocation2 + $0x218] sm:$0xf] %vm426_vm2, %v2781_v7  ;;  %v5942_v47 = vld [vmem:[%s7797_s18 + $0xac] sm:$0xf]  ;;  %v2784_v42 = vsel %vm7920_vm6, %v2782_v39, %v2783_v11  ;;  %v6603_v49 = vadd.f32 %v9052_v34, %v9036_v21 }
 0x1e3   : > { %2130 = vst.msk [vmem:[#allocation2 + $0x39c] sm:$0xf] %vm426_vm2, %v5898_v61  ;;  %v2474_v58 = vshrl.u32 %v5941_v51, 16  ;;  %v2477_v37 = vshll.u32 %v5941_v51, 16  ;;  %v2483_v41 = vshll.u32 %v5942_v47, 16  ;;  %v2487_v50 = vshrl.u32 %v5942_v47, 16  ;;  %v6611_v18 = vpop.f32.mrf.mxu1  ;;  %v6672_v10 = vpop.f32.mrf.mxu0 }
 0x1e4   : > { %2888 = vst.msk [vmem:[#allocation2 + $0x23c] sm:$0xf] %vm426_vm2, %v2784_v42  ;;  %v5978_v14 = vld [vmem:[%s7797_s18 + $0x7c] sm:$0xf]  ;;  %v5979_v44 = vld [vmem:[%s7797_s18 + $0x80] sm:$0x1]  ;;  %v9133_v17 = vadd.f32 %v6600_v31, %v8960_v24 }
 0x1e5   : > { %v2476_v35 = vrot.slane %v2474_v58, 4  ;;  %v2479_v55 = vrot.slane %v2477_v37, 5  ;;  %v2485_v59 = vrot.slane %v2483_v41, 5  ;;  %v2489_v11 = vrot.slane %v2487_v50, 4  ;;  %v5980_v39 = vld [vmem:[%s7797_s18 + $0x84] sm:$0xe]  ;;  %v9152_v50 = vpop.f32.mrf.mxu0 }
 0x1e6   : > { %v2495_v25 = vrot.slane %v2493_v8, 5  ;;  %v6009_v0 = vrot.slane %v5977_v30, 9  ;;  %v2787_v19 = vrot.slane %v5978_v14, 5  ;;  %v2790_v7 = vrot.slane %v5979_v44, 5  ;;  %v5981_v61 = vld [vmem:[%s7797_s18 + $0x88] sm:$0xf]  ;;  %v9154_v8 = vpop.f32.mrf.mxu1 }
 0x1e7   : > { %v2480_v15 = vor.u32 %v2479_v55, %v2476_v35  ;;  %v7270_v24 = vld [vmem:[#allocation2 + $0x1d0] ss:$36 sps:$4 sm:$0xff]   ;;  %v2490_v51 = vor.u32 %v2489_v11, %v2485_v59  ;;  %v5982_v47 = vld [vmem:[%s7797_s18 + $0x8c] sm:$0x1]  ;;  %v9145_v58 = vadd.f32 %v6517_v1, %v9063_v43  ;;  %v6606_v37 = vadd.f32 %v9069_v27, %v9055_v5  ;;  %v9161_v5 = vld [vmem:[%s9833_s2] ss:$0 sm:$0xff] }
 0x1e8   : > { %v2788_v42 = vsel %vm7920_vm6, %v6009_v0, %v2787_v19  ;;  %v2789_v41 = vrot.slane %v2787_v19, 4  ;;  %v6010_v52 = vrot.slane %v5980_v39, 9  ;;  %v5899_v45 = vld [vmem:[%s7797_s18 + $0xb4] sm:$0xf]  ;;  %6931 = vmatprep.mubr.bf16.mxu0 %v7270_v24  ;;  %v9165_v43 = vadd.f32 %v9161_v5, %v9081_v29  ;;  %v5900_v11 = vld [vmem:[%s7797_s18 + $0xb8] sm:$0xf]  ;;  %v6614_v0 = vpop.f32.mrf.mxu1 }
 0x1e9   : > { %v2481_v31 = vrot.slane %v2480_v15, 4  ;;  %v7267_v30 = vld [vmem:[#allocation2 + $0x330] ss:$36 sps:$4 sm:$0xff]   ;;  %v2491_v34 = vrot.slane %v2490_v51, 4  ;;  %2889 = vst.msk [vmem:[#allocation2 + $0x260] sm:$0xf] %vm426_vm2, %v2788_v42  ;;  %v9168_v27 = vadd.f32 %v9161_v5, %v6512_v54  ;;  %v9171_v1 = vadd.f32 %v6603_v49, %v9019_v13 }
 0x1ea   : > { %v7269_v21 = vld [vmem:[#allocation2 + $0x334] ss:$36 sps:$4 sm:$0xff]   ;;  %2131 = vst.msk [vmem:[#allocation2 + $0x3c0] sm:$0xf] %vm426_vm2, %v5899_v45  ;;  %v2791_v55 = vsel %vm7920_vm6, %v2789_v41, %v2790_v7  ;;  %v2794_v14 = vrot.slane %v5981_v61, 5  ;;  %v2797_v44 = vrot.slane %v5982_v47, 5  ;;  %v6609_v15 = vadd.f32 %v9109_v16, %v9085_v9  ;;  %v6675_v7 = vpop.f32.mrf.mxu0  ;;  %v6616_v47 = vpop.f32.mrf.mxu1 }
 0x1eb   : > { %v2486_v35 = vsel %vm7815_vm3, %v2481_v31, %v2485_v59  ;;  %4987 = vmatprep.mubr.bf16.mxu1 %v7269_v21  ;;  %v7271_v29 = vld [vmem:[#allocation2 + $0x218] ss:$36 sps:$4 sm:$0xff]   ;;  %v2496_v54 = vsel %vm7815_vm3, %v2491_v34, %v2495_v25  ;;  %2890 = vst.msk [vmem:[#allocation2 + $0x284] sm:$0xf] %vm426_vm2, %v2791_v55  ;;  %2132 = vst.msk [vmem:[#allocation2 + $0x3e4] sm:$0xf] %vm426_vm2, %v5900_v11  ;;  %v9185_v59 = vadd.f32 %v6606_v37, %v9025_v23 }
 0x1ec   : > { %2625 = vst.msk [vmem:[#allocation2 + $0x37c] sm:$0xf] %vm426_vm2, %v2486_v35  ;;  %v5944_v13 = vld [vmem:[%s7797_s18 + $0xb4] sm:$0xf]  ;;  %v6673_v19 = vadd.f32 %v6672_v10, %v6671_v4  ;;  %4988 = vmatmul.mubr.bf16.gmra.mxu1 %v7267_v30  ;;  %2626 = vst.msk [vmem:[#allocation2 + $0x3a0] sm:$0xf] %vm426_vm2, %v2496_v54  ;;  %v2795_v25 = vsel %vm7920_vm6, %v6010_v52, %v2794_v14  ;;  %v6612_v23 = vadd.f32 %v6611_v18, %v9124_v60  ;;  %v6617_v18 = vpop.f32.mrf.mxu1  ;;  %v6677_v55 = vpop.f32.mrf.mxu0 }
 0x1ed   : > { %v2796_v39 = vrot.slane %v2794_v14, 4  ;;  %v5945_v61 = vld [vmem:[%s7797_s18 + $0xb8] sm:$0xf]  ;;  %v5946_v24 = vld [vmem:[%s7797_s18 + $0xbc] sm:$0x1]  ;;  %v2498_v51 = vshrl.u32 %v5944_v13, 16  ;;  %6932 = vmatmul.mubr.bf16.gmra.mxu0 %v7271_v29  ;;  %v9202_v60 = vadd.f32 %v6609_v15, %v9045_v36 }
 0x1ee   : > { %2891 = vst.msk [vmem:[#allocation2 + $0x2a8] sm:$0xf] %vm426_vm2, %v2795_v25  ;;  %v2501_v9 = vshll.u32 %v5944_v13, 16  ;;  %v2507_v16 = vshll.u32 %v5945_v61, 16  ;;  %v2511_v4 = vshrl.u32 %v5945_v61, 16  ;;  %v2517_v10 = vshll.u32 %v5946_v24, 16  ;;  %v9213_v54 = vpop.f32.mrf.mxu1 }
 0x1ef   : > { %v5983_v49 = vld [vmem:[%s7797_s18 + $0x90] sm:$0xe]  ;;  %v2798_v37 = vsel %vm7920_vm6, %v2796_v39, %v2797_v44  ;;  %v2500_v31 = vrot.slane %v2498_v51, 4  ;;  %v5984_v42 = vld [vmem:[%s7797_s18 + $0x94] sm:$0xf]  ;;  %v9208_v29 = vadd.f32 %v6673_v19, %v8826_v6  ;;  %v9211_v36 = vadd.f32 %v6612_v23, %v9074_v53  ;;  %v6678_v51 = vpop.f32.mrf.mxu0 }
 0x1f0   : > { %v5985_v41 = vld [vmem:[%s7797_s18 + $0x98] sm:$0x1]  ;;  %v6011_v52 = vrot.slane %v5983_v49, 9  ;;  %2892 = vst.msk [vmem:[#allocation2 + $0x2cc] sm:$0xf] %vm426_vm2, %v2798_v37  ;;  %v2503_v45 = vrot.slane %v2501_v9, 5  ;;  %v6676_v6 = vadd.f32 %v6675_v7, %v9152_v50  ;;  %v6615_v53 = vadd.f32 %v6614_v0, %v9154_v8  ;;  %v6620_v19 = vpop.f32.mrf.mxu1 }
 0x1f1   : > { %v2509_v30 = vrot.slane %v2507_v16, 5  ;;  %v2513_v21 = vrot.slane %v2511_v4, 4  ;;  %v2519_v34 = vrot.slane %v2517_v10, 5  ;;  %v5986_v35 = vld [vmem:[%s7797_s18 + $0x9c] sm:$0xe]  ;;  %v2801_v14 = vrot.slane %v5984_v42, 5  ;;  %v6680_v42 = vpop.f32.mrf.mxu0 }
 0x1f2   : > { %v2804_v44 = vrot.slane %v5985_v41, 5  ;;  %v5987_v11 = vld [vmem:[%s7797_s18 + $0xa0] sm:$0xf]  ;;  %v2504_v13 = vor.u32 %v2503_v45, %v2500_v31  ;;  %v5988_v25 = vld [vmem:[%s7797_s18 + $0xa4] sm:$0x1]  ;;  %v6012_v39 = vrot.slane %v5986_v35, 9  ;;  %v6679_v31 = vadd.f32 %v6678_v51, %v6677_v55  ;;  %v6622_v7 = vpop.f32.mrf.mxu1 }
 0x1f3   : > { %v2514_v15 = vor.u32 %v2513_v21, %v2509_v30  ;;  %v2808_v61 = vrot.slane %v5987_v11, 5  ;;  %v5901_v24 = vld [vmem:[%s7797_s18 + $0xc0] sm:$0xf]  ;;  %v2802_v16 = vsel %vm7920_vm6, %v6011_v52, %v2801_v14  ;;  %v2803_v4 = vrot.slane %v2801_v14, 4  ;;  %v7272_v23 = vld [vmem:[#allocation2 + $0x378] ss:$36 sps:$4 sm:$0xff]  }
 0x1f4   : > { %v7275_v9 = vld [vmem:[#allocation2 + $0x260] ss:$36 sps:$4 sm:$0xff]   ;;  %2133 = vst.msk [vmem:[#allocation2 + $0x408] sm:$0xf] %vm426_vm2, %v5901_v24  ;;  %v2505_v49 = vrot.slane %v2504_v13, 4  ;;  %v6618_v41 = vadd.f32 %v6617_v18, %v6616_v47  ;;  %v2811_v0 = vrot.slane %v5988_v25, 5  ;;  %v9235_v18 = vadd.f32 %v6676_v6, %v8850_v12  ;;  %v6623_v24 = vpop.f32.mrf.mxu1 }
 0x1f5   : > { %v7274_v10 = vld [vmem:[#allocation2 + $0x37c] ss:$36 sps:$4 sm:$0xff]   ;;  %2893 = vst.msk [vmem:[#allocation2 + $0x2f0] sm:$0xf] %vm426_vm2, %v2802_v16  ;;  %v2809_v37 = vsel %vm7920_vm6, %v6012_v39, %v2808_v61  ;;  %6935 = vmatprep.mubr.bf16.mxu0 %v7275_v9  ;;  %v2515_v52 = vrot.slane %v2514_v15, 4  ;;  %v2805_v50 = vsel %vm7920_vm6, %v2803_v4, %v2804_v44  ;;  %v2810_v8 = vrot.slane %v2808_v61, 4  ;;  %v6681_v44 = vpop.f32.mrf.mxu0 }
 0x1f6   : > { %2895 = vst.msk [vmem:[#allocation2 + $0x338] sm:$0xf] %vm426_vm2, %v2809_v37  ;;  %4995 = vmatprep.mubr.bf16.mxu1 %v7274_v10  ;;  %v2510_v45 = vsel %vm7815_vm3, %v2505_v49, %v2509_v30  ;;  %2894 = vst.msk [vmem:[#allocation2 + $0x314] sm:$0xf] %vm426_vm2, %v2805_v50  ;;  %v5902_v21 = vld [vmem:[%s7797_s18 + $0xc4] sm:$0xf]  ;;  %v9238_v55 = vadd.f32 %v6615_v53, %v9092_v22  ;;  %v9241_v14 = vadd.f32 %v6679_v31, %v8887_v62 }
 0x1f7   : > { %v5947_v35 = vld [vmem:[%s7797_s18 + $0xc0] sm:$0xf]  ;;  %v5948_v47 = vld [vmem:[%s7797_s18 + $0xc4] sm:$0xf]  ;;  %4996 = vmatmul.mubr.bf16.gmra.mxu1 %v7272_v23  ;;  %v7276_v11 = vld [vmem:[#allocation2 + $0x2a8] ss:$36 sps:$4 sm:$0xff]   ;;  %v2520_v30 = vsel %vm7815_vm3, %v2515_v52, %v2519_v34  ;;  %v2812_v12 = vsel %vm7920_vm6, %v2810_v8, %v2811_v0  ;;  %v9251_v62 = vadd.f32 %v6618_v41, %v9130_v26  ;;  %v6682_v13 = vadd.f32 %v6681_v44, %v6680_v42  ;;  %v6683_v6 = vpop.f32.mrf.mxu0 }
 0x1f8   : > { %2627 = vst.msk [vmem:[#allocation2 + $0x3c4] sm:$0xf] %vm426_vm2, %v2510_v45  ;;  %2134 = vst.msk [vmem:[#allocation2 + $0x42c] sm:$0xf] %vm426_vm2, %v5902_v21  ;;  %v5949_v22 = vld [vmem:[%s7797_s18 + $0xc8] sm:$0x1]  ;;  %6936 = vmatmul.mubr.bf16.gmra.mxu0 %v7276_v11  ;;  %v6621_v53 = vadd.f32 %v6620_v19, %v9213_v54  ;;  %v6625_v54 = vpop.f32.mrf.mxu1 }
 0x1f9   : > { %2628 = vst.msk [vmem:[#allocation2 + $0x3e8] sm:$0xf] %vm426_vm2, %v2520_v30  ;;  %2896 = vst.msk [vmem:[#allocation2 + $0x35c] sm:$0xf] %vm426_vm2, %v2812_v12  ;;  %v2522_v15 = vshrl.u32 %v5947_v35, 16  ;;  %v2525_v34 = vshll.u32 %v5947_v35, 16  ;;  %v9259_v26 = vadd.f32 %v6682_v13, %v8908_v56  ;;  %v6684_v8 = vpop.f32.mrf.mxu0 }
 0x1fa   : > { %v2531_v25 = vshll.u32 %v5948_v47, 16  ;;  %v2535_v39 = vshrl.u32 %v5948_v47, 16  ;;  %v5989_v61 = vld [vmem:[%s7797_s18 + $0xa8] sm:$0xe]  ;;  %v2541_v51 = vshll.u32 %v5949_v22, 16  ;;  %v9266_v35 = vadd.f32 %v6621_v53, %v9165_v43  ;;  %v6626_v43 = vpop.f32.mrf.mxu1 }
 0x1fb   : > { %v5990_v9 = vld [vmem:[%s7797_s18 + $0xac] sm:$0xf]  ;;  %v5991_v16 = vld [vmem:[%s7797_s18 + $0xb0] sm:$0x1]  ;;  %v6013_v4 = vrot.slane %v5989_v61, 9  ;;  %v2524_v23 = vrot.slane %v2522_v15, 4  ;;  %v6685_v47 = vadd.f32 %v6684_v8, %v6683_v6  ;;  %v6686_v12 = vpop.f32.mrf.mxu0  ;;  %v6624_v22 = vadd.f32 %v6623_v24, %v6622_v7 }
 0x1fc   : > { %v2527_v10 = vrot.slane %v2525_v34, 5  ;;  %v2533_v49 = vrot.slane %v2531_v25, 5  ;;  %v2537_v37 = vrot.slane %v2535_v39, 4  ;;  %v5992_v31 = vld [vmem:[%s7797_s18 + $0xb4] sm:$0xe]  ;;  %v2543_v42 = vrot.slane %v2541_v51, 5 }
 0x1fd   : > { %v2815_v41 = vrot.slane %v5990_v9, 5  ;;  %v2818_v52 = vrot.slane %v5991_v16, 5  ;;  %v6014_v50 = vrot.slane %v5992_v31, 9  ;;  %v5993_v21 = vld [vmem:[%s7797_s18 + $0xb8] sm:$0xf]  ;;  %v9273_v39 = vadd.f32 %v6685_v47, %v8911_v3  ;;  %v6687_v3 = vpop.f32.mrf.mxu0 }
 0x1fe   : > { %v2528_v0 = vor.u32 %v2527_v10, %v2524_v23  ;;  %v2538_v45 = vor.u32 %v2537_v37, %v2533_v49  ;;  %v5994_v56 = vld [vmem:[%s7797_s18 + $0xbc] sm:$0x1]  ;;  %v7280_v19 = vld [vmem:[#allocation2 + $0x2f0] ss:$36 sps:$4 sm:$0xff]   ;;  %v2822_v30 = vrot.slane %v5993_v21, 5  ;;  %v9281_v16 = vadd.f32 %v6624_v22, %v9168_v27  ;;  %v6628_v27 = vpop.f32.mrf.mxu1 }
 0x1ff   : > { %v2816_v44 = vsel %vm7920_vm6, %v6013_v4, %v2815_v41  ;;  %v2817_v11 = vrot.slane %v2815_v41, 4  ;;  %v2825_v34 = vrot.slane %v5994_v56, 5  ;;  %v5903_v25 = vld [vmem:[%s7797_s18 + $0xcc] sm:$0xf]  ;;  %v7277_v61 = vld [vmem:[#allocation2 + $0x3c0] ss:$36 sps:$4 sm:$0xff]   ;;  %6939 = vmatprep.mubr.bf16.mxu0 %v7280_v19  ;;  %v6688_v10 = vadd.f32 %v6687_v3, %v6686_v12 }
 0x200   : > { %v2529_v13 = vrot.slane %v2528_v0, 4  ;;  %v2539_v15 = vrot.slane %v2538_v45, 4  ;;  %2897 = vst.msk [vmem:[#allocation2 + $0x380] sm:$0xf] %vm426_vm2, %v2816_v44  ;;  %v7279_v51 = vld [vmem:[#allocation2 + $0x3c4] ss:$36 sps:$4 sm:$0xff]   ;;  %v2823_v7 = vsel %vm7920_vm6, %v6014_v50, %v2822_v30  ;;  %v6627_v37 = vadd.f32 %v6626_v43, %v6625_v54  ;;  %v6629_v56 = vpop.f32.mrf.mxu1 }
 0x201   : > { %v2819_v9 = vsel %vm7920_vm6, %v2817_v11, %v2818_v52  ;;  %v2824_v24 = vrot.slane %v2822_v30, 4  ;;  %2135 = vst.msk [vmem:[#allocation2 + $0x450] sm:$0xf] %vm426_vm2, %v5903_v25  ;;  %v7281_v4 = vld [vmem:[#allocation2 + $0x338] ss:$36 sps:$4 sm:$0xff]   ;;  %5003 = vmatprep.mubr.bf16.mxu1 %v7279_v51  ;;  %v4507_v52 = vadd.f32 %v9161_v5, %v9139_v48  ;;  %v9305_v11 = vadd.f32 %v6688_v10, %v8945_v33 }
 0x202   : > { %v2534_v6 = vsel %vm7815_vm3, %v2529_v13, %v2533_v49  ;;  %v2544_v53 = vsel %vm7815_vm3, %v2539_v15, %v2543_v42  ;;  %2898 = vst.msk [vmem:[#allocation2 + $0x3a4] sm:$0xf] %vm426_vm2, %v2819_v9  ;;  %2899 = vst.msk [vmem:[#allocation2 + $0x3c8] sm:$0xf] %vm426_vm2, %v2823_v7  ;;  %v5904_v23 = vld [vmem:[%s7797_s18 + $0xd0] sm:$0xf]  ;;  %5004 = vmatmul.mubr.bf16.gmra.mxu1 %v7277_v61  ;;  %6940 = vmatmul.mubr.bf16.gmra.mxu0 %v7281_v4  ;;  %v6689_v9 = vpop.f32.mrf.mxu0 }
 0x203   : > { %2629 = vst.msk [vmem:[#allocation2 + $0x40c] sm:$0xf] %vm426_vm2, %v2534_v6  ;;  %2630 = vst.msk [vmem:[#allocation2 + $0x430] sm:$0xf] %vm426_vm2, %v2544_v53  ;;  %v2826_v49 = vsel %vm7920_vm6, %v2824_v24, %v2825_v34  ;;  %v5950_v31 = vld [vmem:[%s7797_s18 + $0xcc] sm:$0xf]  ;;  %v9307_v48 = vadd.f32 %v6627_v37, %v4507_v52  ;;  %v6631_v34 = vpop.f32.mrf.mxu1  ;;  %v4510_v51 = vadd.f32 %v9161_v5, %v9145_v58 }
 0x204   : > { %2136 = vst.msk [vmem:[#allocation2 + $0x474] sm:$0xf] %vm426_vm2, %v5904_v23  ;;  %v5951_v42 = vld [vmem:[%s7797_s18 + $0xd0] sm:$0xf]  ;;  %v5952_v41 = vld [vmem:[%s7797_s18 + $0xd4] sm:$0x1]  ;;  %v6630_v6 = vadd.f32 %v6629_v56, %v6628_v27  ;;  %v6690_v52 = vpop.f32.mrf.mxu0 }
 0x205   : > { %2900 = vst.msk [vmem:[#allocation2 + $0x3ec] sm:$0xf] %vm426_vm2, %v2826_v49  ;;  %v2546_v50 = vshrl.u32 %v5950_v31, 16  ;;  %v2549_v8 = vshll.u32 %v5950_v31, 16  ;;  %v2555_v0 = vshll.u32 %v5951_v42, 16  ;;  %v2559_v45 = vshrl.u32 %v5951_v42, 16  ;;  %v6632_v53 = vpop.f32.mrf.mxu1 }
 0x206   : > { %v5995_v21 = vld [vmem:[%s7797_s18 + $0xc0] sm:$0xe]  ;;  %v2565_v47 = vshll.u32 %v5952_v41, 16  ;;  %v5996_v54 = vld [vmem:[%s7797_s18 + $0xc4] sm:$0xf]  ;;  %v9872_v37 = vld [vmem:[#allocation10_spill] sm:$0xff]  ;;  %v6633_v58 = vadd.f32 %v6632_v53, %v6631_v34  ;;  %v9321_v27 = vadd.f32 %v6630_v6, %v4510_v51 }
 0x207   : > { %v5997_v19 = vld [vmem:[%s7797_s18 + $0xc8] sm:$0x1]  ;;  %v6015_v44 = vrot.slane %v5995_v21, 9  ;;  %v2548_v30 = vrot.slane %v2546_v50, 4  ;;  %v2551_v12 = vrot.slane %v2549_v8, 5  ;;  %v2557_v22 = vrot.slane %v2555_v0, 5  ;;  %v6634_v21 = vpop.f32.mrf.mxu1 }
 0x208   : > { %v2561_v13 = vrot.slane %v2559_v45, 4  ;;  %v5998_v15 = vld [vmem:[%s7797_s18 + $0xcc] sm:$0xe]  ;;  %v2567_v25 = vrot.slane %v2565_v47, 5  ;;  %v2829_v43 = vrot.slane %v5996_v54, 5  ;;  %v2832_v61 = vrot.slane %v5997_v19, 5  ;;  %v6692_v54 = vpop.f32.mrf.mxu0 }
 0x209   : > { %v2552_v7 = vor.u32 %v2551_v12, %v2548_v30  ;;  %v5999_v33 = vld [vmem:[%s7797_s18 + $0xd0] sm:$0xf]  ;;  %v6000_v3 = vld [vmem:[%s7797_s18 + $0xd4] sm:$0x1]  ;;  %v6016_v4 = vrot.slane %v5998_v15, 9  ;;  %v9871_v23 = vld [vmem:[#allocation9_spill] sm:$0xff]  ;;  %v6691_v45 = vadd.f32 %v6690_v52, %v6689_v9  ;;  %v6635_v15 = vpop.f32.mrf.mxu1 }
 0x20a   : > { %v2562_v24 = vor.u32 %v2561_v13, %v2557_v22  ;;  %v4515_v10 = vadd.f32 %v9161_v5, %v9871_v23  ;;  %v9873_v49 = vld [vmem:[#allocation11_spill] sm:$0xff]  ;;  %v7285_v42 = vld [vmem:[#allocation2 + $0x380] ss:$36 sps:$4 sm:$0xff]   ;;  %v2830_v41 = vsel %vm7920_vm6, %v6015_v44, %v2829_v43  ;;  %v7282_v50 = vld [vmem:[#allocation2 + $0x408] ss:$36 sps:$4 sm:$0xff]   ;;  %v2831_v12 = vrot.slane %v2829_v43, 4 }
 0x20b   : > { %v6524_v31 = vadd.f32 %v9873_v49, %v9872_v37  ;;  %v2553_v8 = vrot.slane %v2552_v7, 4  ;;  %2901 = vst.msk [vmem:[#allocation2 + $0x410] sm:$0xf] %vm426_vm2, %v2830_v41  ;;  %v7284_v56 = vld [vmem:[#allocation2 + $0x40c] ss:$36 sps:$4 sm:$0xff]   ;;  %6943 = vmatprep.mubr.bf16.mxu0 %v7285_v42  ;;  %v2836_v13 = vrot.slane %v5999_v33, 5  ;;  %v9333_v9 = vadd.f32 %v6691_v45, %v8966_v46  ;;  %v6693_v7 = vpop.f32.mrf.mxu0  ;;  %v6637_v49 = vpop.f32.mrf.mxu1 }
 0x20c   : > { %v2563_v0 = vrot.slane %v2562_v24, 4  ;;  %v7286_v47 = vld [vmem:[#allocation2 + $0x3c8] ss:$36 sps:$4 sm:$0xff]   ;;  %v9323_v19 = vadd.f32 %v6633_v58, %v4515_v10  ;;  %5011 = vmatprep.mubr.bf16.mxu1 %v7284_v56  ;;  %v2839_v51 = vrot.slane %v6000_v3, 5  ;;  %v2833_v40 = vsel %vm7920_vm6, %v2831_v12, %v2832_v61  ;;  %v9874_v52 = vld [vmem:[#allocation13_spill] sm:$0xff]  ;;  %v9875_v58 = vld [vmem:[#allocation12_spill] sm:$0xff] }
 0x20d   : > { %v2558_v44 = vsel %vm7815_vm3, %v2553_v8, %v2557_v22  ;;  %v4518_v34 = vadd.f32 %v9161_v5, %v6524_v31  ;;  %6944 = vmatmul.mubr.bf16.gmra.mxu0 %v7286_v47  ;;  %v6636_v22 = vadd.f32 %v6635_v15, %v6634_v21  ;;  %5012 = vmatmul.mubr.bf16.gmra.mxu1 %v7282_v50  ;;  %v2838_v43 = vrot.slane %v2836_v13, 4  ;;  %v6695_v6 = vpop.f32.mrf.mxu0  ;;  %v6638_v41 = vpop.f32.mrf.mxu1  ;;  %v9876_v50 = vld [vmem:[#allocation14_spill] sm:$0xff] }
 0x20e   : > { %v2568_v30 = vsel %vm7815_vm3, %v2563_v0, %v2567_v25  ;;  %2631 = vst.msk [vmem:[#allocation2 + $0x454] sm:$0xf] %vm426_vm2, %v2558_v44  ;;  %v2837_v25 = vsel %vm7920_vm6, %v6016_v4, %v2836_v13  ;;  %v6694_v24 = vadd.f32 %v6693_v7, %v6692_v54  ;;  %2902 = vst.msk [vmem:[#allocation2 + $0x434] sm:$0xf] %vm426_vm2, %v2833_v40  ;;  %v7287_v4 = vld [vmem:[#allocation2 + $0x450] ss:$36 sps:$4 sm:$0xff]  }
 0x20f   : > { %2632 = vst.msk [vmem:[#allocation2 + $0x478] sm:$0xf] %vm426_vm2, %v2568_v30  ;;  %2903 = vst.msk [vmem:[#allocation2 + $0x458] sm:$0xf] %vm426_vm2, %v2837_v25  ;;  %v9341_v33 = vadd.f32 %v6636_v22, %v4518_v34  ;;  %v2840_v46 = vsel %vm7920_vm6, %v2838_v43, %v2839_v51  ;;  %v6696_v61 = vpop.f32.mrf.mxu0  ;;  %v6530_v8 = vadd.f32 %v9876_v50, %v9875_v58  ;;  %v9877_v22 = vld [vmem:[#allocation15_spill] sm:$0xff]  ;;  %v9878_v40 = vld [vmem:[#allocation16_spill] sm:$0xff] }
 0x210   : > { %v9346_v3 = vadd.f32 %v6694_v24, %v8984_v2  ;;  %2904 = vst.msk [vmem:[#allocation2 + $0x47c] sm:$0xf] %vm426_vm2, %v2840_v46  ;;  %v6697_v53 = vadd.f32 %v6696_v61, %v6695_v6  ;;  %v4523_v2 = vadd.f32 %v9161_v5, %v9874_v52  ;;  %v6639_v45 = vadd.f32 %v6638_v41, %v6637_v49  ;;  %v9879_v25 = vld [vmem:[#allocation17_spill] sm:$0xff] }
 0x211   : > { %v6698_v23 = vpop.f32.mrf.mxu0  ;;  %v4526_v44 = vadd.f32 %v9161_v5, %v6530_v8  ;;  %v6536_v43 = vadd.f32 %v9879_v25, %v9878_v40 }
 0x212   : > { %v9350_v37 = vadd.f32 %v6697_v53, %v9028_v32  ;;  %v6640_v32 = vpop.f32.mrf.mxu1  ;;  %v9359_v56 = vadd.f32 %v6639_v45, %v4523_v2  ;;  %v9880_v45 = vld [vmem:[#allocation19_spill] sm:$0xff] }
 0x213   : > { %v6699_v42 = vpop.f32.mrf.mxu0 }
 0x214   : > { %v6700_v57 = vadd.f32 %v6699_v42, %v6698_v23  ;;  %v6641_v54 = vpop.f32.mrf.mxu1 }
 0x215   : > { %v7290_v31 = vld [vmem:[#allocation2 + $0x410] ss:$36 sps:$4 sm:$0xff]   ;;  %v6701_v47 = vpop.f32.mrf.mxu0  ;;  %v6642_v30 = vadd.f32 %v6641_v54, %v6640_v32  ;;  %v4539_v32 = vadd.f32 %v9161_v5, %v9880_v45 }
 0x216   : > { %v7289_v10 = vld [vmem:[#allocation2 + $0x454] ss:$36 sps:$4 sm:$0xff]   ;;  %6947 = vmatprep.mubr.bf16.mxu0 %v7290_v31  ;;  %v9357_v21 = vadd.f32 %v6700_v57, %v9048_v28  ;;  %v6643_v13 = vpop.f32.mrf.mxu1  ;;  %v4531_v28 = vadd.f32 %v9161_v5, %v9877_v22 }
 0x217   : > { %5019 = vmatprep.mubr.bf16.mxu1 %v7289_v10  ;;  %v7291_v0 = vld [vmem:[#allocation2 + $0x458] ss:$36 sps:$4 sm:$0xff]   ;;  %v6702_v12 = vpop.f32.mrf.mxu0  ;;  %v9362_v34 = vadd.f32 %v6642_v30, %v4526_v44  ;;  %v4534_v10 = vadd.f32 %v9161_v5, %v6536_v43 }
 0x218   : > { %5020 = vmatmul.mubr.bf16.gmra.mxu1 %v7287_v4  ;;  %6948 = vmatmul.mubr.bf16.gmra.mxu0 %v7291_v0  ;;  %v6703_v15 = vadd.f32 %v6702_v12, %v6701_v47  ;;  %v6644_v7 = vpop.f32.mrf.mxu1  ;;  %v9881_v47 = vld [vmem:[#allocation18_spill] sm:$0xff] }
 0x219   : > { %v6704_v51 = vpop.f32.mrf.mxu0  ;;  %v6645_v46 = vadd.f32 %v6644_v7, %v6643_v13 }
 0x21a   : > { %v9369_v24 = vadd.f32 %v6703_v15, %v9077_v20  ;;  %v6646_v61 = vpop.f32.mrf.mxu1 }
 0x21b   : > { %v6705_v6 = vpop.f32.mrf.mxu0  ;;  %v9371_v4 = vadd.f32 %v6645_v46, %v4531_v28 }
 0x21c   : > { %v6706_v53 = vadd.f32 %v6705_v6, %v6704_v51  ;;  %v6647_v23 = vpop.f32.mrf.mxu1 }
 0x21d   : > { %v6707_v31 = vpop.f32.mrf.mxu0  ;;  %v6648_v42 = vadd.f32 %v6647_v23, %v6646_v61 }
 0x21e   : > { %v9375_v49 = vadd.f32 %v6706_v53, %v9095_v63  ;;  %v6649_v58 = vpop.f32.mrf.mxu1  ;;  %v9882_v63 = vld [vmem:[#allocation20_spill] sm:$0xff] }
 0x21f   : > { %v6708_v57 = vpop.f32.mrf.mxu0  ;;  %v9377_v41 = vadd.f32 %v6648_v42, %v4534_v10  ;;  %v6542_v54 = vadd.f32 %v9882_v63, %v9881_v47 }
 0x220   : > { %v6709_v52 = vadd.f32 %v6708_v57, %v6707_v31  ;;  %v6650_v0 = vpop.f32.mrf.mxu1 }
 0x221   : > { %v6710_v20 = vpop.f32.mrf.mxu0  ;;  %v6651_v44 = vadd.f32 %v6650_v0, %v6649_v58 }
 0x222   : > { %v9380_v2 = vadd.f32 %v6709_v52, %v9117_v38  ;;  %v6652_v12 = vpop.f32.mrf.mxu1  ;;  %v4542_v38 = vadd.f32 %v9161_v5, %v6542_v54 }
 0x223   : > { %v6711_v50 = vpop.f32.mrf.mxu0  ;;  %v9389_v13 = vadd.f32 %v6651_v44, %v4539_v32 }
 0x224   : > { %v6712_v8 = vadd.f32 %v6711_v50, %v6710_v20  ;;  %v6653_v15 = vpop.f32.mrf.mxu1 }
 0x225   : > { %v6713_v51 = vpop.f32.mrf.mxu0  ;;  %v6654_v7 = vadd.f32 %v6653_v15, %v6652_v12 }
 0x226   : > { %v9387_v30 = vadd.f32 %v6712_v8, %v9133_v17 }
 0x227   : > { %v6714_v22 = vpop.f32.mrf.mxu0  ;;  %v9392_v28 = vadd.f32 %v6654_v7, %v4542_v38 }
 0x228   : > { %v6715_v40 = vadd.f32 %v6714_v22, %v6713_v51  ;;  %v9400_v5 = vpop.f32.mrf.mxu1 }
 0x229   : > { %v6716_v25 = vpop.f32.mrf.mxu0 }
 0x22a   : > { %v9395_v43 = vadd.f32 %v6715_v40, %v9171_v1  ;;  %v9405_v57 = vpop.f32.mrf.mxu1 }
 0x22b   : > { %v6717_v46 = vpop.f32.mrf.mxu0 }
 0x22c   : > { %v6718_v6 = vadd.f32 %v6717_v46, %v6716_v25  ;;  %v9407_v20 = vpop.f32.mrf.mxu1 }
 0x22d   : > { %v6719_v17 = vpop.f32.mrf.mxu0 }
 0x22e   : > { %v9398_v61 = vadd.f32 %v6718_v6, %v9185_v59  ;;  %v9412_v8 = vpop.f32.mrf.mxu1 }
 0x22f   : > { %v6720_v53 = vpop.f32.mrf.mxu0 }
 0x230   : > { %v6721_v23 = vadd.f32 %v6720_v53, %v6719_v17 }
 0x231   : > { %v6722_v10 = vpop.f32.mrf.mxu0 }
 0x232   : > { %v9403_v31 = vadd.f32 %v6721_v23, %v9202_v60 }
 0x233   : > { %v6723_v42 = vpop.f32.mrf.mxu0  ;;  %v9417_v47 = vpop.f32.mrf.mxu1 }
 0x234   : > { %v6724_v52 = vadd.f32 %v6723_v42, %v6722_v10 }
 0x235   : > { %v6725_v1 = vpop.f32.mrf.mxu0  ;;  %v9422_v54 = vpop.f32.mrf.mxu1 }
 0x236   : > { %v9410_v58 = vadd.f32 %v6724_v52, %v9211_v36 }
 0x237   : > { %v6726_v59 = vpop.f32.mrf.mxu0  ;;  %v9424_v44 = vpop.f32.mrf.mxu1 }
 0x238   : > { %v6727_v50 = vadd.f32 %v6726_v59, %v6725_v1 }
 0x239   : > { %v6728_v0 = vpop.f32.mrf.mxu0  ;;  %v9426_v15 = vpop.f32.mrf.mxu1 }
 0x23a   : > { %v9415_v45 = vadd.f32 %v6727_v50, %v9238_v55 }
 0x23b   : > { %v6729_v60 = vpop.f32.mrf.mxu0 }
 0x23c   : > { %v6730_v32 = vadd.f32 %v6729_v60, %v6728_v0 }
 0x23d   : > { %v6731_v36 = vpop.f32.mrf.mxu0 }
 0x23e   : > { %v9420_v63 = vadd.f32 %v6730_v32, %v9251_v62 }
 0x23f   : > { %v6732_v12 = vpop.f32.mrf.mxu0 }
 0x240   : > { %v6733_v38 = vadd.f32 %v6732_v12, %v6731_v36  ;;  %v9431_v22 = vpop.f32.mrf.mxu1 }
 0x241   : > { %v6734_v51 = vpop.f32.mrf.mxu0 }
 0x242   : > { %v9429_v55 = vadd.f32 %v6733_v38, %v9266_v35  ;;  %v9433_v25 = vpop.f32.mrf.mxu1 }
 0x243   : > { %v6735_v7 = vpop.f32.mrf.mxu0 }
 0x244   : > { %v6736_v40 = vadd.f32 %v6735_v7, %v6734_v51  ;;  %v9438_v46 = vpop.f32.mrf.mxu1 }
 0x246   : > { %v9436_v62 = vadd.f32 %v6736_v40, %v9281_v16  ;;  %v6737_v6 = vpop.f32.mrf.mxu0  ;;  %v9440_v53 = vpop.f32.mrf.mxu1 }
 0x248   : > { %9883 = vst [vmem:[#allocation22_spill] sm:$0xff] %v9436_v62  ;;  %v6738_v17 = vpop.f32.mrf.mxu0 }
 0x249   : > { %v6739_v23 = vadd.f32 %v6738_v17, %v6737_v6 }
 0x24a   : > { %v6740_v10 = vpop.f32.mrf.mxu0 }
 0x24b   : > { %v9443_v35 = vadd.f32 %v6739_v23, %v9307_v48 }
 0x24c   : > { %v6741_v42 = vpop.f32.mrf.mxu0 }
 0x24d   : > { %v9445_v52 = vpop.f32.mrf.mxu1  ;;  %v6742_v1 = vadd.f32 %v6741_v42, %v6740_v10 }
 0x24f   : > { %v9447_v59 = vpop.f32.mrf.mxu1  ;;  %v9450_v16 = vadd.f32 %v6742_v1, %v9321_v27 }
 0x251   : > { %9884 = vst [vmem:[#allocation21_spill] sm:$0xff] %v9450_v16  ;;  %v9452_v50 = vpop.f32.mrf.mxu1 }
 0x252   : > { %v6743_v0 = vpop.f32.mrf.mxu0 }
 0x253   : > { %v9454_v32 = vpop.f32.mrf.mxu1 }
 0x254   : > { %v6744_v60 = vpop.f32.mrf.mxu0 }
 0x255   : > { %v6745_v36 = vadd.f32 %v6744_v60, %v6743_v0 }
 0x256   : > { %v6746_v12 = vpop.f32.mrf.mxu0 }
 0x257   : > { %v9457_v48 = vadd.f32 %v6745_v36, %v9323_v19 }
 0x258   : > { %v6747_v38 = vpop.f32.mrf.mxu0 }
 0x259   : > { %9885 = vst [vmem:[#allocation23_spill] sm:$0xff] %v9457_v48  ;;  %v9459_v51 = vpop.f32.mrf.mxu1  ;;  %v6748_v7 = vadd.f32 %v6747_v38, %v6746_v12 }
 0x25b   : > { %v9461_v40 = vpop.f32.mrf.mxu1  ;;  %v9464_v27 = vadd.f32 %v6748_v7, %v9341_v33 }
 0x25d   : > { %9886 = vst [vmem:[#allocation25_spill] sm:$0xff] %v9464_v27  ;;  %v9466_v6 = vpop.f32.mrf.mxu1 }
 0x25f   : > { %v9468_v10 = vpop.f32.mrf.mxu1 }
 0x260   : > { %v6749_v17 = vpop.f32.mrf.mxu0 }
 0x262   : > { %v6750_v23 = vpop.f32.mrf.mxu0 }
 0x263   : > { %v6751_v42 = vadd.f32 %v6750_v23, %v6749_v17 }
 0x264   : > { %v6752_v1 = vpop.f32.mrf.mxu0 }
 0x265   : > { %v9471_v19 = vadd.f32 %v6751_v42, %v9359_v56 }
 0x266   : > { %v6753_v0 = vpop.f32.mrf.mxu0 }
 0x267   : > { %9887 = vst [vmem:[#allocation27_spill] sm:$0xff] %v9471_v19  ;;  %v6754_v36 = vadd.f32 %v6753_v0, %v6752_v1 }
 0x268   : > { %v9473_v60 = vpop.f32.mrf.mxu1 }
 0x269   : > { %v9478_v33 = vadd.f32 %v6754_v36, %v9362_v34 }
 0x26a   : > { %v9475_v12 = vpop.f32.mrf.mxu1 }
 0x26b   : > { %9888 = vst [vmem:[#allocation24_spill] sm:$0xff] %v9478_v33 }
 0x26c   : > { %v6755_v38 = vpop.f32.mrf.mxu0  ;;  %v9480_v7 = vpop.f32.mrf.mxu1 }
 0x26e   : > { %v6756_v27 = vpop.f32.mrf.mxu0  ;;  %v9482_v62 = vpop.f32.mrf.mxu1 }
 0x26f   : > { %v6757_v48 = vadd.f32 %v6756_v27, %v6755_v38 }
 0x270   : > { %v6758_v17 = vpop.f32.mrf.mxu0 }
 0x271   : > { %v9485_v56 = vadd.f32 %v6757_v48, %v9371_v4 }
 0x272   : > { %v6759_v23 = vpop.f32.mrf.mxu0 }
 0x273   : > { %v6760_v42 = vadd.f32 %v6759_v23, %v6758_v17  ;;  %v6791_v17 = vadd.f32 %v9422_v54, %v9417_v47  ;;  %v6788_v47 = vadd.f32 %v9412_v8, %v9407_v20 }
 0x275   : > { %v9490_v1 = vadd.f32 %v6760_v42, %v9377_v41  ;;  %v6785_v42 = vadd.f32 %v9405_v57, %v9400_v5  ;;  %v4905_v8 = vadd.f32 %v6788_v47, %v9235_v18  ;;  %v6806_v47 = vadd.f32 %v9454_v32, %v9452_v50 }
 0x276   : > { %v9487_v19 = vpop.f32.mrf.mxu1 }
 0x277   : > { %9889 = vst [vmem:[#allocation26_spill] sm:$0xff] %v9490_v1  ;;  %v4902_v5 = vadd.f32 %v6785_v42, %v9208_v29  ;;  %v4929_v32 = vadd.f32 %v6806_v47, %v9346_v3 }
 0x278   : > { %v9492_v34 = vpop.f32.mrf.mxu1 }
 0x27a   : > { %v6761_v0 = vpop.f32.mrf.mxu0  ;;  %v9494_v36 = vpop.f32.mrf.mxu1 }
 0x27c   : > { %v6762_v33 = vpop.f32.mrf.mxu0  ;;  %v9496_v38 = vpop.f32.mrf.mxu1 }
 0x27d   : > { %v6763_v27 = vadd.f32 %v6762_v33, %v6761_v0  ;;  %v6794_v0 = vadd.f32 %v9426_v15, %v9424_v44 }
 0x27e   : > { %v6764_v16 = vpop.f32.mrf.mxu0 }
 0x27f   : > { %v9499_v4 = vadd.f32 %v6763_v27, %v9389_v13  ;;  %v4910_v13 = vadd.f32 %v6791_v17, %v9241_v14  ;;  %v4913_v44 = vadd.f32 %v6794_v0, %v9259_v26  ;;  %v6803_v26 = vadd.f32 %v9447_v59, %v9445_v52 }
 0x280   : > { %v6765_v48 = vpop.f32.mrf.mxu0  ;;  %v6800_v52 = vadd.f32 %v9440_v53, %v9438_v46 }
 0x281   : > { %9890 = vst [vmem:[#allocation28_spill] sm:$0xff] %v9499_v4  ;;  %v6766_v23 = vadd.f32 %v6765_v48, %v6764_v16 }
 0x282   : > { %v4921_v53 = vadd.f32 %v6800_v52, %v9305_v11 }
 0x283   : > { %v9503_v41 = vpop.f32.mrf.mxu1  ;;  %v9508_v1 = vadd.f32 %v6766_v23, %v9392_v28 }
 0x285   : > { %v9510_v33 = vpop.f32.mrf.mxu1 }
 0x287   : > { %v9515_v27 = vpop.f32.mrf.mxu1 }
 0x288   : > { %v6921_v4 = vpop.f32.mrf.mxu0 }
 0x289   : > { %v9519_v54 = vadd.f32 %v6921_v4, %v4910_v13  ;;  %v9522_v57 = vpop.f32.mrf.mxu1 }
 0x28a   : > { %v5062_v28 = vpop.f32.mrf.mxu0 }
 0x28b   : > { %v6236_v16 = vmul.f32 -1.442695, %v9519_v54  ;;  %v9525_v48 = vadd.f32 %v5062_v28, %v4902_v5  ;;  %v9528_v14 = vpop.f32.mrf.mxu1  ;;  %v6797_v5 = vadd.f32 %v9433_v25, %v9431_v22 }
 0x28c   : > { %v6922_v15 = vpop.f32.mrf.mxu0 }
 0x28d   : > { %7292 = vpow2.f32 %v6236_v16  ;;  %v6234_v17 = vmul.f32 -1.442695, %v9525_v48  ;;  %v9531_v20 = vadd.f32 %v6922_v15, %v4913_v44  ;;  %v9534_v29 = vpop.f32.mrf.mxu1  ;;  %v4926_v16 = vadd.f32 %v6803_v26, %v9333_v9 }
 0x28e   : > { %v5065_v4 = vpop.f32.mrf.mxu0  ;;  %v4918_v22 = vadd.f32 %v6797_v5, %v9273_v39  ;;  %v6815_v9 = vadd.f32 %v9475_v12, %v9473_v60  ;;  %v6818_v60 = vadd.f32 %v9482_v62, %v9480_v7  ;;  %v6812_v62 = vadd.f32 %v9468_v10, %v9466_v6 }
 0x28f   : > { %7294 = vpow2.f32 %v6234_v17  ;;  %v6237_v23 = vmul.f32 -1.442695, %v9531_v20  ;;  %v9537_v42 = vadd.f32 %v5065_v4, %v4905_v8  ;;  %v9541_v0 = vpop.f32.mrf.mxu1 }
 0x290   : > { %v4942_v47 = vadd.f32 %v6815_v9, %v9369_v24  ;;  %v4945_v24 = vadd.f32 %v6818_v60, %v9375_v49 }
 0x291   : > { %7296 = vpow2.f32 %v6237_v23  ;;  %v6235_v13 = vmul.f32 -1.442695, %v9537_v42  ;;  %v9546_v18 = vpop.f32.mrf.mxu1  ;;  %v6809_v23 = vadd.f32 %v9461_v40, %v9459_v51 }
 0x293   : > { %7298 = vpow2.f32 %v6235_v13 }
 0x295   : > { %v9550_v28 = vpop.f32.mrf.mxu1 }
 0x297   : > { %v6925_v59 = vpop.f32.mrf.mxu0  ;;  %v9557_v15 = vpop.f32.mrf.mxu1 }
 0x298   : > { %v9555_v44 = vadd.f32 %v6925_v59, %v4926_v16 }
 0x299   : > { %v5078_v25 = vpop.f32.mrf.mxu0  ;;  %v9563_v50 = vpop.f32.mrf.mxu1 }
 0x29a   : > { %v6240_v17 = vmul.f32 -1.442695, %v9555_v44  ;;  %v9561_v8 = vadd.f32 %v5078_v25, %v4918_v22  ;;  %v7293_v4 = vpop.eup %7292  ;;  %v4934_v25 = vadd.f32 %v6809_v23, %v9350_v37 }
 0x29b   : > { %v6926_v46 = vpop.f32.mrf.mxu0  ;;  %v9574_v13 = vpop.f32.mrf.mxu1  ;;  %v5287_v5 = vadd.f32 1.0, %v7293_v4 }
 0x29c   : > { %7300 = vpow2.f32 %v6240_v17  ;;  %v6238_v39 = vmul.f32 -1.442695, %v9561_v8  ;;  %v9572_v26 = vadd.f32 %v6926_v46, %v4929_v32  ;;  %v7295_v3 = vpop.eup %7294 }
 0x29d   : > { %v5081_v16 = vpop.f32.mrf.mxu0  ;;  %v5285_v51 = vadd.f32 1.0, %v7295_v3 }
 0x29e   : > { %7302 = vpow2.f32 %v6238_v39  ;;  %v6241_v11 = vmul.f32 -1.442695, %v9572_v26  ;;  %v9579_v12 = vadd.f32 %v5081_v16, %v4921_v53  ;;  %v7297_v52 = vpop.eup %7296  ;;  %v6827_v16 = vadd.f32 %v9510_v33, %v9503_v41 }
 0x29f   : > { %7304 = vrcp.f32 %v5287_v5  ;;  %v9581_v40 = vpop.f32.mrf.mxu1  ;;  %v5288_v7 = vadd.f32 1.0, %v7297_v52  ;;  %v4937_v5 = vadd.f32 %v6812_v62, %v9357_v21  ;;  %v6830_v21 = vadd.f32 %v9522_v57, %v9515_v27 }
 0x2a0   : > { %7306 = vpow2.f32 %v6241_v11  ;;  %v6239_v59 = vmul.f32 -1.442695, %v9579_v12  ;;  %v6929_v22 = vpop.f32.mrf.mxu0  ;;  %v7299_v46 = vpop.eup %7298 }
 0x2a1   : > { %7308 = vrcp.f32 %v5285_v51  ;;  %v9588_v17 = vadd.f32 %v6929_v22, %v4942_v47  ;;  %v9590_v32 = vpop.f32.mrf.mxu1  ;;  %v5286_v9 = vadd.f32 1.0, %v7299_v46  ;;  %v6821_v51 = vadd.f32 %v9492_v34, %v9487_v19 }
 0x2a2   : > { %7310 = vpow2.f32 %v6239_v59  ;;  %v5094_v53 = vpop.f32.mrf.mxu0  ;;  %v4958_v59 = vadd.f32 %v6827_v16, %v9395_v43  ;;  %v4961_v43 = vadd.f32 %v6830_v21, %v9398_v61  ;;  %v6839_v21 = vadd.f32 %v9557_v15, %v9550_v28 }
 0x2a3   : > { %7312 = vrcp.f32 %v5288_v7  ;;  %v6244_v4 = vmul.f32 -1.442695, %v9588_v17  ;;  %v9594_v39 = vadd.f32 %v5094_v53, %v4934_v25  ;;  %v9596_v37 = vpop.f32.mrf.mxu1  ;;  %v6824_v25 = vadd.f32 %v9496_v38, %v9494_v36 }
 0x2a4   : > { %v6930_v6 = vpop.f32.mrf.mxu0  ;;  %7314 = vrcp.f32 %v5286_v9  ;;  %v4950_v57 = vadd.f32 %v6821_v51, %v9380_v2  ;;  %v6842_v15 = vadd.f32 %v9574_v13, %v9563_v50  ;;  %v6836_v13 = vadd.f32 %v9546_v18, %v9541_v0 }
 0x2a5   : > { %v6242_v10 = vmul.f32 -1.442695, %v9594_v39  ;;  %v9599_v23 = vadd.f32 %v6930_v6, %v4945_v24  ;;  %7316 = vpow2.f32 %v6244_v4  ;;  %v9604_v49 = vpop.f32.mrf.mxu1  ;;  %v4953_v2 = vadd.f32 %v6824_v25, %v9387_v30 }
 0x2a6   : > { %v5097_v3 = vpop.f32.mrf.mxu0  ;;  %v6833_v30 = vadd.f32 %v9534_v29, %v9528_v14  ;;  %v6845_v0 = vadd.f32 %v9590_v32, %v9581_v40 }
 0x2a7   : > { %7318 = vpow2.f32 %v6242_v10  ;;  %v6245_v60 = vmul.f32 -1.442695, %v9599_v23  ;;  %v9607_v11 = vadd.f32 %v5097_v3, %v4937_v5 }
 0x2a8   : > { %v4966_v50 = vadd.f32 %v6833_v30, %v9403_v31 }
 0x2a9   : > { %v7301_v47 = vpop.eup %7300  ;;  %7320 = vpow2.f32 %v6245_v60  ;;  %v6243_v41 = vmul.f32 -1.442695, %v9607_v11 }
 0x2aa   : > { %v5291_v33 = vadd.f32 1.0, %v7301_v47 }
 0x2ab   : > { %v7303_v22 = vpop.eup %7302  ;;  %7322 = vpow2.f32 %v6243_v41 }
 0x2ac   : > { %v9614_v52 = vpop.f32.mrf.mxu1  ;;  %v7305_v7 = vpop.eup %7304  ;;  %v5289_v19 = vadd.f32 1.0, %v7303_v22  ;;  %7324 = vrcp.f32 %v5291_v33 }
 0x2ad   : > { %v6933_v62 = vpop.f32.mrf.mxu0  ;;  %v7307_v46 = vpop.eup %7306  ;;  %v5383_v51 = vmul.f32 %v7305_v7, %v9519_v54 }
 0x2ae   : > { %v9620_v34 = vadd.f32 %v6933_v62, %v4958_v59  ;;  %v9622_v27 = vpop.f32.mrf.mxu1  ;;  %v7309_v24 = vpop.eup %7308  ;;  %v5292_v9 = vadd.f32 1.0, %v7307_v46  ;;  %7326 = vrcp.f32 %v5289_v19 }
 0x2af   : > { %v5110_v53 = vpop.f32.mrf.mxu0  ;;  %v7311_v6 = vpop.eup %7310  ;;  %v5381_v54 = vmul.f32 %v7309_v24, %v9525_v48  ;;  %v6851_v18 = vadd.f32 %v9622_v27, %v9614_v52 }
 0x2b0   : > { %v6248_v36 = vmul.f32 -1.442695, %v9620_v34  ;;  %v9627_v38 = vadd.f32 %v5110_v53, %v4950_v57  ;;  %v9629_v4 = vpop.f32.mrf.mxu1  ;;  %v7313_v5 = vpop.eup %7312  ;;  %7328 = vrcp.f32 %v5292_v9  ;;  %v5290_v61 = vadd.f32 1.0, %v7311_v6 }
 0x2b1   : > { %v6934_v10 = vpop.f32.mrf.mxu0  ;;  %v5384_v47 = vmul.f32 %v7313_v5, %v9531_v20  ;;  %v7315_v33 = vpop.eup %7314  ;;  %v4974_v57 = vadd.f32 %v6839_v21, %v9415_v45  ;;  %v4977_v45 = vadd.f32 %v6842_v15, %v9420_v63 }
 0x2b2   : > { %v6246_v16 = vmul.f32 -1.442695, %v9627_v38  ;;  %v9637_v3 = vadd.f32 %v6934_v10, %v4961_v43  ;;  %v6853_v60 = vpop.f32.mrf.mxu1  ;;  %7330 = vpow2.f32 %v6248_v36  ;;  %v7317_v25 = vpop.eup %7316  ;;  %v5382_v20 = vmul.f32 %v7315_v33, %v9537_v42 }
 0x2b3   : > { %v5113_v41 = vpop.f32.mrf.mxu0  ;;  %7332 = vrcp.f32 %v5290_v61  ;;  %v6344_v62 = vpack.c.bf16 %v5384_v47, %v5383_v51  ;;  %v5295_v7 = vadd.f32 1.0, %v7317_v25  ;;  %v4969_v47 = vadd.f32 %v6836_v13, %v9410_v58 }
 0x2b4   : > { %v6249_v59 = vmul.f32 -1.442695, %v9637_v3  ;;  %v9646_v22 = vadd.f32 %v5113_v41, %v4953_v2  ;;  %7334 = vpow2.f32 %v6246_v16  ;;  %v7319_v28 = vpop.eup %7318  ;;  %v6339_v19 = vpack.c.bf16 %v5382_v20, %v5381_v54 }
 0x2b5   : > { %6416 = vst [vmem:[%s9654_s29 + $0x8] sm:$0xff] %v6344_v62   ;;  %v5293_v48 = vadd.f32 1.0, %v7319_v28  ;;  %v6854_v40 = vadd.f32 %v6853_v60, %v9629_v4  ;;  %v4990_v25 = vadd.f32 %v6851_v18, %v9443_v35  ;;  %v4982_v58 = vadd.f32 %v6845_v0, %v9429_v55 }
 0x2b6   : > { %7336 = vpow2.f32 %v6249_v59  ;;  %v6247_v14 = vmul.f32 -1.442695, %v9646_v22  ;;  %v7321_v42 = vpop.eup %7320  ;;  %6340 = vst [vmem:[%s9654_s29] sm:$0xff] %v6339_v19   ;;  %v6848_v62 = vadd.f32 %v9604_v49, %v9596_v37 }
 0x2b7   : > { %v6855_v29 = vpop.f32.mrf.mxu1  ;;  %7338 = vrcp.f32 %v5295_v7  ;;  %v5296_v43 = vadd.f32 1.0, %v7321_v42 }
 0x2b8   : > { %v6937_v46 = vpop.f32.mrf.mxu0  ;;  %7340 = vrcp.f32 %v5293_v48  ;;  %v7323_v9 = vpop.eup %7322  ;;  %v9891_v48 = vld [vmem:[#allocation21_spill] sm:$0xff] }
 0x2b9   : > { %v6856_v53 = vpop.f32.mrf.mxu1  ;;  %v9662_v24 = vadd.f32 %v6937_v46, %v4974_v57  ;;  %7342 = vpow2.f32 %v6247_v14  ;;  %v5294_v10 = vadd.f32 1.0, %v7323_v9  ;;  %v7325_v61 = vpop.eup %7324  ;;  %v4993_v57 = vadd.f32 %v6854_v40, %v9891_v48 }
 0x2ba   : > { %v5126_v36 = vpop.f32.mrf.mxu0  ;;  %7344 = vrcp.f32 %v5296_v43  ;;  %v5387_v30 = vmul.f32 %v7325_v61, %v9555_v44  ;;  %v6857_v19 = vadd.f32 %v6856_v53, %v6855_v29  ;;  %v9892_v53 = vld [vmem:[#allocation22_spill] sm:$0xff] }
 0x2bb   : > { %v9664_v6 = vpop.f32.mrf.mxu1  ;;  %v6252_v2 = vmul.f32 -1.442695, %v9662_v24  ;;  %v9668_v31 = vadd.f32 %v5126_v36, %v4966_v50  ;;  %7346 = vrcp.f32 %v5294_v10  ;;  %v7327_v21 = vpop.eup %7326 }
 0x2bc   : > { %v6938_v5 = vpop.f32.mrf.mxu0  ;;  %v5385_v44 = vmul.f32 %v7327_v21, %v9561_v8 }
 0x2bd   : > { %v6250_v16 = vmul.f32 -1.442695, %v9668_v31  ;;  %v9675_v51 = vadd.f32 %v6938_v5, %v4977_v45  ;;  %v9677_v63 = vpop.f32.mrf.mxu1  ;;  %7348 = vpow2.f32 %v6252_v2  ;;  %v7329_v33 = vpop.eup %7328  ;;  %v4985_v45 = vadd.f32 %v6848_v62, %v9892_v53  ;;  %v9893_v5 = vld [vmem:[#allocation23_spill] sm:$0xff] }
 0x2be   : > { %v5129_v41 = vpop.f32.mrf.mxu0  ;;  %v5388_v59 = vmul.f32 %v7329_v33, %v9572_v26  ;;  %v4998_v61 = vadd.f32 %v6857_v19, %v9893_v5 }
 0x2bf   : > { %7350 = vpow2.f32 %v6250_v16  ;;  %v6253_v32 = vmul.f32 -1.442695, %v9675_v51  ;;  %v9682_v52 = vadd.f32 %v5129_v41, %v4969_v47  ;;  %v7331_v27 = vpop.eup %7330 }
 0x2c0   : > { %v7333_v54 = vpop.eup %7332  ;;  %v5299_v20 = vadd.f32 1.0, %v7331_v27  ;;  %v6354_v7 = vpack.c.bf16 %v5388_v59, %v5387_v30  ;;  %v9894_v27 = vld [vmem:[#allocation27_spill] sm:$0xff] }
 0x2c1   : > { %7352 = vpow2.f32 %v6253_v32  ;;  %v6251_v4 = vmul.f32 -1.442695, %v9682_v52  ;;  %v7335_v15 = vpop.eup %7334  ;;  %v5386_v26 = vmul.f32 %v7333_v54, %v9579_v12 }
 0x2c2   : > { %v6861_v60 = vpop.f32.mrf.mxu1  ;;  %v6941_v28 = vpop.f32.mrf.mxu0  ;;  %7354 = vrcp.f32 %v5299_v20  ;;  %v5297_v14 = vadd.f32 1.0, %v7335_v15  ;;  %6418 = vst [vmem:[%s9654_s29 + $0x18] sm:$0xff] %v6354_v7  }
 0x2c3   : > { %v9693_v35 = vadd.f32 %v6941_v28, %v4990_v25  ;;  %v7337_v55 = vpop.eup %7336  ;;  %v6349_v42 = vpack.c.bf16 %v5386_v26, %v5385_v44  ;;  %7356 = vpow2.f32 %v6251_v4  ;;  %v9895_v44 = vld [vmem:[#allocation24_spill] sm:$0xff] }
 0x2c4   : > { %v6862_v37 = vpop.f32.mrf.mxu1  ;;  %v5142_v49 = vpop.f32.mrf.mxu0  ;;  %v5300_v46 = vadd.f32 1.0, %v7337_v55  ;;  %7358 = vrcp.f32 %v5297_v14 }
 0x2c5   : > { %v6256_v8 = vmul.f32 -1.442695, %v9693_v35  ;;  %v7339_v50 = vpop.eup %7338  ;;  %v6863_v12 = vadd.f32 %v6862_v37, %v6861_v60  ;;  %v9698_v13 = vadd.f32 %v5142_v49, %v4982_v58  ;;  %6417 = vst [vmem:[%s9654_s29 + $0x10] sm:$0xff] %v6349_v42   ;;  %v6860_v58 = vadd.f32 %v9677_v63, %v9664_v6  ;;  %v9896_v37 = vld [vmem:[#allocation25_spill] sm:$0xff] }
 0x2c6   : > { %v6864_v43 = vpop.f32.mrf.mxu1  ;;  %v6942_v9 = vpop.f32.mrf.mxu0  ;;  %7360 = vrcp.f32 %v5300_v46  ;;  %v5391_v40 = vmul.f32 %v7339_v50, %v9588_v17 }
 0x2c7   : > { %v7341_v36 = vpop.eup %7340  ;;  %v9701_v29 = vadd.f32 %v6942_v9, %v4993_v57  ;;  %7362 = vpow2.f32 %v6256_v8  ;;  %v6254_v2 = vmul.f32 -1.442695, %v9698_v13  ;;  %v5006_v30 = vadd.f32 %v6863_v12, %v9894_v27 }
 0x2c8   : > { %v7343_v10 = vpop.eup %7342  ;;  %v6865_v0 = vpop.f32.mrf.mxu1  ;;  %v5389_v25 = vmul.f32 %v7341_v36, %v9594_v39  ;;  %v5001_v49 = vadd.f32 %v6860_v58, %v9896_v37 }
 0x2c9   : > { %v5145_v18 = vpop.f32.mrf.mxu0  ;;  %v7345_v16 = vpop.eup %7344  ;;  %v5298_v47 = vadd.f32 1.0, %v7343_v10  ;;  %v6257_v21 = vmul.f32 -1.442695, %v9701_v29  ;;  %v6866_v41 = vadd.f32 %v6865_v0, %v6864_v43  ;;  %7364 = vpow2.f32 %v6254_v2 }
 0x2ca   : > { %v9707_v33 = vadd.f32 %v5145_v18, %v4985_v45  ;;  %v5392_v32 = vmul.f32 %v7345_v16, %v9599_v23  ;;  %v7347_v59 = vpop.eup %7346 }
 0x2cb   : > { %7366 = vrcp.f32 %v5298_v47  ;;  %v7349_v20 = vpop.eup %7348  ;;  %v5390_v17 = vmul.f32 %v7347_v59, %v9607_v11  ;;  %v5009_v7 = vadd.f32 %v6866_v41, %v9895_v44 }
 0x2cc   : > { %v6255_v54 = vmul.f32 -1.442695, %v9707_v33  ;;  %v6364_v4 = vpack.c.bf16 %v5392_v32, %v5391_v40  ;;  %7368 = vpow2.f32 %v6257_v21  ;;  %v7351_v28 = vpop.eup %7350  ;;  %v5303_v15 = vadd.f32 1.0, %v7349_v20 }
 0x2cd   : > { %v6945_v62 = vpop.f32.mrf.mxu0  ;;  %v6867_v23 = vpop.f32.mrf.mxu1  ;;  %v6359_v6 = vpack.c.bf16 %v5390_v17, %v5389_v25  ;;  %v5301_v63 = vadd.f32 1.0, %v7351_v28 }
 0x2ce   : > { %v9717_v60 = vadd.f32 %v6945_v62, %v5006_v30  ;;  %7370 = vpow2.f32 %v6255_v54  ;;  %6420 = vst [vmem:[%s9654_s29 + $0x28] sm:$0xff] %v6364_v4   ;;  %v7353_v11 = vpop.eup %7352 }
 0x2cf   : > { %v5158_v39 = vpop.f32.mrf.mxu0  ;;  %v6868_v55 = vpop.f32.mrf.mxu1  ;;  %7372 = vrcp.f32 %v5303_v15  ;;  %6419 = vst [vmem:[%s9654_s29 + $0x20] sm:$0xff] %v6359_v6   ;;  %v5304_v48 = vadd.f32 1.0, %v7353_v11  ;;  %v9897_v15 = vld [vmem:[#allocation28_spill] sm:$0xff] }
 0x2d0   : > { %v6260_v26 = vmul.f32 -1.442695, %v9717_v60  ;;  %v9722_v14 = vadd.f32 %v5158_v39, %v4998_v61  ;;  %7374 = vrcp.f32 %v5301_v63  ;;  %v7355_v8 = vpop.eup %7354  ;;  %v6869_v2 = vadd.f32 %v6868_v55, %v6867_v23 }
 0x2d1   : > { %v6946_v19 = vpop.f32.mrf.mxu0  ;;  %v6870_v42 = vpop.f32.mrf.mxu1  ;;  %v5395_v5 = vmul.f32 %v7355_v8, %v9620_v34 }
 0x2d2   : > { %v6258_v57 = vmul.f32 -1.442695, %v9722_v14  ;;  %v9727_v46 = vadd.f32 %v6946_v19, %v5009_v7  ;;  %7376 = vpow2.f32 %v6260_v26  ;;  %v7357_v12 = vpop.eup %7356  ;;  %v5014_v25 = vadd.f32 %v6869_v2, %v9485_v56  ;;  %v9898_v26 = vld [vmem:[#allocation26_spill] sm:$0xff] }
 0x2d3   : > { %v5161_v50 = vpop.f32.mrf.mxu0  ;;  %7378 = vrcp.f32 %v5304_v48  ;;  %v6871_v9 = vpop.f32.mrf.mxu1  ;;  %v5302_v45 = vadd.f32 1.0, %v7357_v12 }
 0x2d4   : > { %v6261_v43 = vmul.f32 -1.442695, %v9727_v46  ;;  %v9730_v36 = vadd.f32 %v5161_v50, %v5001_v49  ;;  %v7359_v53 = vpop.eup %7358  ;;  %7380 = vpow2.f32 %v6258_v57  ;;  %v6872_v27 = vadd.f32 %v6871_v9, %v6870_v42 }
 0x2d5   : > { %v7361_v10 = vpop.eup %7360  ;;  %v5393_v54 = vmul.f32 %v7359_v53, %v9627_v38 }
 0x2d6   : > { %7382 = vpow2.f32 %v6261_v43  ;;  %v6259_v0 = vmul.f32 -1.442695, %v9730_v36  ;;  %v7363_v18 = vpop.eup %7362  ;;  %v5396_v61 = vmul.f32 %v7361_v10, %v9637_v3  ;;  %v5017_v55 = vadd.f32 %v6872_v27, %v9898_v26 }
 0x2d7   : > { %7384 = vrcp.f32 %v5302_v45  ;;  %v5307_v16 = vadd.f32 1.0, %v7363_v18  ;;  %v7365_v21 = vpop.eup %7364 }
 0x2d8   : > { %7386 = vpow2.f32 %v6259_v0  ;;  %v6873_v47 = vpop.f32.mrf.mxu1  ;;  %v6374_v41 = vpack.c.bf16 %v5396_v61, %v5395_v5  ;;  %v7367_v40 = vpop.eup %7366  ;;  %v5305_v32 = vadd.f32 1.0, %v7365_v21 }
 0x2d9   : > { %v6949_v30 = vpop.f32.mrf.mxu0  ;;  %v7369_v58 = vpop.eup %7368  ;;  %v5394_v34 = vmul.f32 %v7367_v40, %v9646_v22  ;;  %7388 = vrcp.f32 %v5307_v16 }
 0x2da   : > { %v6874_v59 = vpop.f32.mrf.mxu1  ;;  %6422 = vst [vmem:[%s9654_s29 + $0x38] sm:$0xff] %v6374_v41   ;;  %7390 = vrcp.f32 %v5305_v32  ;;  %v5308_v20 = vadd.f32 1.0, %v7369_v58 }
 0x2db   : > { %v6875_v3 = vadd.f32 %v6874_v59, %v6873_v47  ;;  %v7371_v62 = vpop.eup %7370  ;;  %v5174_v4 = vpop.f32.mrf.mxu0  ;;  %v6369_v23 = vpack.c.bf16 %v5394_v34, %v5393_v54 }
 0x2dc   : > { %v6876_v17 = vpop.f32.mrf.mxu1  ;;  %v5306_v28 = vadd.f32 1.0, %v7371_v62  ;;  %v9740_v44 = vadd.f32 %v5174_v4, %v5014_v25  ;;  %v7373_v56 = vpop.eup %7372  ;;  %7392 = vrcp.f32 %v5308_v20 }
 0x2dd   : > { %v5022_v39 = vadd.f32 %v6875_v3, %v9897_v15  ;;  %v6950_v38 = vpop.f32.mrf.mxu0  ;;  %v7375_v6 = vpop.eup %7374  ;;  %6421 = vst [vmem:[%s9654_s29 + $0x30] sm:$0xff] %v6369_v23   ;;  %v5399_v50 = vmul.f32 %v7373_v56, %v9662_v24 }
 0x2de   : > { %v6877_v7 = vpop.f32.mrf.mxu1  ;;  %7394 = vrcp.f32 %v5306_v28  ;;  %v6262_v63 = vmul.f32 -1.442695, %v9740_v44  ;;  %v5397_v61 = vmul.f32 %v7375_v6, %v9668_v31 }
 0x2df   : > { %v9743_v22 = vadd.f32 %v6949_v30, %v5022_v39  ;;  %v7377_v11 = vpop.eup %7376  ;;  %v6878_v19 = vadd.f32 %v6877_v7, %v6876_v17  ;;  %v5177_v37 = vpop.f32.mrf.mxu0 }
 0x2e0   : > { %v7379_v49 = vpop.eup %7378  ;;  %v5311_v48 = vadd.f32 1.0, %v7377_v11  ;;  %7396 = vpow2.f32 %v6262_v63  ;;  %v9748_v42 = vadd.f32 %v5177_v37, %v5017_v55 }
 0x2e1   : > { %v6264_v57 = vmul.f32 -1.442695, %v9743_v22  ;;  %v7381_v8 = vpop.eup %7380  ;;  %v5400_v12 = vmul.f32 %v7379_v49, %v9675_v51  ;;  %v5025_v43 = vadd.f32 %v6878_v19, %v9508_v1 }
 0x2e2   : > { %7398 = vrcp.f32 %v5311_v48  ;;  %v5309_v53 = vadd.f32 1.0, %v7381_v8  ;;  %v6263_v45 = vmul.f32 -1.442695, %v9748_v42 }
 0x2e3   : > { %v7383_v9 = vpop.eup %7382  ;;  %v6384_v2 = vpack.c.bf16 %v5400_v12, %v5399_v50  ;;  %7400 = vpow2.f32 %v6264_v57  ;;  %v5186_v18 = vadd.f32 %v6950_v38, %v5025_v43 }
 0x2e4   : > { %v7385_v10 = vpop.eup %7384  ;;  %v5312_v0 = vadd.f32 1.0, %v7383_v9  ;;  %7402 = vrcp.f32 %v5309_v53 }
 0x2e5   : > { %v7387_v5 = vpop.eup %7386  ;;  %v5398_v24 = vmul.f32 %v7385_v10, %v9682_v52  ;;  %6424 = vst [vmem:[%s9654_s29 + $0x48] sm:$0xff] %v6384_v2   ;;  %v6265_v51 = vmul.f32 -1.442695, %v5186_v18 }
 0x2e6   : > { %7404 = vrcp.f32 %v5312_v0  ;;  %v5310_v1 = vadd.f32 1.0, %v7387_v5  ;;  %v7389_v47 = vpop.eup %7388 }
 0x2e7   : > { %v6379_v16 = vpack.c.bf16 %v5398_v24, %v5397_v61  ;;  %7406 = vpow2.f32 %v6263_v45  ;;  %v7391_v21 = vpop.eup %7390  ;;  %v5403_v31 = vmul.f32 %v7389_v47, %v9693_v35 }
 0x2e8   : > { %7408 = vrcp.f32 %v5310_v1  ;;  %v5401_v32 = vmul.f32 %v7391_v21, %v9698_v13 }
 0x2e9   : > { %6423 = vst [vmem:[%s9654_s29 + $0x40] sm:$0xff] %v6379_v16   ;;  %7410 = vpow2.f32 %v6265_v51  ;;  %v7393_v41 = vpop.eup %7392 }
 0x2ea   : > { %v5404_v52 = vmul.f32 %v7393_v41, %v9701_v29 }
 0x2eb   : > { %v7395_v40 = vpop.eup %7394 }
 0x2ec   : > { %v5402_v27 = vmul.f32 %v7395_v40, %v9707_v33  ;;  %v6394_v59 = vpack.c.bf16 %v5404_v52, %v5403_v31 }
 0x2ed   : > { %v7397_v30 = vpop.eup %7396 }
 0x2ee   : > { %v6389_v25 = vpack.c.bf16 %v5402_v27, %v5401_v32  ;;  %6426 = vst [vmem:[%s9654_s29 + $0x58] sm:$0xff] %v6394_v59   ;;  %v5313_v34 = vadd.f32 1.0, %v7397_v30 }
 0x2ef   : > { %v7399_v58 = vpop.eup %7398 }
 0x2f0   : > { %v7401_v54 = vpop.eup %7400  ;;  %6425 = vst [vmem:[%s9654_s29 + $0x50] sm:$0xff] %v6389_v25   ;;  %v5407_v35 = vmul.f32 %v7399_v58, %v9717_v60  ;;  %7412 = vrcp.f32 %v5313_v34 }
 0x2f1   : > { %v7403_v3 = vpop.eup %7402  ;;  %v5315_v62 = vadd.f32 1.0, %v7401_v54 }
 0x2f2   : > { %v5405_v23 = vmul.f32 %v7403_v3, %v9722_v14 }
 0x2f3   : > { %v7405_v20 = vpop.eup %7404  ;;  %7414 = vrcp.f32 %v5315_v62 }
 0x2f4   : > { %v7407_v4 = vpop.eup %7406  ;;  %v5408_v13 = vmul.f32 %v7405_v20, %v9727_v46 }
 0x2f5   : > { %v7409_v29 = vpop.eup %7408  ;;  %v5314_v33 = vadd.f32 1.0, %v7407_v4 }
 0x2f6   : > { %v7411_v17 = vpop.eup %7410  ;;  %v6404_v28 = vpack.c.bf16 %v5408_v13, %v5407_v35  ;;  %v5406_v15 = vmul.f32 %v7409_v29, %v9730_v36 }
 0x2f7   : > { %v5316_v39 = vadd.f32 1.0, %v7411_v17  ;;  %7416 = vrcp.f32 %v5314_v33 }
 0x2f8   : > { %6428 = vst [vmem:[%s9654_s29 + $0x68] sm:$0xff] %v6404_v28   ;;  %v6399_v56 = vpack.c.bf16 %v5406_v15, %v5405_v23 }
 0x2f9   : > { %7418 = vrcp.f32 %v5316_v39 }
 0x2fa   : > { %6427 = vst [vmem:[%s9654_s29 + $0x60] sm:$0xff] %v6399_v56  }
 0x2fd   : > { %v7413_v60 = vpop.eup %7412 }
 0x2fe   : > { %v5409_v7 = vmul.f32 %v7413_v60, %v9740_v44 }
 0x300   : > { %v7415_v46 = vpop.eup %7414 }
 0x301   : > { %v5411_v6 = vmul.f32 %v7415_v46, %v9743_v22 }
 0x304   : > { %v7417_v38 = vpop.eup %7416 }
 0x305   : > { %v5410_v14 = vmul.f32 %v7417_v38, %v9748_v42 }
 0x306   : > { %v7419_v36 = vpop.eup %7418 }
 0x307   : > { %v5412_v63 = vmul.f32 %v7419_v36, %v5186_v18  ;;  %v6409_v26 = vpack.c.bf16 %v5410_v14, %v5409_v7 }
 0x309   : > { %v6414_v44 = vpack.c.bf16 %v5412_v63, %v5411_v6  ;;  %6429 = vst [vmem:[%s9654_s29 + $0x70] sm:$0xff] %v6409_v26  }
 0x30b   : > { %6430 = vst [vmem:[%s9654_s29 + $0x78] sm:$0xff] %v6414_v44  }
 0x30c   : > { %7460 = shalt.err (!%p7457_p3)
}
 0x30d   : > { %s7461_s18 = scalar_lea.hbm %s9778_s7, 2048  ;;  %s7465_s23 = scalar_lea.hbm %s9834_s3, 4096 }
 0x30e   : > { %p7462_p5 = scmp.ne.s32.totalorder %s9778_s7, %s7461_s18  ;;  %p7466_p9 = scmp.lt.s32.totalorder %s9778_s7, %s9834_s3 }
 0x30f   : > { %p7467_p10 = scmp.lt.s32.totalorder %s7465_s23, %s7461_s18 }
 0x310   : > { %p7463_p6 = pnand %p7462_p5, %p7596_p4 }
 0x311   : > { %p7468_p11 = por %p7467_p10, %p7466_p9 }
 0x312   : > { %p7464_p7 = pneg %p7463_p6 }
 0x314   : > { %p7469_p12 = pnand %p7468_p11, %p7464_p7 }
 0x316   : > { %7472 = shalt.err (!%p7469_p12)
}
 0x317   : > { %s7534_s28 = smov 64   ;;  %s7535_s29 = smov 4  }
 0x318   : > { %6972 = dma.vmem_to_hbm [thread:$0]  (%p7596_p4), %s9780_s4, 2048, %s9778_s7, %s9786_s15, %s7534_s28, %s7534_s28, %s7535_s29  }
 0x319 PF: > { %p6984_p13 = scmp.ge.s32.totalorder %s7527_s17, 2  ;;  %s5605_s30 = sand.u32 1, %s7507_s12  }
 0x31a   : > { %s5606_s5 = scalar_lea.sflag [#allocation5], %s5605_s30 }
 0x31b   : > { %p6979_p0 = pnand %p6984_p13, %p7603_p8 }
 0x31d   : > { %p6980_p1 = pneg %p6979_p0 }
 0x31f   : > { %7502 = dma.done.wait (%p6980_p1), %s5606_s5, 2048  }
 0x320   : > { %7504 = vsyncadd (%p6980_p1), %s5606_s5, 4294965248  ;;  %s17_s17 = sadd.s32 1, %s7527_s17   ;;  %s9899_s12 = smov %s7511_s13 }
 0x321   : > { %p14_p2 = scmp.ge.s32.totalorder %s17_s17, 4   ;;  %s9900_s13 = smov %s7515_s14 }
 0x322   : > { %s9901_s14 = smov %s7609_s25  ;;  %s9902_s15 = smov %s7523_s16 }
 0x323   : > { %s9903_s16 = smov %s9905_s20  ;;  %16 = sbr.rel (!%p14_p2) target bundleno = 5 (0x5), region = 79 }
 0x328   :  { %5611 = vsyncpa [#allocation4], 1 }
 0x329   :  { %5613 = vsyncpa [#allocation4 + $0x1], 1 }
 0x32a   :  { %5614 = vsyncpa [#allocation5], 1 }
 0x32b   :  { %5616 = vsyncpa [#allocation5 + $0x1], 1 }

</bundles_post_ra>
